<compile_context>
chip_gen: v7x
topology: tpu7x:2x2x1
jax: 0.10.0
libtpu: 0.0.40
codegen_flags: <defaults>
</compile_context>

<pallas_src>
import functools

import jax
import jax.numpy as jnp
from jax.experimental import pallas as pl
from jax.experimental.pallas import tpu as pltpu


def _round_up(v, m):
    return ((v + m - 1) // m) * m


def fused_kernel(w_ref, gamma_ref, beta_ref, xsh_ref, out_ref, conv_ref, *,
                 h_true, w_true, cb, sh, c_in, k):
    # w_ref     : (C_out, C_in*K*K) f32 SMEM  flattened conv weights (OIHW order)
    # gamma_ref : (C_out,)          f32 SMEM  BN affine weight
    # beta_ref  : (C_out,)          f32 SMEM  BN affine bias
    # xsh_ref   : (K, C_in, Hp+2, Wp) f32 VMEM  lane-pre-shifted zero-padded input
    # out_ref   : (cb, H, W)        f32 VMEM  this step's output channels
    # conv_ref  : (cb, Hp, Wp)      f32 VMEM  scratch: masked conv result
    co0 = pl.program_id(0) * cb
    Hp, Wp = conv_ref.shape[1], conv_ref.shape[2]
    n_strips = Hp // sh
    EPS = 1e-5
    NEG = jnp.float32(-1e30)   # acts as -inf for the max pool (values bounded)
    inv_n = jnp.float32(1.0 / (h_true * w_true))

    # Hoist per-step scalars / ref views out of the strip loop.
    n_taps = c_in * k * k
    wv = [[w_ref[co0 + c, t] for t in range(n_taps)] for c in range(cb)]
    xv = [[xsh_ref.at[kw, ci] for ci in range(c_in)] for kw in range(k)]

    # ---- pass 1: 3x3 "same" conv, register-blocked row strips, cb channels ------
    def strip_body(s, carry):
        row0 = pl.multiple_of(s * sh, sh)
        accs = [jnp.zeros((sh, Wp), jnp.float32) for _ in range(cb)]
        for ci in range(c_in):
            for kh in range(k):
                for kw in range(k):
                    slab = xv[kw][ci][pl.ds(row0 + kh, sh), :]   # (sh, Wp), lane-aligned
                    t = ci * k * k + kh * k + kw
                    for c in range(cb):
                        accs[c] = accs[c] + wv[c][t] * slab
        rowl = jax.lax.broadcasted_iota(jnp.int32, (sh, Wp), 0) + row0
        coll = jax.lax.broadcasted_iota(jnp.int32, (sh, Wp), 1)
        valid = (rowl < h_true) & (coll < w_true)
        for c in range(cb):
            conv_ref[c, pl.ds(row0, sh), :] = jnp.where(valid, accs[c], 0.0)
        return carry

    jax.lax.fori_loop(0, n_strips, strip_body, 0)

    # ---- pass 2: BN stats + normalize + max pool + tanh(tanh(.)) ----------------
    rowf = jax.lax.broadcasted_iota(jnp.int32, (Hp, Wp), 0)
    colf = jax.lax.broadcasted_iota(jnp.int32, (Hp, Wp), 1)
    valid_full = (rowf < h_true) & (colf < w_true)

    def sum_all(v):  # lane reduce then sublane reduce -> (1, 1)
        return jnp.sum(jnp.sum(v, axis=1, keepdims=True), axis=0, keepdims=True)

    for c in range(cb):
        x = conv_ref[c]                                   # (Hp, Wp); invalid == 0
        mean = sum_all(x) * inv_n                         # (1, 1)
        var = sum_all(x * x) * inv_n - mean * mean        # E[x^2] - E[x]^2
        scale = jax.lax.rsqrt(var + EPS) * gamma_ref[co0 + c]
        shift = beta_ref[co0 + c] - mean * scale
        z = jnp.where(valid_full, x * scale + shift, NEG)

        # 3x3 stride-1 max pool, padding=1 (pre-tanh; tanh is monotone).
        # Hp >= H+1 and Wp >= W+1 guarantee the roll wrap-around always lands in
        # NEG padding, so no edge masks are needed.
        rowm = jnp.maximum(z, jnp.maximum(pltpu.roll(z, 1, 1),
                                          pltpu.roll(z, Wp - 1, 1)))
        pooled = jnp.maximum(rowm, jnp.maximum(pltpu.roll(rowm, 1, 0),
                                               pltpu.roll(rowm, Hp - 1, 0)))

        # tanh(maxpool(tanh(bn))) == tanh(tanh(maxpool(bn)))
        out_ref[c] = jnp.tanh(jnp.tanh(pooled))[:h_true, :w_true]


def model_forward(x, w_t, b, gamma, beta, *, cb=4, sh=8):
    """x: (1, C_in, H, W) f32 (NCHW). Returns (1, C_out, H, W) f32.

    `b` (the conv bias) is accepted for API parity but not used: training-mode
    BatchNorm subtracts the per-channel batch mean, which cancels it exactly.
    """
    del b
    N, C_in, H, W = x.shape
    assert N == 1, "kernel specialized to batch 1 (matches the PyTorch input)"
    assert H >= 3 and W >= 3
    C_out, K = w_t.shape[1], w_t.shape[2]
    assert C_out % cb == 0
    LANES = 128
    Wp = _round_up(W + 1, LANES)   # >= W+1: lane-dense compute + NEG pad column
    Hp = _round_up(H + 1, sh)      # >= H+1: whole strips + NEG pad row

    # stride-1 ConvTranspose2d(pad=1) == Conv2d with flipped kernel, pad = K-1-p = 1
    w_conv = jnp.flip(w_t, axis=(2, 3)).transpose(1, 0, 2, 3)         # (C_out, C_in, K, K)
    w2d = w_conv.reshape(C_out, C_in * K * K).astype(jnp.float32)

    # zero-pad to (C_in, Hp+2, Wp+2): data lives at rows 1..H, cols 1..W
    xpad = jnp.pad(x[0].astype(jnp.float32),
                   ((0, 0), (1, Hp + 1 - H), (1, Wp + 1 - W)))
    # pre-shift the kw lane offsets -> (K, C_in, Hp+2, Wp), all kernel reads aligned
    xsh = jnp.stack([xpad[:, :, kw:kw + Wp] for kw in range(K)], axis=0)

    out = pl.pallas_call(
        functools.partial(fused_kernel, h_true=H, w_true=W, cb=cb, sh=sh,
                          c_in=C_in, k=K),
        grid=(C_out // cb,),
        out_shape=jax.ShapeDtypeStruct((C_out, H, W), jnp.float32),
        in_specs=[
            pl.BlockSpec(memory_space=pltpu.MemorySpace.SMEM),   # w2d
            pl.BlockSpec(memory_space=pltpu.MemorySpace.SMEM),   # gamma
            pl.BlockSpec(memory_space=pltpu.MemorySpace.SMEM),   # beta
            pl.BlockSpec(memory_space=pltpu.MemorySpace.VMEM),   # xsh (resident)
        ],
        out_specs=pl.BlockSpec((cb, H, W), lambda g: (g, 0, 0)),
        scratch_shapes=[pltpu.VMEM((cb, Hp, Wp), jnp.float32)],
        compiler_params=pltpu.CompilerParams(
            dimension_semantics=("parallel",),
            vmem_limit_bytes=48 * 1024 * 1024),   # v5e headroom at full 608x358
    )(w2d, gamma.astype(jnp.float32), beta.astype(jnp.float32), xsh)

    return out[None]   # (1, C_out, H, W) — no post-kernel width slice needed


def reference_forward(x, w_t, b, gamma, beta):
    """Pure-JAX reference of the same semantics (for verification)."""
    C_out = w_t.shape[1]
    w_conv = jnp.flip(w_t, axis=(2, 3)).transpose(1, 0, 2, 3)
    y = jax.lax.conv_general_dilated(
        x, w_conv, window_strides=(1, 1), padding=((1, 1), (1, 1)),
        dimension_numbers=('NCHW', 'OIHW', 'NCHW'),
        precision=jax.lax.Precision.HIGHEST)
    y = y + b.reshape(1, C_out, 1, 1)
    mean = jnp.mean(y, axis=(0, 2, 3), keepdims=True)
    var = jnp.mean(jnp.square(y - mean), axis=(0, 2, 3), keepdims=True)
    y = (y - mean) * jax.lax.rsqrt(var + 1e-5)
    y = y * gamma.reshape(1, C_out, 1, 1) + beta.reshape(1, C_out, 1, 1)
    t = jnp.tanh(y)
    tp = jnp.pad(t, ((0, 0), (0, 0), (1, 1), (1, 1)), constant_values=-jnp.inf)
    m = jax.lax.reduce_window(tp, -jnp.inf, jax.lax.max,
                              (1, 1, 3, 3), (1, 1, 1, 1), 'VALID')
    return jnp.tanh(m)


if __name__ == "__main__":
    C_in, C_out, K = 3, 16, 3
    H, W = 16, 20   # small stand-in for (608, 358); W deliberately not lane-aligned

    key = jax.random.PRNGKey(0)
    k_x, k_w, k_b = jax.random.split(key, 3)

    x1 = jax.random.normal(k_x, (1, C_in, H, W), jnp.float32)
    # ConvTranspose2d weight layout (groups=1): (in_ch, out_ch, kH, kW)
    w_t = jax.random.normal(k_w, (C_in, C_out, K, K), jnp.float32) * 0.1
    b = jax.random.normal(k_b, (C_out,), jnp.float32) * 0.1
    gamma = jnp.ones((C_out,), jnp.float32)   # BatchNorm default affine weight
    beta = jnp.zeros((C_out,), jnp.float32)   # BatchNorm default affine bias

    out = jax.block_until_ready(model_forward(x1, w_t, b, gamma, beta))
    ref = jax.block_until_ready(reference_forward(x1, w_t, b, gamma, beta))

    assert out.shape == (1, C_out, H, W)
    if not jnp.allclose(out, ref, rtol=1e-4, atol=1e-4):
        raise AssertionError("Pallas kernel output mismatch vs reference")

    print("KERNEL_OK")
</pallas_src>

<mosaic_0001>
module attributes {stable_mosaic.version = 11 : i64} {
  func.func @fused_kernel(%arg0: i32, %arg1: memref<16x27xf32, #tpu.memory_space<smem>>, %arg2: memref<16xf32, #tpu.memory_space<smem>>, %arg3: memref<16xf32, #tpu.memory_space<smem>>, %arg4: memref<3x3x26x128xf32, #tpu.memory_space<vmem>>, %arg5: memref<4x16x20xf32, #tpu.memory_space<vmem>>, %arg6: memref<4x24x128xf32, #tpu.memory_space<vmem>>) attributes {dimension_semantics = [#tpu.dimension_semantics<parallel>], iteration_bounds = array<i64: 4>, scalar_prefetch = 0 : i64, scratch_operands = 1 : i64, tpu.core_type = #tpu.core_type<tc>, window_params = [{transform_indices = @transform_0, window_bounds = array<i64: 16, 27>}, {transform_indices = @transform_1, window_bounds = array<i64: 16>}, {transform_indices = @transform_2, window_bounds = array<i64: 16>}, {pipeline_mode = #tpu.pipeline_mode<synchronous>, transform_indices = @transform_3, window_bounds = array<i64: 3, 3, 26, 128>}, {transform_indices = @transform_4, window_bounds = array<i64: 4, 16, 20>}]} {
    %c4_i32 = arith.constant 4 : i32
    %0 = arith.muli %arg0, %c4_i32 : i32
    %c0_i32 = arith.constant 0 : i32
    %1 = arith.addi %0, %c0_i32 : i32
    %2 = arith.index_cast %1 : i32 to index
    %c0 = arith.constant 0 : index
    %3 = memref.load %arg1[%2, %c0] : memref<16x27xf32, #tpu.memory_space<smem>>
    %c0_i32_0 = arith.constant 0 : i32
    %4 = arith.addi %0, %c0_i32_0 : i32
    %5 = arith.index_cast %4 : i32 to index
    %c1 = arith.constant 1 : index
    %6 = memref.load %arg1[%5, %c1] : memref<16x27xf32, #tpu.memory_space<smem>>
    %c0_i32_1 = arith.constant 0 : i32
    %7 = arith.addi %0, %c0_i32_1 : i32
    %8 = arith.index_cast %7 : i32 to index
    %c2 = arith.constant 2 : index
    %9 = memref.load %arg1[%8, %c2] : memref<16x27xf32, #tpu.memory_space<smem>>
    %c0_i32_2 = arith.constant 0 : i32
    %10 = arith.addi %0, %c0_i32_2 : i32
    %11 = arith.index_cast %10 : i32 to index
    %c3 = arith.constant 3 : index
    %12 = memref.load %arg1[%11, %c3] : memref<16x27xf32, #tpu.memory_space<smem>>
    %c0_i32_3 = arith.constant 0 : i32
    %13 = arith.addi %0, %c0_i32_3 : i32
    %14 = arith.index_cast %13 : i32 to index
    %c4 = arith.constant 4 : index
    %15 = memref.load %arg1[%14, %c4] : memref<16x27xf32, #tpu.memory_space<smem>>
    %c0_i32_4 = arith.constant 0 : i32
    %16 = arith.addi %0, %c0_i32_4 : i32
    %17 = arith.index_cast %16 : i32 to index
    %c5 = arith.constant 5 : index
    %18 = memref.load %arg1[%17, %c5] : memref<16x27xf32, #tpu.memory_space<smem>>
    %c0_i32_5 = arith.constant 0 : i32
    %19 = arith.addi %0, %c0_i32_5 : i32
    %20 = arith.index_cast %19 : i32 to index
    %c6 = arith.constant 6 : index
    %21 = memref.load %arg1[%20, %c6] : memref<16x27xf32, #tpu.memory_space<smem>>
    %c0_i32_6 = arith.constant 0 : i32
    %22 = arith.addi %0, %c0_i32_6 : i32
    %23 = arith.index_cast %22 : i32 to index
    %c7 = arith.constant 7 : index
    %24 = memref.load %arg1[%23, %c7] : memref<16x27xf32, #tpu.memory_space<smem>>
    %c0_i32_7 = arith.constant 0 : i32
    %25 = arith.addi %0, %c0_i32_7 : i32
    %26 = arith.index_cast %25 : i32 to index
    %c8 = arith.constant 8 : index
    %27 = memref.load %arg1[%26, %c8] : memref<16x27xf32, #tpu.memory_space<smem>>
    %c0_i32_8 = arith.constant 0 : i32
    %28 = arith.addi %0, %c0_i32_8 : i32
    %29 = arith.index_cast %28 : i32 to index
    %c9 = arith.constant 9 : index
    %30 = memref.load %arg1[%29, %c9] : memref<16x27xf32, #tpu.memory_space<smem>>
    %c0_i32_9 = arith.constant 0 : i32
    %31 = arith.addi %0, %c0_i32_9 : i32
    %32 = arith.index_cast %31 : i32 to index
    %c10 = arith.constant 10 : index
    %33 = memref.load %arg1[%32, %c10] : memref<16x27xf32, #tpu.memory_space<smem>>
    %c0_i32_10 = arith.constant 0 : i32
    %34 = arith.addi %0, %c0_i32_10 : i32
    %35 = arith.index_cast %34 : i32 to index
    %c11 = arith.constant 11 : index
    %36 = memref.load %arg1[%35, %c11] : memref<16x27xf32, #tpu.memory_space<smem>>
    %c0_i32_11 = arith.constant 0 : i32
    %37 = arith.addi %0, %c0_i32_11 : i32
    %38 = arith.index_cast %37 : i32 to index
    %c12 = arith.constant 12 : index
    %39 = memref.load %arg1[%38, %c12] : memref<16x27xf32, #tpu.memory_space<smem>>
    %c0_i32_12 = arith.constant 0 : i32
    %40 = arith.addi %0, %c0_i32_12 : i32
    %41 = arith.index_cast %40 : i32 to index
    %c13 = arith.constant 13 : index
    %42 = memref.load %arg1[%41, %c13] : memref<16x27xf32, #tpu.memory_space<smem>>
    %c0_i32_13 = arith.constant 0 : i32
    %43 = arith.addi %0, %c0_i32_13 : i32
    %44 = arith.index_cast %43 : i32 to index
    %c14 = arith.constant 14 : index
    %45 = memref.load %arg1[%44, %c14] : memref<16x27xf32, #tpu.memory_space<smem>>
    %c0_i32_14 = arith.constant 0 : i32
    %46 = arith.addi %0, %c0_i32_14 : i32
    %47 = arith.index_cast %46 : i32 to index
    %c15 = arith.constant 15 : index
    %48 = memref.load %arg1[%47, %c15] : memref<16x27xf32, #tpu.memory_space<smem>>
    %c0_i32_15 = arith.constant 0 : i32
    %49 = arith.addi %0, %c0_i32_15 : i32
    %50 = arith.index_cast %49 : i32 to index
    %c16 = arith.constant 16 : index
    %51 = memref.load %arg1[%50, %c16] : memref<16x27xf32, #tpu.memory_space<smem>>
    %c0_i32_16 = arith.constant 0 : i32
    %52 = arith.addi %0, %c0_i32_16 : i32
    %53 = arith.index_cast %52 : i32 to index
    %c17 = arith.constant 17 : index
    %54 = memref.load %arg1[%53, %c17] : memref<16x27xf32, #tpu.memory_space<smem>>
    %c0_i32_17 = arith.constant 0 : i32
    %55 = arith.addi %0, %c0_i32_17 : i32
    %56 = arith.index_cast %55 : i32 to index
    %c18 = arith.constant 18 : index
    %57 = memref.load %arg1[%56, %c18] : memref<16x27xf32, #tpu.memory_space<smem>>
    %c0_i32_18 = arith.constant 0 : i32
    %58 = arith.addi %0, %c0_i32_18 : i32
    %59 = arith.index_cast %58 : i32 to index
    %c19 = arith.constant 19 : index
    %60 = memref.load %arg1[%59, %c19] : memref<16x27xf32, #tpu.memory_space<smem>>
    %c0_i32_19 = arith.constant 0 : i32
    %61 = arith.addi %0, %c0_i32_19 : i32
    %62 = arith.index_cast %61 : i32 to index
    %c20 = arith.constant 20 : index
    %63 = memref.load %arg1[%62, %c20] : memref<16x27xf32, #tpu.memory_space<smem>>
    %c0_i32_20 = arith.constant 0 : i32
    %64 = arith.addi %0, %c0_i32_20 : i32
    %65 = arith.index_cast %64 : i32 to index
    %c21 = arith.constant 21 : index
    %66 = memref.load %arg1[%65, %c21] : memref<16x27xf32, #tpu.memory_space<smem>>
    %c0_i32_21 = arith.constant 0 : i32
    %67 = arith.addi %0, %c0_i32_21 : i32
    %68 = arith.index_cast %67 : i32 to index
    %c22 = arith.constant 22 : index
    %69 = memref.load %arg1[%68, %c22] : memref<16x27xf32, #tpu.memory_space<smem>>
    %c0_i32_22 = arith.constant 0 : i32
    %70 = arith.addi %0, %c0_i32_22 : i32
    %71 = arith.index_cast %70 : i32 to index
    %c23 = arith.constant 23 : index
    %72 = memref.load %arg1[%71, %c23] : memref<16x27xf32, #tpu.memory_space<smem>>
    %c0_i32_23 = arith.constant 0 : i32
    %73 = arith.addi %0, %c0_i32_23 : i32
    %74 = arith.index_cast %73 : i32 to index
    %c24 = arith.constant 24 : index
    %75 = memref.load %arg1[%74, %c24] : memref<16x27xf32, #tpu.memory_space<smem>>
    %c0_i32_24 = arith.constant 0 : i32
    %76 = arith.addi %0, %c0_i32_24 : i32
    %77 = arith.index_cast %76 : i32 to index
    %c25 = arith.constant 25 : index
    %78 = memref.load %arg1[%77, %c25] : memref<16x27xf32, #tpu.memory_space<smem>>
    %c0_i32_25 = arith.constant 0 : i32
    %79 = arith.addi %0, %c0_i32_25 : i32
    %80 = arith.index_cast %79 : i32 to index
    %c26 = arith.constant 26 : index
    %81 = memref.load %arg1[%80, %c26] : memref<16x27xf32, #tpu.memory_space<smem>>
    %c1_i32 = arith.constant 1 : i32
    %82 = arith.addi %0, %c1_i32 : i32
    %83 = arith.index_cast %82 : i32 to index
    %c0_26 = arith.constant 0 : index
    %84 = memref.load %arg1[%83, %c0_26] : memref<16x27xf32, #tpu.memory_space<smem>>
    %c1_i32_27 = arith.constant 1 : i32
    %85 = arith.addi %0, %c1_i32_27 : i32
    %86 = arith.index_cast %85 : i32 to index
    %c1_28 = arith.constant 1 : index
    %87 = memref.load %arg1[%86, %c1_28] : memref<16x27xf32, #tpu.memory_space<smem>>
    %c1_i32_29 = arith.constant 1 : i32
    %88 = arith.addi %0, %c1_i32_29 : i32
    %89 = arith.index_cast %88 : i32 to index
    %c2_30 = arith.constant 2 : index
    %90 = memref.load %arg1[%89, %c2_30] : memref<16x27xf32, #tpu.memory_space<smem>>
    %c1_i32_31 = arith.constant 1 : i32
    %91 = arith.addi %0, %c1_i32_31 : i32
    %92 = arith.index_cast %91 : i32 to index
    %c3_32 = arith.constant 3 : index
    %93 = memref.load %arg1[%92, %c3_32] : memref<16x27xf32, #tpu.memory_space<smem>>
    %c1_i32_33 = arith.constant 1 : i32
    %94 = arith.addi %0, %c1_i32_33 : i32
    %95 = arith.index_cast %94 : i32 to index
    %c4_34 = arith.constant 4 : index
    %96 = memref.load %arg1[%95, %c4_34] : memref<16x27xf32, #tpu.memory_space<smem>>
    %c1_i32_35 = arith.constant 1 : i32
    %97 = arith.addi %0, %c1_i32_35 : i32
    %98 = arith.index_cast %97 : i32 to index
    %c5_36 = arith.constant 5 : index
    %99 = memref.load %arg1[%98, %c5_36] : memref<16x27xf32, #tpu.memory_space<smem>>
    %c1_i32_37 = arith.constant 1 : i32
    %100 = arith.addi %0, %c1_i32_37 : i32
    %101 = arith.index_cast %100 : i32 to index
    %c6_38 = arith.constant 6 : index
    %102 = memref.load %arg1[%101, %c6_38] : memref<16x27xf32, #tpu.memory_space<smem>>
    %c1_i32_39 = arith.constant 1 : i32
    %103 = arith.addi %0, %c1_i32_39 : i32
    %104 = arith.index_cast %103 : i32 to index
    %c7_40 = arith.constant 7 : index
    %105 = memref.load %arg1[%104, %c7_40] : memref<16x27xf32, #tpu.memory_space<smem>>
    %c1_i32_41 = arith.constant 1 : i32
    %106 = arith.addi %0, %c1_i32_41 : i32
    %107 = arith.index_cast %106 : i32 to index
    %c8_42 = arith.constant 8 : index
    %108 = memref.load %arg1[%107, %c8_42] : memref<16x27xf32, #tpu.memory_space<smem>>
    %c1_i32_43 = arith.constant 1 : i32
    %109 = arith.addi %0, %c1_i32_43 : i32
    %110 = arith.index_cast %109 : i32 to index
    %c9_44 = arith.constant 9 : index
    %111 = memref.load %arg1[%110, %c9_44] : memref<16x27xf32, #tpu.memory_space<smem>>
    %c1_i32_45 = arith.constant 1 : i32
    %112 = arith.addi %0, %c1_i32_45 : i32
    %113 = arith.index_cast %112 : i32 to index
    %c10_46 = arith.constant 10 : index
    %114 = memref.load %arg1[%113, %c10_46] : memref<16x27xf32, #tpu.memory_space<smem>>
    %c1_i32_47 = arith.constant 1 : i32
    %115 = arith.addi %0, %c1_i32_47 : i32
    %116 = arith.index_cast %115 : i32 to index
    %c11_48 = arith.constant 11 : index
    %117 = memref.load %arg1[%116, %c11_48] : memref<16x27xf32, #tpu.memory_space<smem>>
    %c1_i32_49 = arith.constant 1 : i32
    %118 = arith.addi %0, %c1_i32_49 : i32
    %119 = arith.index_cast %118 : i32 to index
    %c12_50 = arith.constant 12 : index
    %120 = memref.load %arg1[%119, %c12_50] : memref<16x27xf32, #tpu.memory_space<smem>>
    %c1_i32_51 = arith.constant 1 : i32
    %121 = arith.addi %0, %c1_i32_51 : i32
    %122 = arith.index_cast %121 : i32 to index
    %c13_52 = arith.constant 13 : index
    %123 = memref.load %arg1[%122, %c13_52] : memref<16x27xf32, #tpu.memory_space<smem>>
    %c1_i32_53 = arith.constant 1 : i32
    %124 = arith.addi %0, %c1_i32_53 : i32
    %125 = arith.index_cast %124 : i32 to index
    %c14_54 = arith.constant 14 : index
    %126 = memref.load %arg1[%125, %c14_54] : memref<16x27xf32, #tpu.memory_space<smem>>
    %c1_i32_55 = arith.constant 1 : i32
    %127 = arith.addi %0, %c1_i32_55 : i32
    %128 = arith.index_cast %127 : i32 to index
    %c15_56 = arith.constant 15 : index
    %129 = memref.load %arg1[%128, %c15_56] : memref<16x27xf32, #tpu.memory_space<smem>>
    %c1_i32_57 = arith.constant 1 : i32
    %130 = arith.addi %0, %c1_i32_57 : i32
    %131 = arith.index_cast %130 : i32 to index
    %c16_58 = arith.constant 16 : index
    %132 = memref.load %arg1[%131, %c16_58] : memref<16x27xf32, #tpu.memory_space<smem>>
    %c1_i32_59 = arith.constant 1 : i32
    %133 = arith.addi %0, %c1_i32_59 : i32
    %134 = arith.index_cast %133 : i32 to index
    %c17_60 = arith.constant 17 : index
    %135 = memref.load %arg1[%134, %c17_60] : memref<16x27xf32, #tpu.memory_space<smem>>
    %c1_i32_61 = arith.constant 1 : i32
    %136 = arith.addi %0, %c1_i32_61 : i32
    %137 = arith.index_cast %136 : i32 to index
    %c18_62 = arith.constant 18 : index
    %138 = memref.load %arg1[%137, %c18_62] : memref<16x27xf32, #tpu.memory_space<smem>>
    %c1_i32_63 = arith.constant 1 : i32
    %139 = arith.addi %0, %c1_i32_63 : i32
    %140 = arith.index_cast %139 : i32 to index
    %c19_64 = arith.constant 19 : index
    %141 = memref.load %arg1[%140, %c19_64] : memref<16x27xf32, #tpu.memory_space<smem>>
    %c1_i32_65 = arith.constant 1 : i32
    %142 = arith.addi %0, %c1_i32_65 : i32
    %143 = arith.index_cast %142 : i32 to index
    %c20_66 = arith.constant 20 : index
    %144 = memref.load %arg1[%143, %c20_66] : memref<16x27xf32, #tpu.memory_space<smem>>
    %c1_i32_67 = arith.constant 1 : i32
    %145 = arith.addi %0, %c1_i32_67 : i32
    %146 = arith.index_cast %145 : i32 to index
    %c21_68 = arith.constant 21 : index
    %147 = memref.load %arg1[%146, %c21_68] : memref<16x27xf32, #tpu.memory_space<smem>>
    %c1_i32_69 = arith.constant 1 : i32
    %148 = arith.addi %0, %c1_i32_69 : i32
    %149 = arith.index_cast %148 : i32 to index
    %c22_70 = arith.constant 22 : index
    %150 = memref.load %arg1[%149, %c22_70] : memref<16x27xf32, #tpu.memory_space<smem>>
    %c1_i32_71 = arith.constant 1 : i32
    %151 = arith.addi %0, %c1_i32_71 : i32
    %152 = arith.index_cast %151 : i32 to index
    %c23_72 = arith.constant 23 : index
    %153 = memref.load %arg1[%152, %c23_72] : memref<16x27xf32, #tpu.memory_space<smem>>
    %c1_i32_73 = arith.constant 1 : i32
    %154 = arith.addi %0, %c1_i32_73 : i32
    %155 = arith.index_cast %154 : i32 to index
    %c24_74 = arith.constant 24 : index
    %156 = memref.load %arg1[%155, %c24_74] : memref<16x27xf32, #tpu.memory_space<smem>>
    %c1_i32_75 = arith.constant 1 : i32
    %157 = arith.addi %0, %c1_i32_75 : i32
    %158 = arith.index_cast %157 : i32 to index
    %c25_76 = arith.constant 25 : index
    %159 = memref.load %arg1[%158, %c25_76] : memref<16x27xf32, #tpu.memory_space<smem>>
    %c1_i32_77 = arith.constant 1 : i32
    %160 = arith.addi %0, %c1_i32_77 : i32
    %161 = arith.index_cast %160 : i32 to index
    %c26_78 = arith.constant 26 : index
    %162 = memref.load %arg1[%161, %c26_78] : memref<16x27xf32, #tpu.memory_space<smem>>
    %c2_i32 = arith.constant 2 : i32
    %163 = arith.addi %0, %c2_i32 : i32
    %164 = arith.index_cast %163 : i32 to index
    %c0_79 = arith.constant 0 : index
    %165 = memref.load %arg1[%164, %c0_79] : memref<16x27xf32, #tpu.memory_space<smem>>
    %c2_i32_80 = arith.constant 2 : i32
    %166 = arith.addi %0, %c2_i32_80 : i32
    %167 = arith.index_cast %166 : i32 to index
    %c1_81 = arith.constant 1 : index
    %168 = memref.load %arg1[%167, %c1_81] : memref<16x27xf32, #tpu.memory_space<smem>>
    %c2_i32_82 = arith.constant 2 : i32
    %169 = arith.addi %0, %c2_i32_82 : i32
    %170 = arith.index_cast %169 : i32 to index
    %c2_83 = arith.constant 2 : index
    %171 = memref.load %arg1[%170, %c2_83] : memref<16x27xf32, #tpu.memory_space<smem>>
    %c2_i32_84 = arith.constant 2 : i32
    %172 = arith.addi %0, %c2_i32_84 : i32
    %173 = arith.index_cast %172 : i32 to index
    %c3_85 = arith.constant 3 : index
    %174 = memref.load %arg1[%173, %c3_85] : memref<16x27xf32, #tpu.memory_space<smem>>
    %c2_i32_86 = arith.constant 2 : i32
    %175 = arith.addi %0, %c2_i32_86 : i32
    %176 = arith.index_cast %175 : i32 to index
    %c4_87 = arith.constant 4 : index
    %177 = memref.load %arg1[%176, %c4_87] : memref<16x27xf32, #tpu.memory_space<smem>>
    %c2_i32_88 = arith.constant 2 : i32
    %178 = arith.addi %0, %c2_i32_88 : i32
    %179 = arith.index_cast %178 : i32 to index
    %c5_89 = arith.constant 5 : index
    %180 = memref.load %arg1[%179, %c5_89] : memref<16x27xf32, #tpu.memory_space<smem>>
    %c2_i32_90 = arith.constant 2 : i32
    %181 = arith.addi %0, %c2_i32_90 : i32
    %182 = arith.index_cast %181 : i32 to index
    %c6_91 = arith.constant 6 : index
    %183 = memref.load %arg1[%182, %c6_91] : memref<16x27xf32, #tpu.memory_space<smem>>
    %c2_i32_92 = arith.constant 2 : i32
    %184 = arith.addi %0, %c2_i32_92 : i32
    %185 = arith.index_cast %184 : i32 to index
    %c7_93 = arith.constant 7 : index
    %186 = memref.load %arg1[%185, %c7_93] : memref<16x27xf32, #tpu.memory_space<smem>>
    %c2_i32_94 = arith.constant 2 : i32
    %187 = arith.addi %0, %c2_i32_94 : i32
    %188 = arith.index_cast %187 : i32 to index
    %c8_95 = arith.constant 8 : index
    %189 = memref.load %arg1[%188, %c8_95] : memref<16x27xf32, #tpu.memory_space<smem>>
    %c2_i32_96 = arith.constant 2 : i32
    %190 = arith.addi %0, %c2_i32_96 : i32
    %191 = arith.index_cast %190 : i32 to index
    %c9_97 = arith.constant 9 : index
    %192 = memref.load %arg1[%191, %c9_97] : memref<16x27xf32, #tpu.memory_space<smem>>
    %c2_i32_98 = arith.constant 2 : i32
    %193 = arith.addi %0, %c2_i32_98 : i32
    %194 = arith.index_cast %193 : i32 to index
    %c10_99 = arith.constant 10 : index
    %195 = memref.load %arg1[%194, %c10_99] : memref<16x27xf32, #tpu.memory_space<smem>>
    %c2_i32_100 = arith.constant 2 : i32
    %196 = arith.addi %0, %c2_i32_100 : i32
    %197 = arith.index_cast %196 : i32 to index
    %c11_101 = arith.constant 11 : index
    %198 = memref.load %arg1[%197, %c11_101] : memref<16x27xf32, #tpu.memory_space<smem>>
    %c2_i32_102 = arith.constant 2 : i32
    %199 = arith.addi %0, %c2_i32_102 : i32
    %200 = arith.index_cast %199 : i32 to index
    %c12_103 = arith.constant 12 : index
    %201 = memref.load %arg1[%200, %c12_103] : memref<16x27xf32, #tpu.memory_space<smem>>
    %c2_i32_104 = arith.constant 2 : i32
    %202 = arith.addi %0, %c2_i32_104 : i32
    %203 = arith.index_cast %202 : i32 to index
    %c13_105 = arith.constant 13 : index
    %204 = memref.load %arg1[%203, %c13_105] : memref<16x27xf32, #tpu.memory_space<smem>>
    %c2_i32_106 = arith.constant 2 : i32
    %205 = arith.addi %0, %c2_i32_106 : i32
    %206 = arith.index_cast %205 : i32 to index
    %c14_107 = arith.constant 14 : index
    %207 = memref.load %arg1[%206, %c14_107] : memref<16x27xf32, #tpu.memory_space<smem>>
    %c2_i32_108 = arith.constant 2 : i32
    %208 = arith.addi %0, %c2_i32_108 : i32
    %209 = arith.index_cast %208 : i32 to index
    %c15_109 = arith.constant 15 : index
    %210 = memref.load %arg1[%209, %c15_109] : memref<16x27xf32, #tpu.memory_space<smem>>
    %c2_i32_110 = arith.constant 2 : i32
    %211 = arith.addi %0, %c2_i32_110 : i32
    %212 = arith.index_cast %211 : i32 to index
    %c16_111 = arith.constant 16 : index
    %213 = memref.load %arg1[%212, %c16_111] : memref<16x27xf32, #tpu.memory_space<smem>>
    %c2_i32_112 = arith.constant 2 : i32
    %214 = arith.addi %0, %c2_i32_112 : i32
    %215 = arith.index_cast %214 : i32 to index
    %c17_113 = arith.constant 17 : index
    %216 = memref.load %arg1[%215, %c17_113] : memref<16x27xf32, #tpu.memory_space<smem>>
    %c2_i32_114 = arith.constant 2 : i32
    %217 = arith.addi %0, %c2_i32_114 : i32
    %218 = arith.index_cast %217 : i32 to index
    %c18_115 = arith.constant 18 : index
    %219 = memref.load %arg1[%218, %c18_115] : memref<16x27xf32, #tpu.memory_space<smem>>
    %c2_i32_116 = arith.constant 2 : i32
    %220 = arith.addi %0, %c2_i32_116 : i32
    %221 = arith.index_cast %220 : i32 to index
    %c19_117 = arith.constant 19 : index
    %222 = memref.load %arg1[%221, %c19_117] : memref<16x27xf32, #tpu.memory_space<smem>>
    %c2_i32_118 = arith.constant 2 : i32
    %223 = arith.addi %0, %c2_i32_118 : i32
    %224 = arith.index_cast %223 : i32 to index
    %c20_119 = arith.constant 20 : index
    %225 = memref.load %arg1[%224, %c20_119] : memref<16x27xf32, #tpu.memory_space<smem>>
    %c2_i32_120 = arith.constant 2 : i32
    %226 = arith.addi %0, %c2_i32_120 : i32
    %227 = arith.index_cast %226 : i32 to index
    %c21_121 = arith.constant 21 : index
    %228 = memref.load %arg1[%227, %c21_121] : memref<16x27xf32, #tpu.memory_space<smem>>
    %c2_i32_122 = arith.constant 2 : i32
    %229 = arith.addi %0, %c2_i32_122 : i32
    %230 = arith.index_cast %229 : i32 to index
    %c22_123 = arith.constant 22 : index
    %231 = memref.load %arg1[%230, %c22_123] : memref<16x27xf32, #tpu.memory_space<smem>>
    %c2_i32_124 = arith.constant 2 : i32
    %232 = arith.addi %0, %c2_i32_124 : i32
    %233 = arith.index_cast %232 : i32 to index
    %c23_125 = arith.constant 23 : index
    %234 = memref.load %arg1[%233, %c23_125] : memref<16x27xf32, #tpu.memory_space<smem>>
    %c2_i32_126 = arith.constant 2 : i32
    %235 = arith.addi %0, %c2_i32_126 : i32
    %236 = arith.index_cast %235 : i32 to index
    %c24_127 = arith.constant 24 : index
    %237 = memref.load %arg1[%236, %c24_127] : memref<16x27xf32, #tpu.memory_space<smem>>
    %c2_i32_128 = arith.constant 2 : i32
    %238 = arith.addi %0, %c2_i32_128 : i32
    %239 = arith.index_cast %238 : i32 to index
    %c25_129 = arith.constant 25 : index
    %240 = memref.load %arg1[%239, %c25_129] : memref<16x27xf32, #tpu.memory_space<smem>>
    %c2_i32_130 = arith.constant 2 : i32
    %241 = arith.addi %0, %c2_i32_130 : i32
    %242 = arith.index_cast %241 : i32 to index
    %c26_131 = arith.constant 26 : index
    %243 = memref.load %arg1[%242, %c26_131] : memref<16x27xf32, #tpu.memory_space<smem>>
    %c3_i32 = arith.constant 3 : i32
    %244 = arith.addi %0, %c3_i32 : i32
    %245 = arith.index_cast %244 : i32 to index
    %c0_132 = arith.constant 0 : index
    %246 = memref.load %arg1[%245, %c0_132] : memref<16x27xf32, #tpu.memory_space<smem>>
    %c3_i32_133 = arith.constant 3 : i32
    %247 = arith.addi %0, %c3_i32_133 : i32
    %248 = arith.index_cast %247 : i32 to index
    %c1_134 = arith.constant 1 : index
    %249 = memref.load %arg1[%248, %c1_134] : memref<16x27xf32, #tpu.memory_space<smem>>
    %c3_i32_135 = arith.constant 3 : i32
    %250 = arith.addi %0, %c3_i32_135 : i32
    %251 = arith.index_cast %250 : i32 to index
    %c2_136 = arith.constant 2 : index
    %252 = memref.load %arg1[%251, %c2_136] : memref<16x27xf32, #tpu.memory_space<smem>>
    %c3_i32_137 = arith.constant 3 : i32
    %253 = arith.addi %0, %c3_i32_137 : i32
    %254 = arith.index_cast %253 : i32 to index
    %c3_138 = arith.constant 3 : index
    %255 = memref.load %arg1[%254, %c3_138] : memref<16x27xf32, #tpu.memory_space<smem>>
    %c3_i32_139 = arith.constant 3 : i32
    %256 = arith.addi %0, %c3_i32_139 : i32
    %257 = arith.index_cast %256 : i32 to index
    %c4_140 = arith.constant 4 : index
    %258 = memref.load %arg1[%257, %c4_140] : memref<16x27xf32, #tpu.memory_space<smem>>
    %c3_i32_141 = arith.constant 3 : i32
    %259 = arith.addi %0, %c3_i32_141 : i32
    %260 = arith.index_cast %259 : i32 to index
    %c5_142 = arith.constant 5 : index
    %261 = memref.load %arg1[%260, %c5_142] : memref<16x27xf32, #tpu.memory_space<smem>>
    %c3_i32_143 = arith.constant 3 : i32
    %262 = arith.addi %0, %c3_i32_143 : i32
    %263 = arith.index_cast %262 : i32 to index
    %c6_144 = arith.constant 6 : index
    %264 = memref.load %arg1[%263, %c6_144] : memref<16x27xf32, #tpu.memory_space<smem>>
    %c3_i32_145 = arith.constant 3 : i32
    %265 = arith.addi %0, %c3_i32_145 : i32
    %266 = arith.index_cast %265 : i32 to index
    %c7_146 = arith.constant 7 : index
    %267 = memref.load %arg1[%266, %c7_146] : memref<16x27xf32, #tpu.memory_space<smem>>
    %c3_i32_147 = arith.constant 3 : i32
    %268 = arith.addi %0, %c3_i32_147 : i32
    %269 = arith.index_cast %268 : i32 to index
    %c8_148 = arith.constant 8 : index
    %270 = memref.load %arg1[%269, %c8_148] : memref<16x27xf32, #tpu.memory_space<smem>>
    %c3_i32_149 = arith.constant 3 : i32
    %271 = arith.addi %0, %c3_i32_149 : i32
    %272 = arith.index_cast %271 : i32 to index
    %c9_150 = arith.constant 9 : index
    %273 = memref.load %arg1[%272, %c9_150] : memref<16x27xf32, #tpu.memory_space<smem>>
    %c3_i32_151 = arith.constant 3 : i32
    %274 = arith.addi %0, %c3_i32_151 : i32
    %275 = arith.index_cast %274 : i32 to index
    %c10_152 = arith.constant 10 : index
    %276 = memref.load %arg1[%275, %c10_152] : memref<16x27xf32, #tpu.memory_space<smem>>
    %c3_i32_153 = arith.constant 3 : i32
    %277 = arith.addi %0, %c3_i32_153 : i32
    %278 = arith.index_cast %277 : i32 to index
    %c11_154 = arith.constant 11 : index
    %279 = memref.load %arg1[%278, %c11_154] : memref<16x27xf32, #tpu.memory_space<smem>>
    %c3_i32_155 = arith.constant 3 : i32
    %280 = arith.addi %0, %c3_i32_155 : i32
    %281 = arith.index_cast %280 : i32 to index
    %c12_156 = arith.constant 12 : index
    %282 = memref.load %arg1[%281, %c12_156] : memref<16x27xf32, #tpu.memory_space<smem>>
    %c3_i32_157 = arith.constant 3 : i32
    %283 = arith.addi %0, %c3_i32_157 : i32
    %284 = arith.index_cast %283 : i32 to index
    %c13_158 = arith.constant 13 : index
    %285 = memref.load %arg1[%284, %c13_158] : memref<16x27xf32, #tpu.memory_space<smem>>
    %c3_i32_159 = arith.constant 3 : i32
    %286 = arith.addi %0, %c3_i32_159 : i32
    %287 = arith.index_cast %286 : i32 to index
    %c14_160 = arith.constant 14 : index
    %288 = memref.load %arg1[%287, %c14_160] : memref<16x27xf32, #tpu.memory_space<smem>>
    %c3_i32_161 = arith.constant 3 : i32
    %289 = arith.addi %0, %c3_i32_161 : i32
    %290 = arith.index_cast %289 : i32 to index
    %c15_162 = arith.constant 15 : index
    %291 = memref.load %arg1[%290, %c15_162] : memref<16x27xf32, #tpu.memory_space<smem>>
    %c3_i32_163 = arith.constant 3 : i32
    %292 = arith.addi %0, %c3_i32_163 : i32
    %293 = arith.index_cast %292 : i32 to index
    %c16_164 = arith.constant 16 : index
    %294 = memref.load %arg1[%293, %c16_164] : memref<16x27xf32, #tpu.memory_space<smem>>
    %c3_i32_165 = arith.constant 3 : i32
    %295 = arith.addi %0, %c3_i32_165 : i32
    %296 = arith.index_cast %295 : i32 to index
    %c17_166 = arith.constant 17 : index
    %297 = memref.load %arg1[%296, %c17_166] : memref<16x27xf32, #tpu.memory_space<smem>>
    %c3_i32_167 = arith.constant 3 : i32
    %298 = arith.addi %0, %c3_i32_167 : i32
    %299 = arith.index_cast %298 : i32 to index
    %c18_168 = arith.constant 18 : index
    %300 = memref.load %arg1[%299, %c18_168] : memref<16x27xf32, #tpu.memory_space<smem>>
    %c3_i32_169 = arith.constant 3 : i32
    %301 = arith.addi %0, %c3_i32_169 : i32
    %302 = arith.index_cast %301 : i32 to index
    %c19_170 = arith.constant 19 : index
    %303 = memref.load %arg1[%302, %c19_170] : memref<16x27xf32, #tpu.memory_space<smem>>
    %c3_i32_171 = arith.constant 3 : i32
    %304 = arith.addi %0, %c3_i32_171 : i32
    %305 = arith.index_cast %304 : i32 to index
    %c20_172 = arith.constant 20 : index
    %306 = memref.load %arg1[%305, %c20_172] : memref<16x27xf32, #tpu.memory_space<smem>>
    %c3_i32_173 = arith.constant 3 : i32
    %307 = arith.addi %0, %c3_i32_173 : i32
    %308 = arith.index_cast %307 : i32 to index
    %c21_174 = arith.constant 21 : index
    %309 = memref.load %arg1[%308, %c21_174] : memref<16x27xf32, #tpu.memory_space<smem>>
    %c3_i32_175 = arith.constant 3 : i32
    %310 = arith.addi %0, %c3_i32_175 : i32
    %311 = arith.index_cast %310 : i32 to index
    %c22_176 = arith.constant 22 : index
    %312 = memref.load %arg1[%311, %c22_176] : memref<16x27xf32, #tpu.memory_space<smem>>
    %c3_i32_177 = arith.constant 3 : i32
    %313 = arith.addi %0, %c3_i32_177 : i32
    %314 = arith.index_cast %313 : i32 to index
    %c23_178 = arith.constant 23 : index
    %315 = memref.load %arg1[%314, %c23_178] : memref<16x27xf32, #tpu.memory_space<smem>>
    %c3_i32_179 = arith.constant 3 : i32
    %316 = arith.addi %0, %c3_i32_179 : i32
    %317 = arith.index_cast %316 : i32 to index
    %c24_180 = arith.constant 24 : index
    %318 = memref.load %arg1[%317, %c24_180] : memref<16x27xf32, #tpu.memory_space<smem>>
    %c3_i32_181 = arith.constant 3 : i32
    %319 = arith.addi %0, %c3_i32_181 : i32
    %320 = arith.index_cast %319 : i32 to index
    %c25_182 = arith.constant 25 : index
    %321 = memref.load %arg1[%320, %c25_182] : memref<16x27xf32, #tpu.memory_space<smem>>
    %c3_i32_183 = arith.constant 3 : i32
    %322 = arith.addi %0, %c3_i32_183 : i32
    %323 = arith.index_cast %322 : i32 to index
    %c26_184 = arith.constant 26 : index
    %324 = memref.load %arg1[%323, %c26_184] : memref<16x27xf32, #tpu.memory_space<smem>>
    %c0_i32_185 = arith.constant 0 : i32
    %c0_i32_186 = arith.constant 0 : i32
    %c1_i32_187 = arith.constant 1 : i32
    %c0_i32_188 = arith.constant 0 : i32
    %c2_i32_189 = arith.constant 2 : i32
    %c0_i32_190 = arith.constant 0 : i32
    %c0_i32_191 = arith.constant 0 : i32
    %c1_i32_192 = arith.constant 1 : i32
    %c1_i32_193 = arith.constant 1 : i32
    %c1_i32_194 = arith.constant 1 : i32
    %c2_i32_195 = arith.constant 2 : i32
    %c1_i32_196 = arith.constant 1 : i32
    %c0_i32_197 = arith.constant 0 : i32
    %c2_i32_198 = arith.constant 2 : i32
    %c1_i32_199 = arith.constant 1 : i32
    %c2_i32_200 = arith.constant 2 : i32
    %c2_i32_201 = arith.constant 2 : i32
    %c2_i32_202 = arith.constant 2 : i32
    %c0_i32_203 = arith.constant 0 : i32
    %c3_i32_204 = arith.constant 3 : i32
    %325 = arith.addi %c0_i32_203, %c3_i32_204 : i32
    %c1_i32_205 = arith.constant 1 : i32
    scf.for %arg7 = %c0_i32_203 to %325 step %c1_i32_205  : i32 {
      %c8_i32 = arith.constant 8 : i32
      %537 = arith.muli %arg7, %c8_i32 : i32
      %538 = tpu.assume_multiple %537, 8 : i32
      %cst_284 = arith.constant 0.000000e+00 : f32
      %539 = vector.broadcast %cst_284 : f32 to vector<8x128xf32>
      %cst_285 = arith.constant 0.000000e+00 : f32
      %540 = vector.broadcast %cst_285 : f32 to vector<8x128xf32>
      %cst_286 = arith.constant 0.000000e+00 : f32
      %541 = vector.broadcast %cst_286 : f32 to vector<8x128xf32>
      %cst_287 = arith.constant 0.000000e+00 : f32
      %542 = vector.broadcast %cst_287 : f32 to vector<8x128xf32>
      %c0_i32_288 = arith.constant 0 : i32
      %543 = arith.addi %538, %c0_i32_288 : i32
      %c0_i32_289 = arith.constant 0 : i32
      %c0_i32_290 = arith.constant 0 : i32
      %544 = tpu.memref_slice %arg4[%c0_i32_185, %c0_i32_186, %c0_i32_289, %c0_i32_290] : memref<3x3x26x128xf32, #tpu.memory_space<vmem>> -> memref<1x1x26x128xf32, #tpu.memory_space<vmem>>
      %545 = tpu.memref_squeeze %544 : memref<1x1x26x128xf32, #tpu.memory_space<vmem>> -> memref<26x128xf32, #tpu.memory_space<vmem>>
      %546 = arith.index_cast %543 : i32 to index
      %c0_291 = arith.constant 0 : index
      %547 = vector.load %545[%546, %c0_291] : memref<26x128xf32, #tpu.memory_space<vmem>>, vector<8x128xf32>
      %548 = vector.broadcast %3 : f32 to vector<8x128xf32>
      %549 = arith.mulf %548, %547 : vector<8x128xf32>
      %550 = arith.addf %539, %549 : vector<8x128xf32>
      %551 = vector.broadcast %84 : f32 to vector<8x128xf32>
      %552 = arith.mulf %551, %547 : vector<8x128xf32>
      %553 = arith.addf %540, %552 : vector<8x128xf32>
      %554 = vector.broadcast %165 : f32 to vector<8x128xf32>
      %555 = arith.mulf %554, %547 : vector<8x128xf32>
      %556 = arith.addf %541, %555 : vector<8x128xf32>
      %557 = vector.broadcast %246 : f32 to vector<8x128xf32>
      %558 = arith.mulf %557, %547 : vector<8x128xf32>
      %559 = arith.addf %542, %558 : vector<8x128xf32>
      %c0_i32_292 = arith.constant 0 : i32
      %560 = arith.addi %538, %c0_i32_292 : i32
      %c0_i32_293 = arith.constant 0 : i32
      %c0_i32_294 = arith.constant 0 : i32
      %561 = tpu.memref_slice %arg4[%c1_i32_187, %c0_i32_188, %c0_i32_293, %c0_i32_294] : memref<3x3x26x128xf32, #tpu.memory_space<vmem>> -> memref<1x1x26x128xf32, #tpu.memory_space<vmem>>
      %562 = tpu.memref_squeeze %561 : memref<1x1x26x128xf32, #tpu.memory_space<vmem>> -> memref<26x128xf32, #tpu.memory_space<vmem>>
      %563 = arith.index_cast %560 : i32 to index
      %c0_295 = arith.constant 0 : index
      %564 = vector.load %562[%563, %c0_295] : memref<26x128xf32, #tpu.memory_space<vmem>>, vector<8x128xf32>
      %565 = vector.broadcast %6 : f32 to vector<8x128xf32>
      %566 = arith.mulf %565, %564 : vector<8x128xf32>
      %567 = arith.addf %550, %566 : vector<8x128xf32>
      %568 = vector.broadcast %87 : f32 to vector<8x128xf32>
      %569 = arith.mulf %568, %564 : vector<8x128xf32>
      %570 = arith.addf %553, %569 : vector<8x128xf32>
      %571 = vector.broadcast %168 : f32 to vector<8x128xf32>
      %572 = arith.mulf %571, %564 : vector<8x128xf32>
      %573 = arith.addf %556, %572 : vector<8x128xf32>
      %574 = vector.broadcast %249 : f32 to vector<8x128xf32>
      %575 = arith.mulf %574, %564 : vector<8x128xf32>
      %576 = arith.addf %559, %575 : vector<8x128xf32>
      %c0_i32_296 = arith.constant 0 : i32
      %577 = arith.addi %538, %c0_i32_296 : i32
      %c0_i32_297 = arith.constant 0 : i32
      %c0_i32_298 = arith.constant 0 : i32
      %578 = tpu.memref_slice %arg4[%c2_i32_189, %c0_i32_190, %c0_i32_297, %c0_i32_298] : memref<3x3x26x128xf32, #tpu.memory_space<vmem>> -> memref<1x1x26x128xf32, #tpu.memory_space<vmem>>
      %579 = tpu.memref_squeeze %578 : memref<1x1x26x128xf32, #tpu.memory_space<vmem>> -> memref<26x128xf32, #tpu.memory_space<vmem>>
      %580 = arith.index_cast %577 : i32 to index
      %c0_299 = arith.constant 0 : index
      %581 = vector.load %579[%580, %c0_299] : memref<26x128xf32, #tpu.memory_space<vmem>>, vector<8x128xf32>
      %582 = vector.broadcast %9 : f32 to vector<8x128xf32>
      %583 = arith.mulf %582, %581 : vector<8x128xf32>
      %584 = arith.addf %567, %583 : vector<8x128xf32>
      %585 = vector.broadcast %90 : f32 to vector<8x128xf32>
      %586 = arith.mulf %585, %581 : vector<8x128xf32>
      %587 = arith.addf %570, %586 : vector<8x128xf32>
      %588 = vector.broadcast %171 : f32 to vector<8x128xf32>
      %589 = arith.mulf %588, %581 : vector<8x128xf32>
      %590 = arith.addf %573, %589 : vector<8x128xf32>
      %591 = vector.broadcast %252 : f32 to vector<8x128xf32>
      %592 = arith.mulf %591, %581 : vector<8x128xf32>
      %593 = arith.addf %576, %592 : vector<8x128xf32>
      %c1_i32_300 = arith.constant 1 : i32
      %594 = arith.addi %538, %c1_i32_300 : i32
      %c0_i32_301 = arith.constant 0 : i32
      %c0_i32_302 = arith.constant 0 : i32
      %595 = tpu.memref_slice %arg4[%c0_i32_185, %c0_i32_186, %c0_i32_301, %c0_i32_302] : memref<3x3x26x128xf32, #tpu.memory_space<vmem>> -> memref<1x1x26x128xf32, #tpu.memory_space<vmem>>
      %596 = tpu.memref_squeeze %595 : memref<1x1x26x128xf32, #tpu.memory_space<vmem>> -> memref<26x128xf32, #tpu.memory_space<vmem>>
      %597 = arith.index_cast %594 : i32 to index
      %c0_303 = arith.constant 0 : index
      %598 = vector.load %596[%597, %c0_303] : memref<26x128xf32, #tpu.memory_space<vmem>>, vector<8x128xf32>
      %599 = vector.broadcast %12 : f32 to vector<8x128xf32>
      %600 = arith.mulf %599, %598 : vector<8x128xf32>
      %601 = arith.addf %584, %600 : vector<8x128xf32>
      %602 = vector.broadcast %93 : f32 to vector<8x128xf32>
      %603 = arith.mulf %602, %598 : vector<8x128xf32>
      %604 = arith.addf %587, %603 : vector<8x128xf32>
      %605 = vector.broadcast %174 : f32 to vector<8x128xf32>
      %606 = arith.mulf %605, %598 : vector<8x128xf32>
      %607 = arith.addf %590, %606 : vector<8x128xf32>
      %608 = vector.broadcast %255 : f32 to vector<8x128xf32>
      %609 = arith.mulf %608, %598 : vector<8x128xf32>
      %610 = arith.addf %593, %609 : vector<8x128xf32>
      %c1_i32_304 = arith.constant 1 : i32
      %611 = arith.addi %538, %c1_i32_304 : i32
      %c0_i32_305 = arith.constant 0 : i32
      %c0_i32_306 = arith.constant 0 : i32
      %612 = tpu.memref_slice %arg4[%c1_i32_187, %c0_i32_188, %c0_i32_305, %c0_i32_306] : memref<3x3x26x128xf32, #tpu.memory_space<vmem>> -> memref<1x1x26x128xf32, #tpu.memory_space<vmem>>
      %613 = tpu.memref_squeeze %612 : memref<1x1x26x128xf32, #tpu.memory_space<vmem>> -> memref<26x128xf32, #tpu.memory_space<vmem>>
      %614 = arith.index_cast %611 : i32 to index
      %c0_307 = arith.constant 0 : index
      %615 = vector.load %613[%614, %c0_307] : memref<26x128xf32, #tpu.memory_space<vmem>>, vector<8x128xf32>
      %616 = vector.broadcast %15 : f32 to vector<8x128xf32>
      %617 = arith.mulf %616, %615 : vector<8x128xf32>
      %618 = arith.addf %601, %617 : vector<8x128xf32>
      %619 = vector.broadcast %96 : f32 to vector<8x128xf32>
      %620 = arith.mulf %619, %615 : vector<8x128xf32>
      %621 = arith.addf %604, %620 : vector<8x128xf32>
      %622 = vector.broadcast %177 : f32 to vector<8x128xf32>
      %623 = arith.mulf %622, %615 : vector<8x128xf32>
      %624 = arith.addf %607, %623 : vector<8x128xf32>
      %625 = vector.broadcast %258 : f32 to vector<8x128xf32>
      %626 = arith.mulf %625, %615 : vector<8x128xf32>
      %627 = arith.addf %610, %626 : vector<8x128xf32>
      %c1_i32_308 = arith.constant 1 : i32
      %628 = arith.addi %538, %c1_i32_308 : i32
      %c0_i32_309 = arith.constant 0 : i32
      %c0_i32_310 = arith.constant 0 : i32
      %629 = tpu.memref_slice %arg4[%c2_i32_189, %c0_i32_190, %c0_i32_309, %c0_i32_310] : memref<3x3x26x128xf32, #tpu.memory_space<vmem>> -> memref<1x1x26x128xf32, #tpu.memory_space<vmem>>
      %630 = tpu.memref_squeeze %629 : memref<1x1x26x128xf32, #tpu.memory_space<vmem>> -> memref<26x128xf32, #tpu.memory_space<vmem>>
      %631 = arith.index_cast %628 : i32 to index
      %c0_311 = arith.constant 0 : index
      %632 = vector.load %630[%631, %c0_311] : memref<26x128xf32, #tpu.memory_space<vmem>>, vector<8x128xf32>
      %633 = vector.broadcast %18 : f32 to vector<8x128xf32>
      %634 = arith.mulf %633, %632 : vector<8x128xf32>
      %635 = arith.addf %618, %634 : vector<8x128xf32>
      %636 = vector.broadcast %99 : f32 to vector<8x128xf32>
      %637 = arith.mulf %636, %632 : vector<8x128xf32>
      %638 = arith.addf %621, %637 : vector<8x128xf32>
      %639 = vector.broadcast %180 : f32 to vector<8x128xf32>
      %640 = arith.mulf %639, %632 : vector<8x128xf32>
      %641 = arith.addf %624, %640 : vector<8x128xf32>
      %642 = vector.broadcast %261 : f32 to vector<8x128xf32>
      %643 = arith.mulf %642, %632 : vector<8x128xf32>
      %644 = arith.addf %627, %643 : vector<8x128xf32>
      %c2_i32_312 = arith.constant 2 : i32
      %645 = arith.addi %538, %c2_i32_312 : i32
      %c0_i32_313 = arith.constant 0 : i32
      %c0_i32_314 = arith.constant 0 : i32
      %646 = tpu.memref_slice %arg4[%c0_i32_185, %c0_i32_186, %c0_i32_313, %c0_i32_314] : memref<3x3x26x128xf32, #tpu.memory_space<vmem>> -> memref<1x1x26x128xf32, #tpu.memory_space<vmem>>
      %647 = tpu.memref_squeeze %646 : memref<1x1x26x128xf32, #tpu.memory_space<vmem>> -> memref<26x128xf32, #tpu.memory_space<vmem>>
      %648 = arith.index_cast %645 : i32 to index
      %c0_315 = arith.constant 0 : index
      %649 = vector.load %647[%648, %c0_315] : memref<26x128xf32, #tpu.memory_space<vmem>>, vector<8x128xf32>
      %650 = vector.broadcast %21 : f32 to vector<8x128xf32>
      %651 = arith.mulf %650, %649 : vector<8x128xf32>
      %652 = arith.addf %635, %651 : vector<8x128xf32>
      %653 = vector.broadcast %102 : f32 to vector<8x128xf32>
      %654 = arith.mulf %653, %649 : vector<8x128xf32>
      %655 = arith.addf %638, %654 : vector<8x128xf32>
      %656 = vector.broadcast %183 : f32 to vector<8x128xf32>
      %657 = arith.mulf %656, %649 : vector<8x128xf32>
      %658 = arith.addf %641, %657 : vector<8x128xf32>
      %659 = vector.broadcast %264 : f32 to vector<8x128xf32>
      %660 = arith.mulf %659, %649 : vector<8x128xf32>
      %661 = arith.addf %644, %660 : vector<8x128xf32>
      %c2_i32_316 = arith.constant 2 : i32
      %662 = arith.addi %538, %c2_i32_316 : i32
      %c0_i32_317 = arith.constant 0 : i32
      %c0_i32_318 = arith.constant 0 : i32
      %663 = tpu.memref_slice %arg4[%c1_i32_187, %c0_i32_188, %c0_i32_317, %c0_i32_318] : memref<3x3x26x128xf32, #tpu.memory_space<vmem>> -> memref<1x1x26x128xf32, #tpu.memory_space<vmem>>
      %664 = tpu.memref_squeeze %663 : memref<1x1x26x128xf32, #tpu.memory_space<vmem>> -> memref<26x128xf32, #tpu.memory_space<vmem>>
      %665 = arith.index_cast %662 : i32 to index
      %c0_319 = arith.constant 0 : index
      %666 = vector.load %664[%665, %c0_319] : memref<26x128xf32, #tpu.memory_space<vmem>>, vector<8x128xf32>
      %667 = vector.broadcast %24 : f32 to vector<8x128xf32>
      %668 = arith.mulf %667, %666 : vector<8x128xf32>
      %669 = arith.addf %652, %668 : vector<8x128xf32>
      %670 = vector.broadcast %105 : f32 to vector<8x128xf32>
      %671 = arith.mulf %670, %666 : vector<8x128xf32>
      %672 = arith.addf %655, %671 : vector<8x128xf32>
      %673 = vector.broadcast %186 : f32 to vector<8x128xf32>
      %674 = arith.mulf %673, %666 : vector<8x128xf32>
      %675 = arith.addf %658, %674 : vector<8x128xf32>
      %676 = vector.broadcast %267 : f32 to vector<8x128xf32>
      %677 = arith.mulf %676, %666 : vector<8x128xf32>
      %678 = arith.addf %661, %677 : vector<8x128xf32>
      %c2_i32_320 = arith.constant 2 : i32
      %679 = arith.addi %538, %c2_i32_320 : i32
      %c0_i32_321 = arith.constant 0 : i32
      %c0_i32_322 = arith.constant 0 : i32
      %680 = tpu.memref_slice %arg4[%c2_i32_189, %c0_i32_190, %c0_i32_321, %c0_i32_322] : memref<3x3x26x128xf32, #tpu.memory_space<vmem>> -> memref<1x1x26x128xf32, #tpu.memory_space<vmem>>
      %681 = tpu.memref_squeeze %680 : memref<1x1x26x128xf32, #tpu.memory_space<vmem>> -> memref<26x128xf32, #tpu.memory_space<vmem>>
      %682 = arith.index_cast %679 : i32 to index
      %c0_323 = arith.constant 0 : index
      %683 = vector.load %681[%682, %c0_323] : memref<26x128xf32, #tpu.memory_space<vmem>>, vector<8x128xf32>
      %684 = vector.broadcast %27 : f32 to vector<8x128xf32>
      %685 = arith.mulf %684, %683 : vector<8x128xf32>
      %686 = arith.addf %669, %685 : vector<8x128xf32>
      %687 = vector.broadcast %108 : f32 to vector<8x128xf32>
      %688 = arith.mulf %687, %683 : vector<8x128xf32>
      %689 = arith.addf %672, %688 : vector<8x128xf32>
      %690 = vector.broadcast %189 : f32 to vector<8x128xf32>
      %691 = arith.mulf %690, %683 : vector<8x128xf32>
      %692 = arith.addf %675, %691 : vector<8x128xf32>
      %693 = vector.broadcast %270 : f32 to vector<8x128xf32>
      %694 = arith.mulf %693, %683 : vector<8x128xf32>
      %695 = arith.addf %678, %694 : vector<8x128xf32>
      %c0_i32_324 = arith.constant 0 : i32
      %696 = arith.addi %538, %c0_i32_324 : i32
      %c0_i32_325 = arith.constant 0 : i32
      %c0_i32_326 = arith.constant 0 : i32
      %697 = tpu.memref_slice %arg4[%c0_i32_191, %c1_i32_192, %c0_i32_325, %c0_i32_326] : memref<3x3x26x128xf32, #tpu.memory_space<vmem>> -> memref<1x1x26x128xf32, #tpu.memory_space<vmem>>
      %698 = tpu.memref_squeeze %697 : memref<1x1x26x128xf32, #tpu.memory_space<vmem>> -> memref<26x128xf32, #tpu.memory_space<vmem>>
      %699 = arith.index_cast %696 : i32 to index
      %c0_327 = arith.constant 0 : index
      %700 = vector.load %698[%699, %c0_327] : memref<26x128xf32, #tpu.memory_space<vmem>>, vector<8x128xf32>
      %701 = vector.broadcast %30 : f32 to vector<8x128xf32>
      %702 = arith.mulf %701, %700 : vector<8x128xf32>
      %703 = arith.addf %686, %702 : vector<8x128xf32>
      %704 = vector.broadcast %111 : f32 to vector<8x128xf32>
      %705 = arith.mulf %704, %700 : vector<8x128xf32>
      %706 = arith.addf %689, %705 : vector<8x128xf32>
      %707 = vector.broadcast %192 : f32 to vector<8x128xf32>
      %708 = arith.mulf %707, %700 : vector<8x128xf32>
      %709 = arith.addf %692, %708 : vector<8x128xf32>
      %710 = vector.broadcast %273 : f32 to vector<8x128xf32>
      %711 = arith.mulf %710, %700 : vector<8x128xf32>
      %712 = arith.addf %695, %711 : vector<8x128xf32>
      %c0_i32_328 = arith.constant 0 : i32
      %713 = arith.addi %538, %c0_i32_328 : i32
      %c0_i32_329 = arith.constant 0 : i32
      %c0_i32_330 = arith.constant 0 : i32
      %714 = tpu.memref_slice %arg4[%c1_i32_193, %c1_i32_194, %c0_i32_329, %c0_i32_330] : memref<3x3x26x128xf32, #tpu.memory_space<vmem>> -> memref<1x1x26x128xf32, #tpu.memory_space<vmem>>
      %715 = tpu.memref_squeeze %714 : memref<1x1x26x128xf32, #tpu.memory_space<vmem>> -> memref<26x128xf32, #tpu.memory_space<vmem>>
      %716 = arith.index_cast %713 : i32 to index
      %c0_331 = arith.constant 0 : index
      %717 = vector.load %715[%716, %c0_331] : memref<26x128xf32, #tpu.memory_space<vmem>>, vector<8x128xf32>
      %718 = vector.broadcast %33 : f32 to vector<8x128xf32>
      %719 = arith.mulf %718, %717 : vector<8x128xf32>
      %720 = arith.addf %703, %719 : vector<8x128xf32>
      %721 = vector.broadcast %114 : f32 to vector<8x128xf32>
      %722 = arith.mulf %721, %717 : vector<8x128xf32>
      %723 = arith.addf %706, %722 : vector<8x128xf32>
      %724 = vector.broadcast %195 : f32 to vector<8x128xf32>
      %725 = arith.mulf %724, %717 : vector<8x128xf32>
      %726 = arith.addf %709, %725 : vector<8x128xf32>
      %727 = vector.broadcast %276 : f32 to vector<8x128xf32>
      %728 = arith.mulf %727, %717 : vector<8x128xf32>
      %729 = arith.addf %712, %728 : vector<8x128xf32>
      %c0_i32_332 = arith.constant 0 : i32
      %730 = arith.addi %538, %c0_i32_332 : i32
      %c0_i32_333 = arith.constant 0 : i32
      %c0_i32_334 = arith.constant 0 : i32
      %731 = tpu.memref_slice %arg4[%c2_i32_195, %c1_i32_196, %c0_i32_333, %c0_i32_334] : memref<3x3x26x128xf32, #tpu.memory_space<vmem>> -> memref<1x1x26x128xf32, #tpu.memory_space<vmem>>
      %732 = tpu.memref_squeeze %731 : memref<1x1x26x128xf32, #tpu.memory_space<vmem>> -> memref<26x128xf32, #tpu.memory_space<vmem>>
      %733 = arith.index_cast %730 : i32 to index
      %c0_335 = arith.constant 0 : index
      %734 = vector.load %732[%733, %c0_335] : memref<26x128xf32, #tpu.memory_space<vmem>>, vector<8x128xf32>
      %735 = vector.broadcast %36 : f32 to vector<8x128xf32>
      %736 = arith.mulf %735, %734 : vector<8x128xf32>
      %737 = arith.addf %720, %736 : vector<8x128xf32>
      %738 = vector.broadcast %117 : f32 to vector<8x128xf32>
      %739 = arith.mulf %738, %734 : vector<8x128xf32>
      %740 = arith.addf %723, %739 : vector<8x128xf32>
      %741 = vector.broadcast %198 : f32 to vector<8x128xf32>
      %742 = arith.mulf %741, %734 : vector<8x128xf32>
      %743 = arith.addf %726, %742 : vector<8x128xf32>
      %744 = vector.broadcast %279 : f32 to vector<8x128xf32>
      %745 = arith.mulf %744, %734 : vector<8x128xf32>
      %746 = arith.addf %729, %745 : vector<8x128xf32>
      %c1_i32_336 = arith.constant 1 : i32
      %747 = arith.addi %538, %c1_i32_336 : i32
      %c0_i32_337 = arith.constant 0 : i32
      %c0_i32_338 = arith.constant 0 : i32
      %748 = tpu.memref_slice %arg4[%c0_i32_191, %c1_i32_192, %c0_i32_337, %c0_i32_338] : memref<3x3x26x128xf32, #tpu.memory_space<vmem>> -> memref<1x1x26x128xf32, #tpu.memory_space<vmem>>
      %749 = tpu.memref_squeeze %748 : memref<1x1x26x128xf32, #tpu.memory_space<vmem>> -> memref<26x128xf32, #tpu.memory_space<vmem>>
      %750 = arith.index_cast %747 : i32 to index
      %c0_339 = arith.constant 0 : index
      %751 = vector.load %749[%750, %c0_339] : memref<26x128xf32, #tpu.memory_space<vmem>>, vector<8x128xf32>
      %752 = vector.broadcast %39 : f32 to vector<8x128xf32>
      %753 = arith.mulf %752, %751 : vector<8x128xf32>
      %754 = arith.addf %737, %753 : vector<8x128xf32>
      %755 = vector.broadcast %120 : f32 to vector<8x128xf32>
      %756 = arith.mulf %755, %751 : vector<8x128xf32>
      %757 = arith.addf %740, %756 : vector<8x128xf32>
      %758 = vector.broadcast %201 : f32 to vector<8x128xf32>
      %759 = arith.mulf %758, %751 : vector<8x128xf32>
      %760 = arith.addf %743, %759 : vector<8x128xf32>
      %761 = vector.broadcast %282 : f32 to vector<8x128xf32>
      %762 = arith.mulf %761, %751 : vector<8x128xf32>
      %763 = arith.addf %746, %762 : vector<8x128xf32>
      %c1_i32_340 = arith.constant 1 : i32
      %764 = arith.addi %538, %c1_i32_340 : i32
      %c0_i32_341 = arith.constant 0 : i32
      %c0_i32_342 = arith.constant 0 : i32
      %765 = tpu.memref_slice %arg4[%c1_i32_193, %c1_i32_194, %c0_i32_341, %c0_i32_342] : memref<3x3x26x128xf32, #tpu.memory_space<vmem>> -> memref<1x1x26x128xf32, #tpu.memory_space<vmem>>
      %766 = tpu.memref_squeeze %765 : memref<1x1x26x128xf32, #tpu.memory_space<vmem>> -> memref<26x128xf32, #tpu.memory_space<vmem>>
      %767 = arith.index_cast %764 : i32 to index
      %c0_343 = arith.constant 0 : index
      %768 = vector.load %766[%767, %c0_343] : memref<26x128xf32, #tpu.memory_space<vmem>>, vector<8x128xf32>
      %769 = vector.broadcast %42 : f32 to vector<8x128xf32>
      %770 = arith.mulf %769, %768 : vector<8x128xf32>
      %771 = arith.addf %754, %770 : vector<8x128xf32>
      %772 = vector.broadcast %123 : f32 to vector<8x128xf32>
      %773 = arith.mulf %772, %768 : vector<8x128xf32>
      %774 = arith.addf %757, %773 : vector<8x128xf32>
      %775 = vector.broadcast %204 : f32 to vector<8x128xf32>
      %776 = arith.mulf %775, %768 : vector<8x128xf32>
      %777 = arith.addf %760, %776 : vector<8x128xf32>
      %778 = vector.broadcast %285 : f32 to vector<8x128xf32>
      %779 = arith.mulf %778, %768 : vector<8x128xf32>
      %780 = arith.addf %763, %779 : vector<8x128xf32>
      %c1_i32_344 = arith.constant 1 : i32
      %781 = arith.addi %538, %c1_i32_344 : i32
      %c0_i32_345 = arith.constant 0 : i32
      %c0_i32_346 = arith.constant 0 : i32
      %782 = tpu.memref_slice %arg4[%c2_i32_195, %c1_i32_196, %c0_i32_345, %c0_i32_346] : memref<3x3x26x128xf32, #tpu.memory_space<vmem>> -> memref<1x1x26x128xf32, #tpu.memory_space<vmem>>
      %783 = tpu.memref_squeeze %782 : memref<1x1x26x128xf32, #tpu.memory_space<vmem>> -> memref<26x128xf32, #tpu.memory_space<vmem>>
      %784 = arith.index_cast %781 : i32 to index
      %c0_347 = arith.constant 0 : index
      %785 = vector.load %783[%784, %c0_347] : memref<26x128xf32, #tpu.memory_space<vmem>>, vector<8x128xf32>
      %786 = vector.broadcast %45 : f32 to vector<8x128xf32>
      %787 = arith.mulf %786, %785 : vector<8x128xf32>
      %788 = arith.addf %771, %787 : vector<8x128xf32>
      %789 = vector.broadcast %126 : f32 to vector<8x128xf32>
      %790 = arith.mulf %789, %785 : vector<8x128xf32>
      %791 = arith.addf %774, %790 : vector<8x128xf32>
      %792 = vector.broadcast %207 : f32 to vector<8x128xf32>
      %793 = arith.mulf %792, %785 : vector<8x128xf32>
      %794 = arith.addf %777, %793 : vector<8x128xf32>
      %795 = vector.broadcast %288 : f32 to vector<8x128xf32>
      %796 = arith.mulf %795, %785 : vector<8x128xf32>
      %797 = arith.addf %780, %796 : vector<8x128xf32>
      %c2_i32_348 = arith.constant 2 : i32
      %798 = arith.addi %538, %c2_i32_348 : i32
      %c0_i32_349 = arith.constant 0 : i32
      %c0_i32_350 = arith.constant 0 : i32
      %799 = tpu.memref_slice %arg4[%c0_i32_191, %c1_i32_192, %c0_i32_349, %c0_i32_350] : memref<3x3x26x128xf32, #tpu.memory_space<vmem>> -> memref<1x1x26x128xf32, #tpu.memory_space<vmem>>
      %800 = tpu.memref_squeeze %799 : memref<1x1x26x128xf32, #tpu.memory_space<vmem>> -> memref<26x128xf32, #tpu.memory_space<vmem>>
      %801 = arith.index_cast %798 : i32 to index
      %c0_351 = arith.constant 0 : index
      %802 = vector.load %800[%801, %c0_351] : memref<26x128xf32, #tpu.memory_space<vmem>>, vector<8x128xf32>
      %803 = vector.broadcast %48 : f32 to vector<8x128xf32>
      %804 = arith.mulf %803, %802 : vector<8x128xf32>
      %805 = arith.addf %788, %804 : vector<8x128xf32>
      %806 = vector.broadcast %129 : f32 to vector<8x128xf32>
      %807 = arith.mulf %806, %802 : vector<8x128xf32>
      %808 = arith.addf %791, %807 : vector<8x128xf32>
      %809 = vector.broadcast %210 : f32 to vector<8x128xf32>
      %810 = arith.mulf %809, %802 : vector<8x128xf32>
      %811 = arith.addf %794, %810 : vector<8x128xf32>
      %812 = vector.broadcast %291 : f32 to vector<8x128xf32>
      %813 = arith.mulf %812, %802 : vector<8x128xf32>
      %814 = arith.addf %797, %813 : vector<8x128xf32>
      %c2_i32_352 = arith.constant 2 : i32
      %815 = arith.addi %538, %c2_i32_352 : i32
      %c0_i32_353 = arith.constant 0 : i32
      %c0_i32_354 = arith.constant 0 : i32
      %816 = tpu.memref_slice %arg4[%c1_i32_193, %c1_i32_194, %c0_i32_353, %c0_i32_354] : memref<3x3x26x128xf32, #tpu.memory_space<vmem>> -> memref<1x1x26x128xf32, #tpu.memory_space<vmem>>
      %817 = tpu.memref_squeeze %816 : memref<1x1x26x128xf32, #tpu.memory_space<vmem>> -> memref<26x128xf32, #tpu.memory_space<vmem>>
      %818 = arith.index_cast %815 : i32 to index
      %c0_355 = arith.constant 0 : index
      %819 = vector.load %817[%818, %c0_355] : memref<26x128xf32, #tpu.memory_space<vmem>>, vector<8x128xf32>
      %820 = vector.broadcast %51 : f32 to vector<8x128xf32>
      %821 = arith.mulf %820, %819 : vector<8x128xf32>
      %822 = arith.addf %805, %821 : vector<8x128xf32>
      %823 = vector.broadcast %132 : f32 to vector<8x128xf32>
      %824 = arith.mulf %823, %819 : vector<8x128xf32>
      %825 = arith.addf %808, %824 : vector<8x128xf32>
      %826 = vector.broadcast %213 : f32 to vector<8x128xf32>
      %827 = arith.mulf %826, %819 : vector<8x128xf32>
      %828 = arith.addf %811, %827 : vector<8x128xf32>
      %829 = vector.broadcast %294 : f32 to vector<8x128xf32>
      %830 = arith.mulf %829, %819 : vector<8x128xf32>
      %831 = arith.addf %814, %830 : vector<8x128xf32>
      %c2_i32_356 = arith.constant 2 : i32
      %832 = arith.addi %538, %c2_i32_356 : i32
      %c0_i32_357 = arith.constant 0 : i32
      %c0_i32_358 = arith.constant 0 : i32
      %833 = tpu.memref_slice %arg4[%c2_i32_195, %c1_i32_196, %c0_i32_357, %c0_i32_358] : memref<3x3x26x128xf32, #tpu.memory_space<vmem>> -> memref<1x1x26x128xf32, #tpu.memory_space<vmem>>
      %834 = tpu.memref_squeeze %833 : memref<1x1x26x128xf32, #tpu.memory_space<vmem>> -> memref<26x128xf32, #tpu.memory_space<vmem>>
      %835 = arith.index_cast %832 : i32 to index
      %c0_359 = arith.constant 0 : index
      %836 = vector.load %834[%835, %c0_359] : memref<26x128xf32, #tpu.memory_space<vmem>>, vector<8x128xf32>
      %837 = vector.broadcast %54 : f32 to vector<8x128xf32>
      %838 = arith.mulf %837, %836 : vector<8x128xf32>
      %839 = arith.addf %822, %838 : vector<8x128xf32>
      %840 = vector.broadcast %135 : f32 to vector<8x128xf32>
      %841 = arith.mulf %840, %836 : vector<8x128xf32>
      %842 = arith.addf %825, %841 : vector<8x128xf32>
      %843 = vector.broadcast %216 : f32 to vector<8x128xf32>
      %844 = arith.mulf %843, %836 : vector<8x128xf32>
      %845 = arith.addf %828, %844 : vector<8x128xf32>
      %846 = vector.broadcast %297 : f32 to vector<8x128xf32>
      %847 = arith.mulf %846, %836 : vector<8x128xf32>
      %848 = arith.addf %831, %847 : vector<8x128xf32>
      %c0_i32_360 = arith.constant 0 : i32
      %849 = arith.addi %538, %c0_i32_360 : i32
      %c0_i32_361 = arith.constant 0 : i32
      %c0_i32_362 = arith.constant 0 : i32
      %850 = tpu.memref_slice %arg4[%c0_i32_197, %c2_i32_198, %c0_i32_361, %c0_i32_362] : memref<3x3x26x128xf32, #tpu.memory_space<vmem>> -> memref<1x1x26x128xf32, #tpu.memory_space<vmem>>
      %851 = tpu.memref_squeeze %850 : memref<1x1x26x128xf32, #tpu.memory_space<vmem>> -> memref<26x128xf32, #tpu.memory_space<vmem>>
      %852 = arith.index_cast %849 : i32 to index
      %c0_363 = arith.constant 0 : index
      %853 = vector.load %851[%852, %c0_363] : memref<26x128xf32, #tpu.memory_space<vmem>>, vector<8x128xf32>
      %854 = vector.broadcast %57 : f32 to vector<8x128xf32>
      %855 = arith.mulf %854, %853 : vector<8x128xf32>
      %856 = arith.addf %839, %855 : vector<8x128xf32>
      %857 = vector.broadcast %138 : f32 to vector<8x128xf32>
      %858 = arith.mulf %857, %853 : vector<8x128xf32>
      %859 = arith.addf %842, %858 : vector<8x128xf32>
      %860 = vector.broadcast %219 : f32 to vector<8x128xf32>
      %861 = arith.mulf %860, %853 : vector<8x128xf32>
      %862 = arith.addf %845, %861 : vector<8x128xf32>
      %863 = vector.broadcast %300 : f32 to vector<8x128xf32>
      %864 = arith.mulf %863, %853 : vector<8x128xf32>
      %865 = arith.addf %848, %864 : vector<8x128xf32>
      %c0_i32_364 = arith.constant 0 : i32
      %866 = arith.addi %538, %c0_i32_364 : i32
      %c0_i32_365 = arith.constant 0 : i32
      %c0_i32_366 = arith.constant 0 : i32
      %867 = tpu.memref_slice %arg4[%c1_i32_199, %c2_i32_200, %c0_i32_365, %c0_i32_366] : memref<3x3x26x128xf32, #tpu.memory_space<vmem>> -> memref<1x1x26x128xf32, #tpu.memory_space<vmem>>
      %868 = tpu.memref_squeeze %867 : memref<1x1x26x128xf32, #tpu.memory_space<vmem>> -> memref<26x128xf32, #tpu.memory_space<vmem>>
      %869 = arith.index_cast %866 : i32 to index
      %c0_367 = arith.constant 0 : index
      %870 = vector.load %868[%869, %c0_367] : memref<26x128xf32, #tpu.memory_space<vmem>>, vector<8x128xf32>
      %871 = vector.broadcast %60 : f32 to vector<8x128xf32>
      %872 = arith.mulf %871, %870 : vector<8x128xf32>
      %873 = arith.addf %856, %872 : vector<8x128xf32>
      %874 = vector.broadcast %141 : f32 to vector<8x128xf32>
      %875 = arith.mulf %874, %870 : vector<8x128xf32>
      %876 = arith.addf %859, %875 : vector<8x128xf32>
      %877 = vector.broadcast %222 : f32 to vector<8x128xf32>
      %878 = arith.mulf %877, %870 : vector<8x128xf32>
      %879 = arith.addf %862, %878 : vector<8x128xf32>
      %880 = vector.broadcast %303 : f32 to vector<8x128xf32>
      %881 = arith.mulf %880, %870 : vector<8x128xf32>
      %882 = arith.addf %865, %881 : vector<8x128xf32>
      %c0_i32_368 = arith.constant 0 : i32
      %883 = arith.addi %538, %c0_i32_368 : i32
      %c0_i32_369 = arith.constant 0 : i32
      %c0_i32_370 = arith.constant 0 : i32
      %884 = tpu.memref_slice %arg4[%c2_i32_201, %c2_i32_202, %c0_i32_369, %c0_i32_370] : memref<3x3x26x128xf32, #tpu.memory_space<vmem>> -> memref<1x1x26x128xf32, #tpu.memory_space<vmem>>
      %885 = tpu.memref_squeeze %884 : memref<1x1x26x128xf32, #tpu.memory_space<vmem>> -> memref<26x128xf32, #tpu.memory_space<vmem>>
      %886 = arith.index_cast %883 : i32 to index
      %c0_371 = arith.constant 0 : index
      %887 = vector.load %885[%886, %c0_371] : memref<26x128xf32, #tpu.memory_space<vmem>>, vector<8x128xf32>
      %888 = vector.broadcast %63 : f32 to vector<8x128xf32>
      %889 = arith.mulf %888, %887 : vector<8x128xf32>
      %890 = arith.addf %873, %889 : vector<8x128xf32>
      %891 = vector.broadcast %144 : f32 to vector<8x128xf32>
      %892 = arith.mulf %891, %887 : vector<8x128xf32>
      %893 = arith.addf %876, %892 : vector<8x128xf32>
      %894 = vector.broadcast %225 : f32 to vector<8x128xf32>
      %895 = arith.mulf %894, %887 : vector<8x128xf32>
      %896 = arith.addf %879, %895 : vector<8x128xf32>
      %897 = vector.broadcast %306 : f32 to vector<8x128xf32>
      %898 = arith.mulf %897, %887 : vector<8x128xf32>
      %899 = arith.addf %882, %898 : vector<8x128xf32>
      %c1_i32_372 = arith.constant 1 : i32
      %900 = arith.addi %538, %c1_i32_372 : i32
      %c0_i32_373 = arith.constant 0 : i32
      %c0_i32_374 = arith.constant 0 : i32
      %901 = tpu.memref_slice %arg4[%c0_i32_197, %c2_i32_198, %c0_i32_373, %c0_i32_374] : memref<3x3x26x128xf32, #tpu.memory_space<vmem>> -> memref<1x1x26x128xf32, #tpu.memory_space<vmem>>
      %902 = tpu.memref_squeeze %901 : memref<1x1x26x128xf32, #tpu.memory_space<vmem>> -> memref<26x128xf32, #tpu.memory_space<vmem>>
      %903 = arith.index_cast %900 : i32 to index
      %c0_375 = arith.constant 0 : index
      %904 = vector.load %902[%903, %c0_375] : memref<26x128xf32, #tpu.memory_space<vmem>>, vector<8x128xf32>
      %905 = vector.broadcast %66 : f32 to vector<8x128xf32>
      %906 = arith.mulf %905, %904 : vector<8x128xf32>
      %907 = arith.addf %890, %906 : vector<8x128xf32>
      %908 = vector.broadcast %147 : f32 to vector<8x128xf32>
      %909 = arith.mulf %908, %904 : vector<8x128xf32>
      %910 = arith.addf %893, %909 : vector<8x128xf32>
      %911 = vector.broadcast %228 : f32 to vector<8x128xf32>
      %912 = arith.mulf %911, %904 : vector<8x128xf32>
      %913 = arith.addf %896, %912 : vector<8x128xf32>
      %914 = vector.broadcast %309 : f32 to vector<8x128xf32>
      %915 = arith.mulf %914, %904 : vector<8x128xf32>
      %916 = arith.addf %899, %915 : vector<8x128xf32>
      %c1_i32_376 = arith.constant 1 : i32
      %917 = arith.addi %538, %c1_i32_376 : i32
      %c0_i32_377 = arith.constant 0 : i32
      %c0_i32_378 = arith.constant 0 : i32
      %918 = tpu.memref_slice %arg4[%c1_i32_199, %c2_i32_200, %c0_i32_377, %c0_i32_378] : memref<3x3x26x128xf32, #tpu.memory_space<vmem>> -> memref<1x1x26x128xf32, #tpu.memory_space<vmem>>
      %919 = tpu.memref_squeeze %918 : memref<1x1x26x128xf32, #tpu.memory_space<vmem>> -> memref<26x128xf32, #tpu.memory_space<vmem>>
      %920 = arith.index_cast %917 : i32 to index
      %c0_379 = arith.constant 0 : index
      %921 = vector.load %919[%920, %c0_379] : memref<26x128xf32, #tpu.memory_space<vmem>>, vector<8x128xf32>
      %922 = vector.broadcast %69 : f32 to vector<8x128xf32>
      %923 = arith.mulf %922, %921 : vector<8x128xf32>
      %924 = arith.addf %907, %923 : vector<8x128xf32>
      %925 = vector.broadcast %150 : f32 to vector<8x128xf32>
      %926 = arith.mulf %925, %921 : vector<8x128xf32>
      %927 = arith.addf %910, %926 : vector<8x128xf32>
      %928 = vector.broadcast %231 : f32 to vector<8x128xf32>
      %929 = arith.mulf %928, %921 : vector<8x128xf32>
      %930 = arith.addf %913, %929 : vector<8x128xf32>
      %931 = vector.broadcast %312 : f32 to vector<8x128xf32>
      %932 = arith.mulf %931, %921 : vector<8x128xf32>
      %933 = arith.addf %916, %932 : vector<8x128xf32>
      %c1_i32_380 = arith.constant 1 : i32
      %934 = arith.addi %538, %c1_i32_380 : i32
      %c0_i32_381 = arith.constant 0 : i32
      %c0_i32_382 = arith.constant 0 : i32
      %935 = tpu.memref_slice %arg4[%c2_i32_201, %c2_i32_202, %c0_i32_381, %c0_i32_382] : memref<3x3x26x128xf32, #tpu.memory_space<vmem>> -> memref<1x1x26x128xf32, #tpu.memory_space<vmem>>
      %936 = tpu.memref_squeeze %935 : memref<1x1x26x128xf32, #tpu.memory_space<vmem>> -> memref<26x128xf32, #tpu.memory_space<vmem>>
      %937 = arith.index_cast %934 : i32 to index
      %c0_383 = arith.constant 0 : index
      %938 = vector.load %936[%937, %c0_383] : memref<26x128xf32, #tpu.memory_space<vmem>>, vector<8x128xf32>
      %939 = vector.broadcast %72 : f32 to vector<8x128xf32>
      %940 = arith.mulf %939, %938 : vector<8x128xf32>
      %941 = arith.addf %924, %940 : vector<8x128xf32>
      %942 = vector.broadcast %153 : f32 to vector<8x128xf32>
      %943 = arith.mulf %942, %938 : vector<8x128xf32>
      %944 = arith.addf %927, %943 : vector<8x128xf32>
      %945 = vector.broadcast %234 : f32 to vector<8x128xf32>
      %946 = arith.mulf %945, %938 : vector<8x128xf32>
      %947 = arith.addf %930, %946 : vector<8x128xf32>
      %948 = vector.broadcast %315 : f32 to vector<8x128xf32>
      %949 = arith.mulf %948, %938 : vector<8x128xf32>
      %950 = arith.addf %933, %949 : vector<8x128xf32>
      %c2_i32_384 = arith.constant 2 : i32
      %951 = arith.addi %538, %c2_i32_384 : i32
      %c0_i32_385 = arith.constant 0 : i32
      %c0_i32_386 = arith.constant 0 : i32
      %952 = tpu.memref_slice %arg4[%c0_i32_197, %c2_i32_198, %c0_i32_385, %c0_i32_386] : memref<3x3x26x128xf32, #tpu.memory_space<vmem>> -> memref<1x1x26x128xf32, #tpu.memory_space<vmem>>
      %953 = tpu.memref_squeeze %952 : memref<1x1x26x128xf32, #tpu.memory_space<vmem>> -> memref<26x128xf32, #tpu.memory_space<vmem>>
      %954 = arith.index_cast %951 : i32 to index
      %c0_387 = arith.constant 0 : index
      %955 = vector.load %953[%954, %c0_387] : memref<26x128xf32, #tpu.memory_space<vmem>>, vector<8x128xf32>
      %956 = vector.broadcast %75 : f32 to vector<8x128xf32>
      %957 = arith.mulf %956, %955 : vector<8x128xf32>
      %958 = arith.addf %941, %957 : vector<8x128xf32>
      %959 = vector.broadcast %156 : f32 to vector<8x128xf32>
      %960 = arith.mulf %959, %955 : vector<8x128xf32>
      %961 = arith.addf %944, %960 : vector<8x128xf32>
      %962 = vector.broadcast %237 : f32 to vector<8x128xf32>
      %963 = arith.mulf %962, %955 : vector<8x128xf32>
      %964 = arith.addf %947, %963 : vector<8x128xf32>
      %965 = vector.broadcast %318 : f32 to vector<8x128xf32>
      %966 = arith.mulf %965, %955 : vector<8x128xf32>
      %967 = arith.addf %950, %966 : vector<8x128xf32>
      %c2_i32_388 = arith.constant 2 : i32
      %968 = arith.addi %538, %c2_i32_388 : i32
      %c0_i32_389 = arith.constant 0 : i32
      %c0_i32_390 = arith.constant 0 : i32
      %969 = tpu.memref_slice %arg4[%c1_i32_199, %c2_i32_200, %c0_i32_389, %c0_i32_390] : memref<3x3x26x128xf32, #tpu.memory_space<vmem>> -> memref<1x1x26x128xf32, #tpu.memory_space<vmem>>
      %970 = tpu.memref_squeeze %969 : memref<1x1x26x128xf32, #tpu.memory_space<vmem>> -> memref<26x128xf32, #tpu.memory_space<vmem>>
      %971 = arith.index_cast %968 : i32 to index
      %c0_391 = arith.constant 0 : index
      %972 = vector.load %970[%971, %c0_391] : memref<26x128xf32, #tpu.memory_space<vmem>>, vector<8x128xf32>
      %973 = vector.broadcast %78 : f32 to vector<8x128xf32>
      %974 = arith.mulf %973, %972 : vector<8x128xf32>
      %975 = arith.addf %958, %974 : vector<8x128xf32>
      %976 = vector.broadcast %159 : f32 to vector<8x128xf32>
      %977 = arith.mulf %976, %972 : vector<8x128xf32>
      %978 = arith.addf %961, %977 : vector<8x128xf32>
      %979 = vector.broadcast %240 : f32 to vector<8x128xf32>
      %980 = arith.mulf %979, %972 : vector<8x128xf32>
      %981 = arith.addf %964, %980 : vector<8x128xf32>
      %982 = vector.broadcast %321 : f32 to vector<8x128xf32>
      %983 = arith.mulf %982, %972 : vector<8x128xf32>
      %984 = arith.addf %967, %983 : vector<8x128xf32>
      %c2_i32_392 = arith.constant 2 : i32
      %985 = arith.addi %538, %c2_i32_392 : i32
      %c0_i32_393 = arith.constant 0 : i32
      %c0_i32_394 = arith.constant 0 : i32
      %986 = tpu.memref_slice %arg4[%c2_i32_201, %c2_i32_202, %c0_i32_393, %c0_i32_394] : memref<3x3x26x128xf32, #tpu.memory_space<vmem>> -> memref<1x1x26x128xf32, #tpu.memory_space<vmem>>
      %987 = tpu.memref_squeeze %986 : memref<1x1x26x128xf32, #tpu.memory_space<vmem>> -> memref<26x128xf32, #tpu.memory_space<vmem>>
      %988 = arith.index_cast %985 : i32 to index
      %c0_395 = arith.constant 0 : index
      %989 = vector.load %987[%988, %c0_395] : memref<26x128xf32, #tpu.memory_space<vmem>>, vector<8x128xf32>
      %990 = vector.broadcast %81 : f32 to vector<8x128xf32>
      %991 = arith.mulf %990, %989 : vector<8x128xf32>
      %992 = arith.addf %975, %991 : vector<8x128xf32>
      %993 = vector.broadcast %162 : f32 to vector<8x128xf32>
      %994 = arith.mulf %993, %989 : vector<8x128xf32>
      %995 = arith.addf %978, %994 : vector<8x128xf32>
      %996 = vector.broadcast %243 : f32 to vector<8x128xf32>
      %997 = arith.mulf %996, %989 : vector<8x128xf32>
      %998 = arith.addf %981, %997 : vector<8x128xf32>
      %999 = vector.broadcast %324 : f32 to vector<8x128xf32>
      %1000 = arith.mulf %999, %989 : vector<8x128xf32>
      %1001 = arith.addf %984, %1000 : vector<8x128xf32>
      %1002 = tpu.iota {dimensions = array<i32: 0>} : vector<8x128xi32>
      %1003 = vector.broadcast %538 : i32 to vector<8x128xi32>
      %1004 = arith.addi %1002, %1003 : vector<8x128xi32>
      %1005 = tpu.iota {dimensions = array<i32: 1>} : vector<8x128xi32>
      %c16_i32_396 = arith.constant 16 : i32
      %1006 = vector.broadcast %c16_i32_396 : i32 to vector<8x128xi32>
      %1007 = arith.cmpi slt, %1004, %1006 : vector<8x128xi32>
      %c20_i32_397 = arith.constant 20 : i32
      %1008 = vector.broadcast %c20_i32_397 : i32 to vector<8x128xi32>
      %1009 = arith.cmpi slt, %1005, %1008 : vector<8x128xi32>
      %1010 = arith.andi %1007, %1009 : vector<8x128xi1>
      %cst_398 = arith.constant 0.000000e+00 : f32
      %1011 = vector.broadcast %cst_398 : f32 to vector<8x128xf32>
      %1012 = arith.select %1010, %992, %1011 : vector<8x128xi1>, vector<8x128xf32>
      %c0_399 = arith.constant 0 : index
      %1013 = arith.index_cast %538 : i32 to index
      %c0_400 = arith.constant 0 : index
      %1014 = vector.load %arg6[%c0_399, %1013, %c0_400] : memref<4x24x128xf32, #tpu.memory_space<vmem>>, vector<1x8x128xf32>
      %1015 = vector.shape_cast %1014 : vector<1x8x128xf32> to vector<8x128xf32>
      %1016 = vector.shape_cast %1012 : vector<8x128xf32> to vector<1x8x128xf32>
      tpu.vector_store %arg6[%c0_399, %1013, %c0_400], %1016 {strides = array<i32>} : memref<4x24x128xf32, #tpu.memory_space<vmem>>, vector<1x8x128xf32>,
      %cst_401 = arith.constant 0.000000e+00 : f32
      %1017 = vector.broadcast %cst_401 : f32 to vector<8x128xf32>
      %1018 = arith.select %1010, %995, %1017 : vector<8x128xi1>, vector<8x128xf32>
      %c1_402 = arith.constant 1 : index
      %1019 = arith.index_cast %538 : i32 to index
      %c0_403 = arith.constant 0 : index
      %1020 = vector.load %arg6[%c1_402, %1019, %c0_403] : memref<4x24x128xf32, #tpu.memory_space<vmem>>, vector<1x8x128xf32>
      %1021 = vector.shape_cast %1020 : vector<1x8x128xf32> to vector<8x128xf32>
      %1022 = vector.shape_cast %1018 : vector<8x128xf32> to vector<1x8x128xf32>
      tpu.vector_store %arg6[%c1_402, %1019, %c0_403], %1022 {strides = array<i32>} : memref<4x24x128xf32, #tpu.memory_space<vmem>>, vector<1x8x128xf32>,
      %cst_404 = arith.constant 0.000000e+00 : f32
      %1023 = vector.broadcast %cst_404 : f32 to vector<8x128xf32>
      %1024 = arith.select %1010, %998, %1023 : vector<8x128xi1>, vector<8x128xf32>
      %c2_405 = arith.constant 2 : index
      %1025 = arith.index_cast %538 : i32 to index
      %c0_406 = arith.constant 0 : index
      %1026 = vector.load %arg6[%c2_405, %1025, %c0_406] : memref<4x24x128xf32, #tpu.memory_space<vmem>>, vector<1x8x128xf32>
      %1027 = vector.shape_cast %1026 : vector<1x8x128xf32> to vector<8x128xf32>
      %1028 = vector.shape_cast %1024 : vector<8x128xf32> to vector<1x8x128xf32>
      tpu.vector_store %arg6[%c2_405, %1025, %c0_406], %1028 {strides = array<i32>} : memref<4x24x128xf32, #tpu.memory_space<vmem>>, vector<1x8x128xf32>,
      %cst_407 = arith.constant 0.000000e+00 : f32
      %1029 = vector.broadcast %cst_407 : f32 to vector<8x128xf32>
      %1030 = arith.select %1010, %1001, %1029 : vector<8x128xi1>, vector<8x128xf32>
      %c3_408 = arith.constant 3 : index
      %1031 = arith.index_cast %538 : i32 to index
      %c0_409 = arith.constant 0 : index
      %1032 = vector.load %arg6[%c3_408, %1031, %c0_409] : memref<4x24x128xf32, #tpu.memory_space<vmem>>, vector<1x8x128xf32>
      %1033 = vector.shape_cast %1032 : vector<1x8x128xf32> to vector<8x128xf32>
      %1034 = vector.shape_cast %1030 : vector<8x128xf32> to vector<1x8x128xf32>
      tpu.vector_store %arg6[%c3_408, %1031, %c0_409], %1034 {strides = array<i32>} : memref<4x24x128xf32, #tpu.memory_space<vmem>>, vector<1x8x128xf32>,
    }
    %c3_i32_206 = arith.constant 3 : i32
    %326 = tpu.iota {dimensions = array<i32: 0>} : vector<24x128xi32>
    %327 = tpu.iota {dimensions = array<i32: 1>} : vector<24x128xi32>
    %c16_i32 = arith.constant 16 : i32
    %328 = vector.broadcast %c16_i32 : i32 to vector<24x128xi32>
    %329 = arith.cmpi slt, %326, %328 : vector<24x128xi32>
    %c20_i32 = arith.constant 20 : i32
    %330 = vector.broadcast %c20_i32 : i32 to vector<24x128xi32>
    %331 = arith.cmpi slt, %327, %330 : vector<24x128xi32>
    %332 = arith.andi %329, %331 : vector<24x128xi1>
    %c0_207 = arith.constant 0 : index
    %c0_208 = arith.constant 0 : index
    %c0_209 = arith.constant 0 : index
    %333 = vector.load %arg6[%c0_207, %c0_208, %c0_209] : memref<4x24x128xf32, #tpu.memory_space<vmem>>, vector<1x24x128xf32>
    %334 = vector.shape_cast %333 : vector<1x24x128xf32> to vector<24x128xf32>
    %cst = arith.constant dense<0.000000e+00> : vector<24xf32>
    %335 = vector.multi_reduction <add>, %334, %cst [1] : vector<24x128xf32> to vector<24xf32>
    %336 = vector.shape_cast %335 : vector<24xf32> to vector<24x1xf32>
    %cst_210 = arith.constant dense<0.000000e+00> : vector<1xf32>
    %337 = vector.multi_reduction <add>, %336, %cst_210 [0] : vector<24x1xf32> to vector<1xf32>
    %338 = vector.shape_cast %337 : vector<1xf32> to vector<1x1xf32>
    %cst_211 = arith.constant 3.125000e-03 : f32
    %339 = vector.broadcast %cst_211 : f32 to vector<1x1xf32>
    %340 = arith.mulf %338, %339 : vector<1x1xf32>
    %341 = arith.mulf %334, %334 : vector<24x128xf32>
    %cst_212 = arith.constant dense<0.000000e+00> : vector<24xf32>
    %342 = vector.multi_reduction <add>, %341, %cst_212 [1] : vector<24x128xf32> to vector<24xf32>
    %343 = vector.shape_cast %342 : vector<24xf32> to vector<24x1xf32>
    %cst_213 = arith.constant dense<0.000000e+00> : vector<1xf32>
    %344 = vector.multi_reduction <add>, %343, %cst_213 [0] : vector<24x1xf32> to vector<1xf32>
    %345 = vector.shape_cast %344 : vector<1xf32> to vector<1x1xf32>
    %cst_214 = arith.constant 3.125000e-03 : f32
    %346 = vector.broadcast %cst_214 : f32 to vector<1x1xf32>
    %347 = arith.mulf %345, %346 : vector<1x1xf32>
    %348 = arith.mulf %340, %340 : vector<1x1xf32>
    %349 = arith.subf %347, %348 : vector<1x1xf32>
    %cst_215 = arith.constant 9.99999974E-6 : f32
    %350 = vector.broadcast %cst_215 : f32 to vector<1x1xf32>
    %351 = arith.addf %349, %350 : vector<1x1xf32>
    %352 = math.rsqrt %351 : vector<1x1xf32>
    %c0_i32_216 = arith.constant 0 : i32
    %353 = arith.addi %0, %c0_i32_216 : i32
    %354 = arith.index_cast %353 : i32 to index
    %355 = memref.load %arg2[%354] : memref<16xf32, #tpu.memory_space<smem>>
    %356 = vector.broadcast %355 : f32 to vector<1x1xf32>
    %357 = arith.mulf %352, %356 : vector<1x1xf32>
    %c0_i32_217 = arith.constant 0 : i32
    %358 = arith.addi %0, %c0_i32_217 : i32
    %359 = arith.index_cast %358 : i32 to index
    %360 = memref.load %arg3[%359] : memref<16xf32, #tpu.memory_space<smem>>
    %361 = arith.mulf %340, %357 : vector<1x1xf32>
    %362 = vector.broadcast %360 : f32 to vector<1x1xf32>
    %363 = arith.subf %362, %361 : vector<1x1xf32>
    %364 = vector.broadcast %357 : vector<1x1xf32> to vector<24x128xf32>
    %365 = arith.mulf %334, %364 : vector<24x128xf32>
    %366 = vector.broadcast %363 : vector<1x1xf32> to vector<24x128xf32>
    %367 = arith.addf %365, %366 : vector<24x128xf32>
    %cst_218 = arith.constant -1.000000e+30 : f32
    %368 = vector.broadcast %cst_218 : f32 to vector<24x128xf32>
    %369 = arith.select %332, %367, %368 : vector<24x128xi1>, vector<24x128xf32>
    %c1_i32_219 = arith.constant 1 : i32
    %370 = tpu.dynamic_rotate %369 by %c1_i32_219 dim 1 : vector<24x128xf32>, i32 -> vector<24x128xf32>
    %c127_i32 = arith.constant 127 : i32
    %371 = tpu.dynamic_rotate %369 by %c127_i32 dim 1 : vector<24x128xf32>, i32 -> vector<24x128xf32>
    %372 = arith.maximumf %370, %371 : vector<24x128xf32>
    %373 = arith.maximumf %369, %372 : vector<24x128xf32>
    %c1_i32_220 = arith.constant 1 : i32
    %374 = tpu.dynamic_rotate %373 by %c1_i32_220 dim 0 : vector<24x128xf32>, i32 -> vector<24x128xf32>
    %c23_i32 = arith.constant 23 : i32
    %375 = tpu.dynamic_rotate %373 by %c23_i32 dim 0 : vector<24x128xf32>, i32 -> vector<24x128xf32>
    %376 = arith.maximumf %374, %375 : vector<24x128xf32>
    %377 = arith.maximumf %373, %376 : vector<24x128xf32>
    %378 = math.tanh %377 : vector<24x128xf32>
    %379 = math.tanh %378 : vector<24x128xf32>
    %380 = vector.extract_strided_slice %379 {offsets = [0, 0], sizes = [16, 20], strides = [1, 1]} : vector<24x128xf32> to vector<16x20xf32>
    %c0_221 = arith.constant 0 : index
    %c0_222 = arith.constant 0 : index
    %c0_223 = arith.constant 0 : index
    %381 = vector.load %arg5[%c0_221, %c0_222, %c0_223] : memref<4x16x20xf32, #tpu.memory_space<vmem>>, vector<1x16x20xf32>
    %382 = vector.shape_cast %381 : vector<1x16x20xf32> to vector<16x20xf32>
    %383 = vector.shape_cast %380 : vector<16x20xf32> to vector<1x16x20xf32>
    tpu.vector_store %arg5[%c0_221, %c0_222, %c0_223], %383 {strides = array<i32>} : memref<4x16x20xf32, #tpu.memory_space<vmem>>, vector<1x16x20xf32>,
    %c1_224 = arith.constant 1 : index
    %c0_225 = arith.constant 0 : index
    %c0_226 = arith.constant 0 : index
    %384 = vector.load %arg6[%c1_224, %c0_225, %c0_226] : memref<4x24x128xf32, #tpu.memory_space<vmem>>, vector<1x24x128xf32>
    %385 = vector.shape_cast %384 : vector<1x24x128xf32> to vector<24x128xf32>
    %cst_227 = arith.constant dense<0.000000e+00> : vector<24xf32>
    %386 = vector.multi_reduction <add>, %385, %cst_227 [1] : vector<24x128xf32> to vector<24xf32>
    %387 = vector.shape_cast %386 : vector<24xf32> to vector<24x1xf32>
    %cst_228 = arith.constant dense<0.000000e+00> : vector<1xf32>
    %388 = vector.multi_reduction <add>, %387, %cst_228 [0] : vector<24x1xf32> to vector<1xf32>
    %389 = vector.shape_cast %388 : vector<1xf32> to vector<1x1xf32>
    %cst_229 = arith.constant 3.125000e-03 : f32
    %390 = vector.broadcast %cst_229 : f32 to vector<1x1xf32>
    %391 = arith.mulf %389, %390 : vector<1x1xf32>
    %392 = arith.mulf %385, %385 : vector<24x128xf32>
    %cst_230 = arith.constant dense<0.000000e+00> : vector<24xf32>
    %393 = vector.multi_reduction <add>, %392, %cst_230 [1] : vector<24x128xf32> to vector<24xf32>
    %394 = vector.shape_cast %393 : vector<24xf32> to vector<24x1xf32>
    %cst_231 = arith.constant dense<0.000000e+00> : vector<1xf32>
    %395 = vector.multi_reduction <add>, %394, %cst_231 [0] : vector<24x1xf32> to vector<1xf32>
    %396 = vector.shape_cast %395 : vector<1xf32> to vector<1x1xf32>
    %cst_232 = arith.constant 3.125000e-03 : f32
    %397 = vector.broadcast %cst_232 : f32 to vector<1x1xf32>
    %398 = arith.mulf %396, %397 : vector<1x1xf32>
    %399 = arith.mulf %391, %391 : vector<1x1xf32>
    %400 = arith.subf %398, %399 : vector<1x1xf32>
    %cst_233 = arith.constant 9.99999974E-6 : f32
    %401 = vector.broadcast %cst_233 : f32 to vector<1x1xf32>
    %402 = arith.addf %400, %401 : vector<1x1xf32>
    %403 = math.rsqrt %402 : vector<1x1xf32>
    %c1_i32_234 = arith.constant 1 : i32
    %404 = arith.addi %0, %c1_i32_234 : i32
    %405 = arith.index_cast %404 : i32 to index
    %406 = memref.load %arg2[%405] : memref<16xf32, #tpu.memory_space<smem>>
    %407 = vector.broadcast %406 : f32 to vector<1x1xf32>
    %408 = arith.mulf %403, %407 : vector<1x1xf32>
    %c1_i32_235 = arith.constant 1 : i32
    %409 = arith.addi %0, %c1_i32_235 : i32
    %410 = arith.index_cast %409 : i32 to index
    %411 = memref.load %arg3[%410] : memref<16xf32, #tpu.memory_space<smem>>
    %412 = arith.mulf %391, %408 : vector<1x1xf32>
    %413 = vector.broadcast %411 : f32 to vector<1x1xf32>
    %414 = arith.subf %413, %412 : vector<1x1xf32>
    %415 = vector.broadcast %408 : vector<1x1xf32> to vector<24x128xf32>
    %416 = arith.mulf %385, %415 : vector<24x128xf32>
    %417 = vector.broadcast %414 : vector<1x1xf32> to vector<24x128xf32>
    %418 = arith.addf %416, %417 : vector<24x128xf32>
    %cst_236 = arith.constant -1.000000e+30 : f32
    %419 = vector.broadcast %cst_236 : f32 to vector<24x128xf32>
    %420 = arith.select %332, %418, %419 : vector<24x128xi1>, vector<24x128xf32>
    %c1_i32_237 = arith.constant 1 : i32
    %421 = tpu.dynamic_rotate %420 by %c1_i32_237 dim 1 : vector<24x128xf32>, i32 -> vector<24x128xf32>
    %c127_i32_238 = arith.constant 127 : i32
    %422 = tpu.dynamic_rotate %420 by %c127_i32_238 dim 1 : vector<24x128xf32>, i32 -> vector<24x128xf32>
    %423 = arith.maximumf %421, %422 : vector<24x128xf32>
    %424 = arith.maximumf %420, %423 : vector<24x128xf32>
    %c1_i32_239 = arith.constant 1 : i32
    %425 = tpu.dynamic_rotate %424 by %c1_i32_239 dim 0 : vector<24x128xf32>, i32 -> vector<24x128xf32>
    %c23_i32_240 = arith.constant 23 : i32
    %426 = tpu.dynamic_rotate %424 by %c23_i32_240 dim 0 : vector<24x128xf32>, i32 -> vector<24x128xf32>
    %427 = arith.maximumf %425, %426 : vector<24x128xf32>
    %428 = arith.maximumf %424, %427 : vector<24x128xf32>
    %429 = math.tanh %428 : vector<24x128xf32>
    %430 = math.tanh %429 : vector<24x128xf32>
    %431 = vector.extract_strided_slice %430 {offsets = [0, 0], sizes = [16, 20], strides = [1, 1]} : vector<24x128xf32> to vector<16x20xf32>
    %c1_241 = arith.constant 1 : index
    %c0_242 = arith.constant 0 : index
    %c0_243 = arith.constant 0 : index
    %432 = vector.load %arg5[%c1_241, %c0_242, %c0_243] : memref<4x16x20xf32, #tpu.memory_space<vmem>>, vector<1x16x20xf32>
    %433 = vector.shape_cast %432 : vector<1x16x20xf32> to vector<16x20xf32>
    %434 = vector.shape_cast %431 : vector<16x20xf32> to vector<1x16x20xf32>
    tpu.vector_store %arg5[%c1_241, %c0_242, %c0_243], %434 {strides = array<i32>} : memref<4x16x20xf32, #tpu.memory_space<vmem>>, vector<1x16x20xf32>,
    %c2_244 = arith.constant 2 : index
    %c0_245 = arith.constant 0 : index
    %c0_246 = arith.constant 0 : index
    %435 = vector.load %arg6[%c2_244, %c0_245, %c0_246] : memref<4x24x128xf32, #tpu.memory_space<vmem>>, vector<1x24x128xf32>
    %436 = vector.shape_cast %435 : vector<1x24x128xf32> to vector<24x128xf32>
    %cst_247 = arith.constant dense<0.000000e+00> : vector<24xf32>
    %437 = vector.multi_reduction <add>, %436, %cst_247 [1] : vector<24x128xf32> to vector<24xf32>
    %438 = vector.shape_cast %437 : vector<24xf32> to vector<24x1xf32>
    %cst_248 = arith.constant dense<0.000000e+00> : vector<1xf32>
    %439 = vector.multi_reduction <add>, %438, %cst_248 [0] : vector<24x1xf32> to vector<1xf32>
    %440 = vector.shape_cast %439 : vector<1xf32> to vector<1x1xf32>
    %cst_249 = arith.constant 3.125000e-03 : f32
    %441 = vector.broadcast %cst_249 : f32 to vector<1x1xf32>
    %442 = arith.mulf %440, %441 : vector<1x1xf32>
    %443 = arith.mulf %436, %436 : vector<24x128xf32>
    %cst_250 = arith.constant dense<0.000000e+00> : vector<24xf32>
    %444 = vector.multi_reduction <add>, %443, %cst_250 [1] : vector<24x128xf32> to vector<24xf32>
    %445 = vector.shape_cast %444 : vector<24xf32> to vector<24x1xf32>
    %cst_251 = arith.constant dense<0.000000e+00> : vector<1xf32>
    %446 = vector.multi_reduction <add>, %445, %cst_251 [0] : vector<24x1xf32> to vector<1xf32>
    %447 = vector.shape_cast %446 : vector<1xf32> to vector<1x1xf32>
    %cst_252 = arith.constant 3.125000e-03 : f32
    %448 = vector.broadcast %cst_252 : f32 to vector<1x1xf32>
    %449 = arith.mulf %447, %448 : vector<1x1xf32>
    %450 = arith.mulf %442, %442 : vector<1x1xf32>
    %451 = arith.subf %449, %450 : vector<1x1xf32>
    %cst_253 = arith.constant 9.99999974E-6 : f32
    %452 = vector.broadcast %cst_253 : f32 to vector<1x1xf32>
    %453 = arith.addf %451, %452 : vector<1x1xf32>
    %454 = math.rsqrt %453 : vector<1x1xf32>
    %c2_i32_254 = arith.constant 2 : i32
    %455 = arith.addi %0, %c2_i32_254 : i32
    %456 = arith.index_cast %455 : i32 to index
    %457 = memref.load %arg2[%456] : memref<16xf32, #tpu.memory_space<smem>>
    %458 = vector.broadcast %457 : f32 to vector<1x1xf32>
    %459 = arith.mulf %454, %458 : vector<1x1xf32>
    %c2_i32_255 = arith.constant 2 : i32
    %460 = arith.addi %0, %c2_i32_255 : i32
    %461 = arith.index_cast %460 : i32 to index
    %462 = memref.load %arg3[%461] : memref<16xf32, #tpu.memory_space<smem>>
    %463 = arith.mulf %442, %459 : vector<1x1xf32>
    %464 = vector.broadcast %462 : f32 to vector<1x1xf32>
    %465 = arith.subf %464, %463 : vector<1x1xf32>
    %466 = vector.broadcast %459 : vector<1x1xf32> to vector<24x128xf32>
    %467 = arith.mulf %436, %466 : vector<24x128xf32>
    %468 = vector.broadcast %465 : vector<1x1xf32> to vector<24x128xf32>
    %469 = arith.addf %467, %468 : vector<24x128xf32>
    %cst_256 = arith.constant -1.000000e+30 : f32
    %470 = vector.broadcast %cst_256 : f32 to vector<24x128xf32>
    %471 = arith.select %332, %469, %470 : vector<24x128xi1>, vector<24x128xf32>
    %c1_i32_257 = arith.constant 1 : i32
    %472 = tpu.dynamic_rotate %471 by %c1_i32_257 dim 1 : vector<24x128xf32>, i32 -> vector<24x128xf32>
    %c127_i32_258 = arith.constant 127 : i32
    %473 = tpu.dynamic_rotate %471 by %c127_i32_258 dim 1 : vector<24x128xf32>, i32 -> vector<24x128xf32>
    %474 = arith.maximumf %472, %473 : vector<24x128xf32>
    %475 = arith.maximumf %471, %474 : vector<24x128xf32>
    %c1_i32_259 = arith.constant 1 : i32
    %476 = tpu.dynamic_rotate %475 by %c1_i32_259 dim 0 : vector<24x128xf32>, i32 -> vector<24x128xf32>
    %c23_i32_260 = arith.constant 23 : i32
    %477 = tpu.dynamic_rotate %475 by %c23_i32_260 dim 0 : vector<24x128xf32>, i32 -> vector<24x128xf32>
    %478 = arith.maximumf %476, %477 : vector<24x128xf32>
    %479 = arith.maximumf %475, %478 : vector<24x128xf32>
    %480 = math.tanh %479 : vector<24x128xf32>
    %481 = math.tanh %480 : vector<24x128xf32>
    %482 = vector.extract_strided_slice %481 {offsets = [0, 0], sizes = [16, 20], strides = [1, 1]} : vector<24x128xf32> to vector<16x20xf32>
    %c2_261 = arith.constant 2 : index
    %c0_262 = arith.constant 0 : index
    %c0_263 = arith.constant 0 : index
    %483 = vector.load %arg5[%c2_261, %c0_262, %c0_263] : memref<4x16x20xf32, #tpu.memory_space<vmem>>, vector<1x16x20xf32>
    %484 = vector.shape_cast %483 : vector<1x16x20xf32> to vector<16x20xf32>
    %485 = vector.shape_cast %482 : vector<16x20xf32> to vector<1x16x20xf32>
    tpu.vector_store %arg5[%c2_261, %c0_262, %c0_263], %485 {strides = array<i32>} : memref<4x16x20xf32, #tpu.memory_space<vmem>>, vector<1x16x20xf32>,
    %c3_264 = arith.constant 3 : index
    %c0_265 = arith.constant 0 : index
    %c0_266 = arith.constant 0 : index
    %486 = vector.load %arg6[%c3_264, %c0_265, %c0_266] : memref<4x24x128xf32, #tpu.memory_space<vmem>>, vector<1x24x128xf32>
    %487 = vector.shape_cast %486 : vector<1x24x128xf32> to vector<24x128xf32>
    %cst_267 = arith.constant dense<0.000000e+00> : vector<24xf32>
    %488 = vector.multi_reduction <add>, %487, %cst_267 [1] : vector<24x128xf32> to vector<24xf32>
    %489 = vector.shape_cast %488 : vector<24xf32> to vector<24x1xf32>
    %cst_268 = arith.constant dense<0.000000e+00> : vector<1xf32>
    %490 = vector.multi_reduction <add>, %489, %cst_268 [0] : vector<24x1xf32> to vector<1xf32>
    %491 = vector.shape_cast %490 : vector<1xf32> to vector<1x1xf32>
    %cst_269 = arith.constant 3.125000e-03 : f32
    %492 = vector.broadcast %cst_269 : f32 to vector<1x1xf32>
    %493 = arith.mulf %491, %492 : vector<1x1xf32>
    %494 = arith.mulf %487, %487 : vector<24x128xf32>
    %cst_270 = arith.constant dense<0.000000e+00> : vector<24xf32>
    %495 = vector.multi_reduction <add>, %494, %cst_270 [1] : vector<24x128xf32> to vector<24xf32>
    %496 = vector.shape_cast %495 : vector<24xf32> to vector<24x1xf32>
    %cst_271 = arith.constant dense<0.000000e+00> : vector<1xf32>
    %497 = vector.multi_reduction <add>, %496, %cst_271 [0] : vector<24x1xf32> to vector<1xf32>
    %498 = vector.shape_cast %497 : vector<1xf32> to vector<1x1xf32>
    %cst_272 = arith.constant 3.125000e-03 : f32
    %499 = vector.broadcast %cst_272 : f32 to vector<1x1xf32>
    %500 = arith.mulf %498, %499 : vector<1x1xf32>
    %501 = arith.mulf %493, %493 : vector<1x1xf32>
    %502 = arith.subf %500, %501 : vector<1x1xf32>
    %cst_273 = arith.constant 9.99999974E-6 : f32
    %503 = vector.broadcast %cst_273 : f32 to vector<1x1xf32>
    %504 = arith.addf %502, %503 : vector<1x1xf32>
    %505 = math.rsqrt %504 : vector<1x1xf32>
    %c3_i32_274 = arith.constant 3 : i32
    %506 = arith.addi %0, %c3_i32_274 : i32
    %507 = arith.index_cast %506 : i32 to index
    %508 = memref.load %arg2[%507] : memref<16xf32, #tpu.memory_space<smem>>
    %509 = vector.broadcast %508 : f32 to vector<1x1xf32>
    %510 = arith.mulf %505, %509 : vector<1x1xf32>
    %c3_i32_275 = arith.constant 3 : i32
    %511 = arith.addi %0, %c3_i32_275 : i32
    %512 = arith.index_cast %511 : i32 to index
    %513 = memref.load %arg3[%512] : memref<16xf32, #tpu.memory_space<smem>>
    %514 = arith.mulf %493, %510 : vector<1x1xf32>
    %515 = vector.broadcast %513 : f32 to vector<1x1xf32>
    %516 = arith.subf %515, %514 : vector<1x1xf32>
    %517 = vector.broadcast %510 : vector<1x1xf32> to vector<24x128xf32>
    %518 = arith.mulf %487, %517 : vector<24x128xf32>
    %519 = vector.broadcast %516 : vector<1x1xf32> to vector<24x128xf32>
    %520 = arith.addf %518, %519 : vector<24x128xf32>
    %cst_276 = arith.constant -1.000000e+30 : f32
    %521 = vector.broadcast %cst_276 : f32 to vector<24x128xf32>
    %522 = arith.select %332, %520, %521 : vector<24x128xi1>, vector<24x128xf32>
    %c1_i32_277 = arith.constant 1 : i32
    %523 = tpu.dynamic_rotate %522 by %c1_i32_277 dim 1 : vector<24x128xf32>, i32 -> vector<24x128xf32>
    %c127_i32_278 = arith.constant 127 : i32
    %524 = tpu.dynamic_rotate %522 by %c127_i32_278 dim 1 : vector<24x128xf32>, i32 -> vector<24x128xf32>
    %525 = arith.maximumf %523, %524 : vector<24x128xf32>
    %526 = arith.maximumf %522, %525 : vector<24x128xf32>
    %c1_i32_279 = arith.constant 1 : i32
    %527 = tpu.dynamic_rotate %526 by %c1_i32_279 dim 0 : vector<24x128xf32>, i32 -> vector<24x128xf32>
    %c23_i32_280 = arith.constant 23 : i32
    %528 = tpu.dynamic_rotate %526 by %c23_i32_280 dim 0 : vector<24x128xf32>, i32 -> vector<24x128xf32>
    %529 = arith.maximumf %527, %528 : vector<24x128xf32>
    %530 = arith.maximumf %526, %529 : vector<24x128xf32>
    %531 = math.tanh %530 : vector<24x128xf32>
    %532 = math.tanh %531 : vector<24x128xf32>
    %533 = vector.extract_strided_slice %532 {offsets = [0, 0], sizes = [16, 20], strides = [1, 1]} : vector<24x128xf32> to vector<16x20xf32>
    %c3_281 = arith.constant 3 : index
    %c0_282 = arith.constant 0 : index
    %c0_283 = arith.constant 0 : index
    %534 = vector.load %arg5[%c3_281, %c0_282, %c0_283] : memref<4x16x20xf32, #tpu.memory_space<vmem>>, vector<1x16x20xf32>
    %535 = vector.shape_cast %534 : vector<1x16x20xf32> to vector<16x20xf32>
    %536 = vector.shape_cast %533 : vector<16x20xf32> to vector<1x16x20xf32>
    tpu.vector_store %arg5[%c3_281, %c0_282, %c0_283], %536 {strides = array<i32>} : memref<4x16x20xf32, #tpu.memory_space<vmem>>, vector<1x16x20xf32>,
    return
  }
  func.func @transform_0(%arg0: i32) -> (i32, i32) {
    %c0_i32 = arith.constant 0 : i32
    %c0_i32_0 = arith.constant 0 : i32
    %c0_i32_1 = arith.constant 0 : i32
    return %c0_i32, %c0_i32_0 : i32, i32
  }
  func.func @transform_1(%arg0: i32) -> i32 {
    %c0_i32 = arith.constant 0 : i32
    %c0_i32_0 = arith.constant 0 : i32
    return %c0_i32 : i32
  }
  func.func @transform_2(%arg0: i32) -> i32 {
    %c0_i32 = arith.constant 0 : i32
    %c0_i32_0 = arith.constant 0 : i32
    return %c0_i32 : i32
  }
  func.func @transform_3(%arg0: i32) -> (i32, i32, i32, i32) {
    %c0_i32 = arith.constant 0 : i32
    %c0_i32_0 = arith.constant 0 : i32
    %c0_i32_1 = arith.constant 0 : i32
    %c0_i32_2 = arith.constant 0 : i32
    %c0_i32_3 = arith.constant 0 : i32
    return %c0_i32, %c0_i32_0, %c0_i32_1, %c0_i32_2 : i32, i32, i32, i32
  }
  func.func @transform_4(%arg0: i32) -> (i32, i32, i32) {
    %c0_i32 = arith.constant 0 : i32
    %c0_i32_0 = arith.constant 0 : i32
    %c0_i32_1 = arith.constant 0 : i32
    return %arg0, %c0_i32, %c0_i32_0 : i32, i32, i32
  }
}

</mosaic_0001>

<bundles_post_ra>
// kernel: tpu_custom_call.1
= control target key start
LH: loop header
LB: loop body
LE: loop exit
PB: predicated region body
PF: predicated region fallthrough
CT: control target
= control target key end

     0   :  { %s2819_s0 = inlined_call_operand.hbm [shape: f32[16,27], index: 0, kind: input, shape index: {}]   ;;  %s2820_s1 = inlined_call_operand.vmem [shape: f32[16], index: 1, kind: input, shape index: {}]   ;;  %s2821_s2 = inlined_call_operand.vmem [shape: f32[16], index: 2, kind: input, shape index: {}]   ;;  %s2822_s3 = inlined_call_operand.hbm [shape: f32[3,3,26,128], index: 3, kind: input, shape index: {}]   ;;  %s2823_s4 = inlined_call_operand.hbm [shape: f32[16,16,20], index: 4, kind: output, shape index: {}]  }
   0x1   :  { %2841 = sst [smem:[#allocation120_spill]] %s2819_s0 }
   0x2   :  { %2842 = sst [smem:[#allocation121_spill]] %s2820_s1 }
   0x3   :  { %2843 = sst [smem:[#allocation122_spill]] %s2821_s2 }
   0x4   :  { %2844 = sst [smem:[#allocation123_spill]] %s2822_s3 }
   0x5   :  { %2845 = sst [smem:[#allocation124_spill]] %s2823_s4 }
   0x6   :  { %9 = vsyncpa [#allocation6], 0 }
   0x7   :  { %10 = vsyncpa [#allocation7], 0 }
   0x8   :  { %11 = vsyncpa [#allocation10], 0 }
   0x9   :  { %12 = vsyncpa [#allocation4], 0 }
   0xa   :  { %13 = vsyncpa [#allocation5], 0 }
   0xb   :  { %15 = vsyncpa [#allocation5 + $0x1], 0  ;;  %s1907_s15 = smov 0   ;;  %s1909_s16 = smov 0  }
   0xc   :  { %s1911_s17 = smov 0   ;;  %s1913_s18 = smov 0  }
   0xd LB: > { %2846 = sst [smem:[#allocation18_spill]] %s1852_s15  ;;  %s1928_s19 = sadd.s32 4294967295, %s1864_s18   ;;  %s1864_s18 = sphi %s1913_s18, %s3075_s18   ;;  %s1860_s17 = sphi %s1911_s17, %s3078_s17   ;;  %s1856_s16 = sphi %s1909_s16, %s3077_s16   ;;  %s1852_s15 = sphi %s1907_s15, %s3076_s15  }
   0xe   : > { %2847 = sst [smem:[#allocation19_spill]] %s1856_s16  ;;  %s1476_s20 = sadd.s32 4294967294, %s1864_s18  }
   0xf   : > { %2848 = sst [smem:[#allocation20_spill]] %s1860_s17  ;;  %s1932_s21 = sadd.s32 1, %s1864_s18  }
  0x10   : > { %2849 = sst [smem:[#allocation21_spill]] %s1864_s18  ;;  %s112_s22 = sadd.s32 1, %s1860_s17 }
  0x11   : > { %2850 = sst [smem:[#allocation22_spill]] %s1928_s19  ;;  %s109_s23 = ssub.s32 %s1864_s18, %s1932_s21 }
  0x12   : > { %2851 = sst [smem:[#allocation23_spill]] %s1932_s21  ;;  %p122_p0 = scmp.ne.s32.totalorder %s1860_s17, %s1856_s16 }
  0x13   : > { %p110_p1 = scmp.eq.s32.totalorder %s109_s23, 0  ;;  %p123_p2 = scmp.eq.s32.totalorder %s1928_s19, 3 }
  0x14   : > { %p128_p3 = scmp.ne.s32.totalorder %s1856_s16, %s1852_s15  ;;  %p129_p4 = scmp.eq.s32.totalorder %s1476_s20, 3 }
  0x15   : > { %s1943_s24 = scalar_select %p110_p1, %s1860_s17, %s112_s22  }
  0x16   : > { %p1945_p5 = por %p123_p2, %p122_p0  ;;  %p1949_p6 = por %p129_p4, %p128_p3 }
  0x17   : > { %2852 = sst [smem:[#allocation24_spill]] %s1943_s24  ;;  %p1477_p7 = scmp.ge.s32.totalorder %s1864_s18, 1 }
  0x18   : > { %s2853_s25 = scalar_select %p1945_p5, 1, 0 }
  0x19   : > { %s2855_s26 = scalar_select %p1949_p6, 1, 0 }
  0x1a   : > { %2854 = sst [smem:[#allocation25_spill]] %s2853_s25  ;;  %p136_p8 = scmp.lt.s32.totalorder %s1864_s18, 5 }
  0x1b   : > { %2856 = sst [smem:[#allocation26_spill]] %s2855_s26  ;;  %p2824_p9 = scmp.eq.s32.totalorder %s1928_s19, 0 }
  0x1c   : > { %p1956_p10 = pnand %p1477_p7, %p136_p8  ;;  %s2858_s1 = sld [smem:[#allocation121_spill]] }
  0x1d   : > { %s2860_s2 = sld [smem:[#allocation122_spill]]  ;;  %s2861_s0 = sld [smem:[#allocation120_spill]] }
  0x1e   : > { %s2857_s27 = scalar_select %p1956_p10, 1, 0 }
  0x1f   : > { %p1594_p11 = pneg %p1956_p10 }
  0x21   : > { %p1967_p12 = pnand %p2824_p9, %p1594_p11 }
  0x22   : > { %s160_s30 = sshll.u32 %s2858_s1, 4  ;;  %s161_s30 = int_to_ptr.vmem [resolvable:$true] %s160_s30 }
  0x23   : > { %s171_s8 = sshll.u32 %s2860_s2, 4  ;;  %s1711_s11 = scalar_lea.hbm %s2861_s0, 256  ;;  %s1974_s8 = int_to_ptr.vmem [resolvable:$true] %s171_s8 }
  0x24   : > { %p1712_p13 = scmp.ne.s32.totalorder %s2861_s0, %s1711_s11  ;;  %p1984_p0 = pneg %p1967_p12 }
  0x25   : > { %p1718_p3 = scmp.lt.u32.totalorder %s1711_s11, %s2861_s0 }
  0x26   : > { %p1714_p1 = pnand %p1984_p0, %p1712_p13 }
  0x28   : > { %p1715_p2 = pneg %p1714_p1 }
  0x2a   : > { %p1720_p4 = pnand %p1718_p3, %p1715_p2 }
  0x2c   : > { %1723 = shalt.err (!%p1720_p4)
}
  0x2d   : > { %s1870_s23 = smov [#allocation3]   ;;  %s1871_s28 = smov 128  }
  0x2e   : > { %s1872_s29 = smov 8   ;;  %s1724_s9 = scalar_lea.vmem %s161_s30, 16 }
  0x2f   : > { %1597 = dma.hbm_to_smem (!%p1967_p12), %s2861_s0, 256, %s1870_s23, [#allocation6], %s1871_s28, %s1871_s28, %s1872_s29  }
  0x30   : > { %p1725_p7 = scmp.ne.s32.totalorder %s161_s30, %s1724_s9  ;;  %p1732_p13 = scmp.lt.s32.totalorder %s161_s30, %s161_s30 }
  0x31   : > { %p1733_p1 = scmp.lt.s32.totalorder %s1724_s9, %s1724_s9 }
  0x32   : > { %p1727_p8 = pnand %p1725_p7, %p1984_p0 }
  0x33   : > { %p1734_p2 = por %p1733_p1, %p1732_p13 }
  0x34   : > { %p1728_p11 = pneg %p1727_p8 }
  0x36   : > { %p1735_p3 = pnand %p1734_p2, %p1728_p11 }
  0x38   : > { %1738 = shalt.err (!%p1735_p3)
}
  0x39   : > { %s1873_s10 = smov [#allocation8]   ;;  %s1739_s11 = scalar_lea.vmem %s1974_s8, 16 }
  0x3a   : > { %1600 = dma.vmem_to_smem (!%p1967_p12), %s161_s30, 16, %s1873_s10, [#allocation7]  }
  0x3b   : > { %p1740_p4 = scmp.ne.s32.totalorder %s1974_s8, %s1739_s11  ;;  %p1747_p7 = scmp.lt.s32.totalorder %s1974_s8, %s1974_s8 }
  0x3c   : > { %p1748_p8 = scmp.lt.s32.totalorder %s1739_s11, %s1739_s11 }
  0x3d   : > { %p1742_p9 = pnand %p1740_p4, %p1984_p0 }
  0x3e   : > { %p1749_p5 = por %p1748_p8, %p1747_p7 }
  0x3f   : > { %p1743_p6 = pneg %p1742_p9 }
  0x41   : > { %p1750_p13 = pnand %p1749_p5, %p1743_p6 }
  0x43   : > { %1753 = shalt.err (!%p1750_p13)
}
  0x44   : > { %s1874_s12 = smov [#allocation9]   ;;  %s1875_s13 = smov [#allocation11]  }
  0x45   : > { %1603 = dma.vmem_to_smem (!%p1967_p12), %s1974_s8, 16, %s1874_s12, [#allocation10]  }
  0x46   : > { %s181_s20 = sshll.u32 %s1875_s13, 4  ;;  %s2863_s3 = sld [smem:[#allocation123_spill]]  ;;  %s182_s20 = int_to_ptr.vmem [resolvable:$true] %s181_s20 }
  0x4c   : > { %s1754_s23 = scalar_lea.hbm %s2863_s3, 4608 }
  0x4d   : > { %p1755_p9 = scmp.ne.s32.totalorder %s2863_s3, %s1754_s23  ;;  %p1761_p11 = scmp.lt.u32.totalorder %s1754_s23, %s2863_s3 }
  0x4f   : > { %p1757_p5 = pnand %p1755_p9, %p1984_p0 }
  0x51   : > { %p1758_p6 = pneg %p1757_p5 }
  0x53   : > { %p1763_p1 = pnand %p1761_p11, %p1758_p6 }
  0x55   : > { %1766 = shalt.err (!%p1763_p1)
}
  0x56   : > { %s1767_s8 = scalar_lea.vmem %s182_s20, 4608  ;;  %p1775_p7 = scmp.lt.s32.totalorder %s182_s20, %s182_s20 }
  0x57   : > { %p1768_p2 = scmp.ne.s32.totalorder %s182_s20, %s1767_s8  ;;  %p1776_p8 = scmp.lt.s32.totalorder %s1767_s8, %s1767_s8 }
  0x59   : > { %p1770_p3 = pnand %p1768_p2, %p1984_p0  ;;  %p1777_p13 = por %p1776_p8, %p1775_p7 }
  0x5b   : > { %p1771_p4 = pneg %p1770_p3 }
  0x5d   : > { %p1778_p10 = pnand %p1777_p13, %p1771_p4 }
  0x5f   : > { %1781 = shalt.err (!%p1778_p10)
}
  0x60   : > { %1606 = dma.hbm_to_vmem [thread:$0]  (!%p1967_p12), %s2863_s3, 4608, %s182_s20, [#allocation4], %s1871_s28, %s1871_s28, %s1872_s29  }
  0x61   : > { %p2864_p9 = scmp.ne.s32.totalorder %s2857_s27, 0 }
  0x63   : > { %197 = sbr.rel (%p2864_p9) target bundleno = 840 (0x348), region = 36 }
  0x6a   : > { %p2865_p0 = scmp.eq.s32.totalorder %s1928_s19, 0 }
  0x6c   : > { %1831 = dma.done.wait (%p2865_p0), [#allocation6], 256   ;;  %p2866_p5 = pmov %p2865_p0 }
  0x6d   : > { %p2867_p10 = pmov %p2865_p0 }
  0x6e   : > { %1833 = vsyncadd (%p2866_p5), [#allocation6], 4294967040 }
  0x6f   : > { %1835 = dma.done.wait (%p2867_p10), [#allocation7], 16   ;;  %p2868_p6 = pmov %p2865_p0 }
  0x70   : > { %p2869_p11 = pmov %p2865_p0 }
  0x71   : > { %1837 = vsyncadd (%p2868_p6), [#allocation7], 4294967280 }
  0x72   : > { %1839 = dma.done.wait (%p2869_p11), [#allocation10], 16   ;;  %p2870_p12 = pmov %p2865_p0 }
  0x73   : > { %p2871_p1 = pmov %p2865_p0 }
  0x74   : > { %1841 = vsyncadd (%p2870_p12), [#allocation10], 4294967280 }
  0x75   : > { %1843 = dma.done.wait (%p2871_p1), [#allocation4], 4608   ;;  %p2872_p2 = pmov %p2865_p0 }
  0x77   : > { %1845 = vsyncadd (%p2872_p2), [#allocation4], 4294962688 }
  0x78   : > { %215 = sfence }
  0x79   : > { %s2827_s27 = sand.u32 1, %s1856_s16   ;;  %s2055_s5 = sshll.u32 %s1928_s19, 2 }
  0x7a   : > { %2873 = sst [smem:[#allocation27_spill]] %s2055_s5  ;;  %s2059_s14 = sshll.u32 %s2827_s27, 6 }
  0x7b   : > { %s2062_s28 = sshll.u32 %s1928_s19, 9 }
  0x7c   : > { %s2065_s29 = sld [smem:[#allocation3 + %s2062_s28]]  ;;  %s235_s13 = sadd.s32 1, %s2062_s28 }
  0x7d   : > { %s237_s20 = sadd.s32 2, %s2062_s28  ;;  %s2069_s30 = sld [smem:[#allocation3 + %s235_s13]] }
  0x7e   : > { %s2071_s22 = sld [smem:[#allocation3 + %s237_s20]]  ;;  %s239_s23 = sadd.s32 3, %s2062_s28 }
  0x7f   : > { %s241_s6 = sadd.s32 4, %s2062_s28  ;;  %s2075_s7 = sld [smem:[#allocation3 + %s239_s23]] }
  0x80   : > { %s2077_s9 = sld [smem:[#allocation3 + %s241_s6]]  ;;  %s243_s10 = sadd.s32 5, %s2062_s28 }
  0x81   : > { %s245_s8 = sadd.s32 6, %s2062_s28  ;;  %s2081_s11 = sld [smem:[#allocation3 + %s243_s10]] }
  0x82   : > { %s2083_s12 = sld [smem:[#allocation3 + %s245_s8]]  ;;  %s247_s13 = sadd.s32 7, %s2062_s28 }
  0x83   : > { %s249_s20 = sadd.s32 8, %s2062_s28  ;;  %s2087_s27 = sld [smem:[#allocation3 + %s247_s13]] }
  0x84   : > { %s2089_s0 = sld [smem:[#allocation3 + %s249_s20]]  ;;  %s251_s23 = sadd.s32 9, %s2062_s28 }
  0x85   : > { %2874 = sst [smem:[#allocation28_spill]] %s2075_s7  ;;  %s253_s6 = sadd.s32 10, %s2062_s28 }
  0x86   : > { %2875 = sst [smem:[#allocation29_spill]] %s2077_s9  ;;  %s255_s10 = sadd.s32 11, %s2062_s28 }
  0x87   : > { %2876 = sst [smem:[#allocation30_spill]] %s2081_s11  ;;  %s257_s8 = sadd.s32 12, %s2062_s28 }
  0x88   : > { %2877 = sst [smem:[#allocation31_spill]] %s2083_s12  ;;  %s259_s13 = sadd.s32 13, %s2062_s28 }
  0x89   : > { %2878 = sst [smem:[#allocation32_spill]] %s2087_s27  ;;  %s261_s20 = sadd.s32 14, %s2062_s28 }
  0x8a   : > { %2879 = sst [smem:[#allocation33_spill]] %s2089_s0  ;;  %s277_s19 = sadd.s32 22, %s2062_s28 }
  0x8b   : > { %s2093_s1 = sld [smem:[#allocation3 + %s251_s23]]  ;;  %s263_s23 = sadd.s32 15, %s2062_s28 }
  0x8c   : > { %s2095_s2 = sld [smem:[#allocation3 + %s253_s6]]  ;;  %s265_s6 = sadd.s32 16, %s2062_s28 }
  0x8d   : > { %s2099_s3 = sld [smem:[#allocation3 + %s255_s10]]  ;;  %s267_s10 = sadd.s32 17, %s2062_s28 }
  0x8e   : > { %s2101_s24 = sld [smem:[#allocation3 + %s257_s8]]  ;;  %s269_s8 = sadd.s32 18, %s2062_s28 }
  0x8f   : > { %s2105_s17 = sld [smem:[#allocation3 + %s259_s13]]  ;;  %s271_s13 = sadd.s32 19, %s2062_s28 }
  0x90   : > { %s2107_s21 = sld [smem:[#allocation3 + %s261_s20]]  ;;  %s273_s20 = sadd.s32 20, %s2062_s28 }
  0x91   : > { %2880 = sst [smem:[#allocation34_spill]] %s2093_s1 }
  0x92   : > { %2881 = sst [smem:[#allocation35_spill]] %s2095_s2 }
  0x93   : > { %2882 = sst [smem:[#allocation36_spill]] %s2099_s3 }
  0x94   : > { %2883 = sst [smem:[#allocation37_spill]] %s2101_s24 }
  0x95   : > { %2884 = sst [smem:[#allocation38_spill]] %s2105_s17 }
  0x96   : > { %2885 = sst [smem:[#allocation39_spill]] %s2107_s21  ;;  %s281_s21 = sadd.s32 24, %s2062_s28 }
  0x97   : > { %s2111_s26 = sld [smem:[#allocation3 + %s263_s23]]  ;;  %s275_s23 = sadd.s32 21, %s2062_s28 }
  0x98   : > { %s2113_s15 = sld [smem:[#allocation3 + %s265_s6]] }
  0x99   : > { %s2117_s18 = sld [smem:[#allocation3 + %s267_s10]] }
  0x9a   : > { %s2119_s4 = sld [smem:[#allocation3 + %s269_s8]] }
  0x9b   : > { %s2123_s25 = sld [smem:[#allocation3 + %s271_s13]] }
  0x9c   : > { %s2125_s16 = sld [smem:[#allocation3 + %s273_s20]] }
  0x9d   : > { %2886 = sst [smem:[#allocation40_spill]] %s2111_s26  ;;  %s279_s26 = sadd.s32 23, %s2062_s28 }
  0x9e   : > { %2887 = sst [smem:[#allocation41_spill]] %s2113_s15 }
  0x9f   : > { %2888 = sst [smem:[#allocation42_spill]] %s2117_s18  ;;  %s285_s18 = sadd.s32 26, %s2062_s28 }
  0xa0   : > { %2889 = sst [smem:[#allocation43_spill]] %s2119_s4  ;;  %s283_s4 = sadd.s32 25, %s2062_s28 }
  0xa1   : > { %2890 = sst [smem:[#allocation44_spill]] %s2123_s25 }
  0xa2   : > { %2891 = sst [smem:[#allocation45_spill]] %s2125_s16  ;;  %s2147_s16 = sadd.s32 128, %s2062_s28 }
  0xa3   : > { %s2129_s6 = sld [smem:[#allocation3 + %s275_s23]]  ;;  %s294_s23 = sadd.s32 3, %s2147_s16 }
  0xa4   : > { %s2131_s15 = sld [smem:[#allocation3 + %s277_s19]]  ;;  %s304_s25 = sadd.s32 8, %s2147_s16 }
  0xa5   : > { %s2135_s10 = sld [smem:[#allocation3 + %s279_s26]]  ;;  %s306_s24 = sadd.s32 9, %s2147_s16 }
  0xa6   : > { %s2137_s8 = sld [smem:[#allocation3 + %s281_s21]]  ;;  %s290_s21 = sadd.s32 1, %s2147_s16 }
  0xa7   : > { %s2141_s17 = sld [smem:[#allocation3 + %s283_s4]]  ;;  %s308_s3 = sadd.s32 10, %s2147_s16 }
  0xa8   : > { %s2143_s13 = sld [smem:[#allocation3 + %s285_s18]]  ;;  %s292_s18 = sadd.s32 2, %s2147_s16 }
  0xa9   : > { %2892 = sst [smem:[#allocation46_spill]] %s2129_s6  ;;  %s302_s6 = sadd.s32 7, %s2147_s16 }
  0xaa   : > { %2893 = sst [smem:[#allocation47_spill]] %s2131_s15  ;;  %s300_s15 = sadd.s32 6, %s2147_s16 }
  0xab   : > { %2894 = sst [smem:[#allocation48_spill]] %s2135_s10  ;;  %s310_s2 = sadd.s32 11, %s2147_s16 }
  0xac   : > { %2895 = sst [smem:[#allocation49_spill]] %s2137_s8  ;;  %s298_s8 = sadd.s32 5, %s2147_s16 }
  0xad   : > { %2896 = sst [smem:[#allocation50_spill]] %s2141_s17  ;;  %s312_s1 = sadd.s32 12, %s2147_s16 }
  0xae   : > { %2897 = sst [smem:[#allocation51_spill]] %s2143_s13  ;;  %s296_s13 = sadd.s32 4, %s2147_s16 }
  0xaf   : > { %s2150_s19 = sld [smem:[#allocation3 + %s2147_s16]]  ;;  %s314_s0 = sadd.s32 13, %s2147_s16 }
  0xb0   : > { %s2153_s4 = sld [smem:[#allocation3 + %s290_s21]]  ;;  %s338_s27 = sadd.s32 25, %s2147_s16 }
  0xb1   : > { %s2156_s26 = sld [smem:[#allocation3 + %s292_s18]] }
  0xb2   : > { %s2159_s20 = sld [smem:[#allocation3 + %s294_s23]] }
  0xb3   : > { %s2162_s17 = sld [smem:[#allocation3 + %s296_s13]] }
  0xb4   : > { %s2165_s10 = sld [smem:[#allocation3 + %s298_s8]] }
  0xb5   : > { %s2168_s21 = sld [smem:[#allocation3 + %s300_s15]] }
  0xb6   : > { %2898 = sst [smem:[#allocation52_spill]] %s2153_s4 }
  0xb7   : > { %s2171_s18 = sld [smem:[#allocation3 + %s302_s6]] }
  0xb8   : > { %s2174_s23 = sld [smem:[#allocation3 + %s304_s25]] }
  0xb9   : > { %2899 = sst [smem:[#allocation53_spill]] %s2162_s17 }
  0xba   : > { %2900 = sst [smem:[#allocation54_spill]] %s2165_s10 }
  0xbb   : > { %2901 = sst [smem:[#allocation55_spill]] %s2168_s21 }
  0xbc   : > { %s2177_s13 = sld [smem:[#allocation3 + %s306_s24]] }
  0xbd   : > { %2902 = sst [smem:[#allocation56_spill]] %s2171_s18 }
  0xbe   : > { %2903 = sst [smem:[#allocation57_spill]] %s2174_s23  ;;  %s316_s23 = sadd.s32 14, %s2147_s16 }
  0xbf   : > { %s2180_s8 = sld [smem:[#allocation3 + %s308_s3]] }
  0xc0   : > { %s2183_s15 = sld [smem:[#allocation3 + %s310_s2]] }
  0xc1   : > { %s2186_s6 = sld [smem:[#allocation3 + %s312_s1]] }
  0xc2   : > { %2904 = sst [smem:[#allocation58_spill]] %s2177_s13  ;;  %s318_s13 = sadd.s32 15, %s2147_s16 }
  0xc3   : > { %s2189_s25 = sld [smem:[#allocation3 + %s314_s0]] }
  0xc4   : > { %s2192_s24 = sld [smem:[#allocation3 + %s316_s23]] }
  0xc5   : > { %2905 = sst [smem:[#allocation59_spill]] %s2180_s8  ;;  %s320_s8 = sadd.s32 16, %s2147_s16 }
  0xc6   : > { %2906 = sst [smem:[#allocation60_spill]] %s2183_s15  ;;  %s322_s15 = sadd.s32 17, %s2147_s16 }
  0xc7   : > { %2907 = sst [smem:[#allocation61_spill]] %s2186_s6  ;;  %s324_s6 = sadd.s32 18, %s2147_s16 }
  0xc8   : > { %s2195_s3 = sld [smem:[#allocation3 + %s318_s13]] }
  0xc9   : > { %2908 = sst [smem:[#allocation62_spill]] %s2189_s25  ;;  %s326_s25 = sadd.s32 19, %s2147_s16 }
  0xca   : > { %2909 = sst [smem:[#allocation63_spill]] %s2192_s24  ;;  %s328_s24 = sadd.s32 20, %s2147_s16 }
  0xcb   : > { %s2198_s2 = sld [smem:[#allocation3 + %s320_s8]] }
  0xcc   : > { %s2201_s1 = sld [smem:[#allocation3 + %s322_s15]]  ;;  %s334_s15 = sadd.s32 23, %s2147_s16 }
  0xcd   : > { %s2204_s0 = sld [smem:[#allocation3 + %s324_s6]]  ;;  %s336_s6 = sadd.s32 24, %s2147_s16 }
  0xce   : > { %2910 = sst [smem:[#allocation64_spill]] %s2195_s3  ;;  %s330_s3 = sadd.s32 21, %s2147_s16 }
  0xcf   : > { %s2207_s23 = sld [smem:[#allocation3 + %s326_s25]] }
  0xd0   : > { %s2210_s13 = sld [smem:[#allocation3 + %s328_s24]] }
  0xd1   : > { %2911 = sst [smem:[#allocation65_spill]] %s2198_s2  ;;  %s332_s2 = sadd.s32 22, %s2147_s16 }
  0xd2   : > { %2912 = sst [smem:[#allocation66_spill]] %s2201_s1 }
  0xd3   : > { %2913 = sst [smem:[#allocation67_spill]] %s2204_s0 }
  0xd4   : > { %s2213_s8 = sld [smem:[#allocation3 + %s330_s3]] }
  0xd5   : > { %2914 = sst [smem:[#allocation68_spill]] %s2207_s23  ;;  %s340_s23 = sadd.s32 26, %s2147_s16 }
  0xd6   : > { %2915 = sst [smem:[#allocation69_spill]] %s2210_s13  ;;  %s2232_s13 = sadd.s32 256, %s2062_s28 }
  0xd7   : > { %s2216_s18 = sld [smem:[#allocation3 + %s332_s2]]  ;;  %s353_s3 = sadd.s32 5, %s2232_s13 }
  0xd8   : > { %s2219_s1 = sld [smem:[#allocation3 + %s334_s15]]  ;;  %s363_s12 = sadd.s32 10, %s2232_s13 }
  0xd9   : > { %s2222_s0 = sld [smem:[#allocation3 + %s336_s6]]  ;;  %s349_s6 = sadd.s32 3, %s2232_s13 }
  0xda   : > { %2916 = sst [smem:[#allocation70_spill]] %s2213_s8  ;;  %s361_s8 = sadd.s32 9, %s2232_s13 }
  0xdb   : > { %s2225_s25 = sld [smem:[#allocation3 + %s338_s27]]  ;;  %s345_s27 = sadd.s32 1, %s2232_s13 }
  0xdc   : > { %s2228_s21 = sld [smem:[#allocation3 + %s340_s23]]  ;;  %s347_s23 = sadd.s32 2, %s2232_s13 }
  0xdd   : > { %2917 = sst [smem:[#allocation71_spill]] %s2216_s18  ;;  %s359_s18 = sadd.s32 8, %s2232_s13 }
  0xde   : > { %2918 = sst [smem:[#allocation72_spill]] %s2219_s1  ;;  %s357_s1 = sadd.s32 7, %s2232_s13 }
  0xdf   : > { %2919 = sst [smem:[#allocation73_spill]] %s2222_s0  ;;  %s355_s0 = sadd.s32 6, %s2232_s13 }
  0xe0   : > { %s2236_s2 = sld [smem:[#allocation3 + %s2232_s13]]  ;;  %s389_s11 = sadd.s32 23, %s2232_s13 }
  0xe1   : > { %2920 = sst [smem:[#allocation74_spill]] %s2225_s25 }
  0xe2   : > { %2921 = sst [smem:[#allocation75_spill]] %s2228_s21  ;;  %s351_s21 = sadd.s32 4, %s2232_s13 }
  0xe3   : > { %s2239_s16 = sld [smem:[#allocation3 + %s345_s27]] }
  0xe4   : > { %s2242_s15 = sld [smem:[#allocation3 + %s347_s23]] }
  0xe5   : > { %s2245_s24 = sld [smem:[#allocation3 + %s349_s6]] }
  0xe6   : > { %2922 = sst [smem:[#allocation76_spill]] %s2236_s2 }
  0xe7   : > { %s2248_s25 = sld [smem:[#allocation3 + %s351_s21]] }
  0xe8   : > { %s2251_s5 = sld [smem:[#allocation3 + %s353_s3]] }
  0xe9   : > { %s2254_s27 = sld [smem:[#allocation3 + %s355_s0]] }
  0xea   : > { %s2257_s23 = sld [smem:[#allocation3 + %s357_s1]] }
  0xeb   : > { %s2260_s6 = sld [smem:[#allocation3 + %s359_s18]] }
  0xec   : > { %s2263_s21 = sld [smem:[#allocation3 + %s361_s8]] }
  0xed   : > { %2923 = sst [smem:[#allocation77_spill]] %s2248_s25 }
  0xee   : > { %2924 = sst [smem:[#allocation78_spill]] %s2251_s5  ;;  %s365_s5 = sadd.s32 11, %s2232_s13 }
  0xef   : > { %2925 = sst [smem:[#allocation79_spill]] %s2254_s27  ;;  %s367_s27 = sadd.s32 12, %s2232_s13 }
  0xf0   : > { %2926 = sst [smem:[#allocation80_spill]] %s2257_s23  ;;  %s369_s23 = sadd.s32 13, %s2232_s13 }
  0xf1   : > { %2927 = sst [smem:[#allocation81_spill]] %s2260_s6  ;;  %s371_s6 = sadd.s32 14, %s2232_s13 }
  0xf2   : > { %2928 = sst [smem:[#allocation82_spill]] %s2263_s21  ;;  %s373_s21 = sadd.s32 15, %s2232_s13 }
  0xf3   : > { %s2266_s3 = sld [smem:[#allocation3 + %s363_s12]] }
  0xf4   : > { %s2269_s0 = sld [smem:[#allocation3 + %s365_s5]] }
  0xf5   : > { %s2272_s1 = sld [smem:[#allocation3 + %s367_s27]] }
  0xf6   : > { %s2275_s18 = sld [smem:[#allocation3 + %s369_s23]] }
  0xf7   : > { %s2278_s8 = sld [smem:[#allocation3 + %s371_s6]] }
  0xf8   : > { %s2281_s12 = sld [smem:[#allocation3 + %s373_s21]]  ;;  %s385_s21 = sadd.s32 21, %s2232_s13 }
  0xf9   : > { %2929 = sst [smem:[#allocation83_spill]] %s2266_s3  ;;  %s375_s3 = sadd.s32 16, %s2232_s13 }
  0xfa   : > { %2930 = sst [smem:[#allocation84_spill]] %s2269_s0  ;;  %s377_s0 = sadd.s32 17, %s2232_s13 }
  0xfb   : > { %2931 = sst [smem:[#allocation85_spill]] %s2272_s1  ;;  %s379_s1 = sadd.s32 18, %s2232_s13 }
  0xfc   : > { %2932 = sst [smem:[#allocation86_spill]] %s2275_s18  ;;  %s381_s18 = sadd.s32 19, %s2232_s13 }
  0xfd   : > { %2933 = sst [smem:[#allocation87_spill]] %s2278_s8  ;;  %s383_s8 = sadd.s32 20, %s2232_s13 }
  0xfe   : > { %2934 = sst [smem:[#allocation88_spill]] %s2281_s12 }
  0xff   : > { %s2284_s5 = sld [smem:[#allocation3 + %s375_s3]]  ;;  %s387_s3 = sadd.s32 22, %s2232_s13 }
 0x100   : > { %s2287_s27 = sld [smem:[#allocation3 + %s377_s0]] }
 0x101   : > { %s2290_s23 = sld [smem:[#allocation3 + %s379_s1]]  ;;  %s393_s1 = sadd.s32 25, %s2232_s13 }
 0x102   : > { %s2293_s6 = sld [smem:[#allocation3 + %s381_s18]]  ;;  %s395_s18 = sadd.s32 26, %s2232_s13 }
 0x103   : > { %s2296_s10 = sld [smem:[#allocation3 + %s383_s8]]  ;;  %s2317_s8 = sadd.s32 384, %s2062_s28 }
 0x104   : > { %s2299_s12 = sld [smem:[#allocation3 + %s385_s21]]  ;;  %s404_s28 = sadd.s32 3, %s2317_s8 }
 0x105   : > { %2935 = sst [smem:[#allocation89_spill]] %s2284_s5  ;;  %s444_s9 = sadd.s32 23, %s2317_s8 }
 0x106   : > { %2936 = sst [smem:[#allocation90_spill]] %s2287_s27  ;;  %s391_s27 = sadd.s32 24, %s2232_s13 }
 0x107   : > { %2937 = sst [smem:[#allocation91_spill]] %s2290_s23  ;;  %s402_s13 = sadd.s32 2, %s2317_s8 }
 0x108   : > { %2938 = sst [smem:[#allocation92_spill]] %s2293_s6 }
 0x109   : > { %2939 = sst [smem:[#allocation93_spill]] %s2296_s10  ;;  %s416_s10 = sadd.s32 9, %s2317_s8 }
 0x10a   : > { %2940 = sst [smem:[#allocation94_spill]] %s2299_s12  ;;  %s414_s12 = sadd.s32 8, %s2317_s8 }
 0x10b   : > { %s2302_s5 = sld [smem:[#allocation3 + %s387_s3]] }
 0x10c   : > { %s2305_s0 = sld [smem:[#allocation3 + %s389_s11]] }
 0x10d   : > { %s2308_s25 = sld [smem:[#allocation3 + %s391_s27]]  ;;  %s400_s27 = sadd.s32 1, %s2317_s8 }
 0x10e   : > { %s2311_s23 = sld [smem:[#allocation3 + %s393_s1]] }
 0x10f   : > { %s2314_s6 = sld [smem:[#allocation3 + %s395_s18]]  ;;  %s406_s18 = sadd.s32 4, %s2317_s8 }
 0x110   : > { %s2320_s11 = sld [smem:[#allocation3 + %s2317_s8]] }
 0x111   : > { %2941 = sst [smem:[#allocation95_spill]] %s2302_s5  ;;  %s412_s5 = sadd.s32 7, %s2317_s8 }
 0x112   : > { %2942 = sst [smem:[#allocation96_spill]] %s2305_s0  ;;  %s410_s0 = sadd.s32 6, %s2317_s8 }
 0x113   : > { %2943 = sst [smem:[#allocation97_spill]] %s2308_s25 }
 0x114   : > { %2944 = sst [smem:[#allocation98_spill]] %s2311_s23  ;;  %s408_s23 = sadd.s32 5, %s2317_s8 }
 0x115   : > { %2945 = sst [smem:[#allocation99_spill]] %s2314_s6 }
 0x116   : > { %2946 = sst [smem:[#allocation100_spill]] %s2320_s11 }
 0x117   : > { %s2323_s21 = sld [smem:[#allocation3 + %s400_s27]] }
 0x118   : > { %s2326_s3 = sld [smem:[#allocation3 + %s402_s13]] }
 0x119   : > { %s2329_s1 = sld [smem:[#allocation3 + %s404_s28]] }
 0x11a   : > { %s2332_s6 = sld [smem:[#allocation3 + %s406_s18]] }
 0x11b   : > { %s2335_s25 = sld [smem:[#allocation3 + %s408_s23]] }
 0x11c   : > { %s2338_s27 = sld [smem:[#allocation3 + %s410_s0]] }
 0x11d   : > { %s2341_s13 = sld [smem:[#allocation3 + %s412_s5]] }
 0x11e   : > { %2947 = sst [smem:[#allocation101_spill]] %s2326_s3 }
 0x11f   : > { %2948 = sst [smem:[#allocation102_spill]] %s2329_s1 }
 0x120   : > { %2949 = sst [smem:[#allocation103_spill]] %s2332_s6  ;;  %s418_s6 = sadd.s32 10, %s2317_s8 }
 0x121   : > { %2950 = sst [smem:[#allocation104_spill]] %s2335_s25  ;;  %s420_s25 = sadd.s32 11, %s2317_s8 }
 0x122   : > { %2951 = sst [smem:[#allocation105_spill]] %s2338_s27  ;;  %s422_s27 = sadd.s32 12, %s2317_s8 }
 0x123   : > { %2952 = sst [smem:[#allocation106_spill]] %s2341_s13  ;;  %s424_s13 = sadd.s32 13, %s2317_s8 }
 0x124   : > { %s2344_s28 = sld [smem:[#allocation3 + %s414_s12]] }
 0x125   : > { %s2347_s18 = sld [smem:[#allocation3 + %s416_s10]] }
 0x126   : > { %s2350_s23 = sld [smem:[#allocation3 + %s418_s6]] }
 0x127   : > { %s2353_s0 = sld [smem:[#allocation3 + %s420_s25]] }
 0x128   : > { %s2356_s5 = sld [smem:[#allocation3 + %s422_s27]] }
 0x129   : > { %s2359_s12 = sld [smem:[#allocation3 + %s424_s13]] }
 0x12a   : > { %2953 = sst [smem:[#allocation107_spill]] %s2344_s28  ;;  %s426_s28 = sadd.s32 14, %s2317_s8 }
 0x12b   : > { %2954 = sst [smem:[#allocation108_spill]] %s2347_s18  ;;  %s428_s18 = sadd.s32 15, %s2317_s8 }
 0x12c   : > { %2955 = sst [smem:[#allocation109_spill]] %s2350_s23  ;;  %s430_s23 = sadd.s32 16, %s2317_s8 }
 0x12d   : > { %2956 = sst [smem:[#allocation110_spill]] %s2353_s0  ;;  %s432_s0 = sadd.s32 17, %s2317_s8 }
 0x12e   : > { %2957 = sst [smem:[#allocation111_spill]] %s2356_s5  ;;  %s434_s5 = sadd.s32 18, %s2317_s8 }
 0x12f   : > { %2958 = sst [smem:[#allocation112_spill]] %s2359_s12  ;;  %s436_s12 = sadd.s32 19, %s2317_s8 }
 0x130   : > { %s2362_s10 = sld [smem:[#allocation3 + %s426_s28]] }
 0x131   : > { %s2365_s6 = sld [smem:[#allocation3 + %s428_s18]]  ;;  %s440_s18 = sadd.s32 21, %s2317_s8 }
 0x132   : > { %s2368_s25 = sld [smem:[#allocation3 + %s430_s23]]  ;;  %s442_s23 = sadd.s32 22, %s2317_s8 }
 0x133   : > { %s2371_s27 = sld [smem:[#allocation3 + %s432_s0]] }
 0x134   : > { %s2374_s13 = sld [smem:[#allocation3 + %s434_s5]]  ;;  %s448_s5 = sadd.s32 25, %s2317_s8 }
 0x135   : > { %s2377_s28 = sld [smem:[#allocation3 + %s436_s12]]  ;;  %s450_s12 = sadd.s32 26, %s2317_s8 }
 0x136   : > { %2959 = sst [smem:[#allocation113_spill]] %s2362_s10  ;;  %s438_s10 = sadd.s32 20, %s2317_s8 }
 0x137   : > { %2960 = sst [smem:[#allocation114_spill]] %s2365_s6 }
 0x138   : > { %2961 = sst [smem:[#allocation115_spill]] %s2368_s25 }
 0x139   : > { %2962 = sst [smem:[#allocation116_spill]] %s2371_s27  ;;  %s446_s27 = sadd.s32 24, %s2317_s8 }
 0x13a   : > { %2963 = sst [smem:[#allocation117_spill]] %s2374_s13 }
 0x13b   : > { %2964 = sst [smem:[#allocation118_spill]] %s2377_s28 }
 0x13c   : > { %s2380_s17 = sld [smem:[#allocation3 + %s438_s10]]  ;;  %s2401_s10 = scalar_lea.vmem [#allocation12], %s2059_s14 }
 0x13d   : > { %s2383_s6 = sld [smem:[#allocation3 + %s440_s18]] }
 0x13e   : > { %s2386_s25 = sld [smem:[#allocation3 + %s442_s23]] }
 0x13f   : > { %s2389_s0 = sld [smem:[#allocation3 + %s444_s9]] }
 0x140   : > { %s2392_s1 = sld [smem:[#allocation3 + %s446_s27]] }
 0x141   : > { %s2395_s13 = sld [smem:[#allocation3 + %s448_s5]] }
 0x142   : > { %2965 = sst [smem:[#allocation119_spill]] %s2380_s17  ;;  %s2403_s17 = smov 0  }
 0x143   : > { %s2398_s28 = sld [smem:[#allocation3 + %s450_s12]] }
 0x144 LB: >> { %s2966_s2 = sld [smem:[#allocation76_spill]]  ;;  %s2969_s3 = sld [smem:[#allocation101_spill]]  ;;  %v461_v0 = vstv %s2065_s29  ;;  %v464_v1 = vstv %s2150_s19  ;;  %v476_v4 = vstv %s2069_s30  ;;  %v482_v6 = vstv %s2239_s16  ;;  %s1868_s17 = sphi %s2403_s17, %s457_s17  }
 0x145   : >> { %s2967_s11 = sld [smem:[#allocation100_spill]]  ;;  %s2971_s14 = sld [smem:[#allocation102_spill]]  ;;  %v485_v7 = vstv %s2323_s21  ;;  %v491_v8 = vstv %s2071_s22  ;;  %v494_v9 = vstv %s2156_s26  ;;  %v497_v10 = vstv %s2242_s15 }
 0x146   : >> { %s2968_s4 = sld [smem:[#allocation52_spill]]  ;;  %s2972_s9 = sld [smem:[#allocation29_spill]]  ;;  %v509_v13 = vstv %s2159_s20  ;;  %v512_v14 = vstv %s2245_s24  ;;  %v847_v20 = vlaneseq }
 0x147   : >> { %s2970_s7 = sld [smem:[#allocation28_spill]]  ;;  %s2417_s8 = sshll.u32 %s1868_s17, 3 }
 0x148   : >> { %s2428_s27 = scalar_lea.vmem [#allocation11], %s2417_s8  ;;  %s2973_s18 = sld [smem:[#allocation53_spill]] }
 0x149   : >> { %v460_v16 = vld [vmem:[%s2428_s27] sm:$0xff]  ;;  %s2974_s23 = sld [smem:[#allocation77_spill]]  ;;  %s2975_s5 = sld [smem:[#allocation103_spill]] }
 0x14a   : >> { %v467_v2 = vstv %s2966_s2  ;;  %v500_v11 = vstv %s2969_s3  ;;  %v1495_v17 = vld [vmem:[%s2428_s27 + $0x60] sm:$0xff]  ;;  %v462_v21 = vmul.f32 %v461_v0, %v460_v16  ;;  %v465_v22 = vmul.f32 %v464_v1, %v460_v16  ;;  %s2976_s12 = sld [smem:[#allocation30_spill]]  ;;  %s2979_s2 = sld [smem:[#allocation104_spill]] }
 0x14b   : >> { %v470_v3 = vstv %s2967_s11  ;;  %v515_v15 = vstv %s2971_s14  ;;  %v1497_v18 = vld [vmem:[%s2428_s27 + $0xc0] sm:$0xff]  ;;  %v468_v23 = vmul.f32 %v467_v2, %v460_v16  ;;  %v477_v25 = vmul.f32 %v1495_v17, %v476_v4  ;;  %s2977_s14 = sld [smem:[#allocation54_spill]]  ;;  %s2980_s3 = sld [smem:[#allocation31_spill]] }
 0x14c   : >> { %v479_v5 = vstv %s2968_s4  ;;  %v520_v19 = vstv %s2972_s9  ;;  %v471_v24 = vmul.f32 %v470_v3, %v460_v16  ;;  %v483_v27 = vmul.f32 %v1495_v17, %v482_v6  ;;  %v1499_v29 = vld [vmem:[%s2428_s27 + $0x1] sm:$0xff]  ;;  %s2978_s9 = sld [smem:[#allocation78_spill]]  ;;  %s2981_s4 = sld [smem:[#allocation55_spill]] }
 0x14d   : >> { %v506_v12 = vstv %s2970_s7  ;;  %v480_v26 = vmul.f32 %v1495_v17, %v479_v5  ;;  %v486_v28 = vmul.f32 %v1495_v17, %v485_v7  ;;  %v492_v30 = vmul.f32 %v1497_v18, %v491_v8  ;;  %v1501_v38 = vld [vmem:[%s2428_s27 + $0x61] sm:$0xff]  ;;  %s2985_s7 = sld [smem:[#allocation56_spill]]  ;;  %s2989_s11 = sld [smem:[#allocation57_spill]] }
 0x14e   : >> { %v495_v31 = vmul.f32 %v1497_v18, %v494_v9  ;;  %v498_v32 = vmul.f32 %v1497_v18, %v497_v10  ;;  %v501_v33 = vmul.f32 %v1497_v18, %v500_v11  ;;  %v478_v34 = vadd.f32 %v477_v25, %v462_v21  ;;  %v1503_v51 = vld [vmem:[%s2428_s27 + $0xc1] sm:$0xff]  ;;  %s457_s17 = sadd.s32 1, %s1868_s17  }
 0x14f   : >> { %v481_v35 = vadd.f32 %v480_v26, %v465_v22  ;;  %v484_v36 = vadd.f32 %v483_v27, %v468_v23  ;;  %v487_v37 = vadd.f32 %v486_v28, %v471_v24  ;;  %v507_v39 = vmul.f32 %v1499_v29, %v506_v12  ;;  %v1505_v0 = vld [vmem:[%s2428_s27 + $0x2] sm:$0xff]  ;;  %p454_p3 = scmp.ge.s32.totalorder %s457_s17, 3  }
 0x150   : >> { %v510_v40 = vmul.f32 %v1499_v29, %v509_v13  ;;  %v513_v41 = vmul.f32 %v1499_v29, %v512_v14  ;;  %v516_v42 = vmul.f32 %v1499_v29, %v515_v15  ;;  %v493_v43 = vadd.f32 %v492_v30, %v478_v34  ;;  %v1507_v17 = vld [vmem:[%s2428_s27 + $0x62] sm:$0xff]  ;;  %s1877_s17 = smov (%p454_p3), 1   ;;  %s1878_s29 = smov (%p454_p3), 127  }
 0x151   : >> { %v496_v44 = vadd.f32 %v495_v31, %v481_v35  ;;  %v499_v45 = vadd.f32 %v498_v32, %v484_v36  ;;  %v502_v46 = vadd.f32 %v501_v33, %v487_v37  ;;  %v521_v47 = vmul.f32 %v1501_v38, %v520_v19  ;;  %v1509_v27 = vld [vmem:[%s2428_s27 + $0xc2] sm:$0xff]  ;;  %s3058_s30 = sld [smem:[#allocation27_spill]] (%p454_p3) }
 0x152   : >> { %v523_v48 = vstv %s2973_s18  ;;  %v526_v49 = vstv %s2974_s23  ;;  %v529_v50 = vstv %s2975_s5  ;;  %v508_v52 = vadd.f32 %v507_v39, %v493_v43  ;;  %s2982_s18 = sld [smem:[#allocation79_spill]]  ;;  %s2983_s23 = sld [smem:[#allocation105_spill]] }
 0x153   : >> { %v511_v53 = vadd.f32 %v510_v40, %v496_v44  ;;  %v514_v54 = vadd.f32 %v513_v41, %v499_v45  ;;  %v517_v55 = vadd.f32 %v516_v42, %v502_v46  ;;  %v524_v56 = vmul.f32 %v1501_v38, %v523_v48  ;;  %s2984_s5 = sld [smem:[#allocation32_spill]]  ;;  %v1511_v44 = vld [vmem:[%s2428_s27 + $0x20] sm:$0xff] }
 0x154   : >> { %v527_v57 = vmul.f32 %v1501_v38, %v526_v49  ;;  %v530_v58 = vmul.f32 %v1501_v38, %v529_v50  ;;  %v534_v59 = vstv %s2976_s12  ;;  %v522_v60 = vadd.f32 %v521_v47, %v508_v52  ;;  %s2986_s12 = sld [smem:[#allocation80_spill]] }
 0x155   : >> { %v535_v61 = vmul.f32 %v1503_v51, %v534_v59  ;;  %v537_v62 = vstv %s2977_s14  ;;  %v540_v63 = vstv %s2978_s9  ;;  %v525_v1 = vadd.f32 %v524_v56, %v511_v53  ;;  %s2987_s14 = sld [smem:[#allocation106_spill]]  ;;  %s2988_s9 = sld [smem:[#allocation33_spill]]  ;;  %v1513_v53 = vld [vmem:[%s2428_s27 + $0x80] sm:$0xff] }
 0x156   : >> { %v528_v2 = vadd.f32 %v527_v57, %v514_v54  ;;  %v531_v3 = vadd.f32 %v530_v58, %v517_v55  ;;  %v538_v4 = vmul.f32 %v1503_v51, %v537_v62  ;;  %v541_v6 = vmul.f32 %v1503_v51, %v540_v63 }
 0x157   : >> { %v536_v5 = vadd.f32 %v535_v61, %v522_v60  ;;  %v543_v7 = vstv %s2979_s2  ;;  %v549_v8 = vstv %s2980_s3  ;;  %v552_v12 = vstv %s2981_s4  ;;  %s2990_s2 = sld [smem:[#allocation81_spill]]  ;;  %s2991_s3 = sld [smem:[#allocation107_spill]] }
 0x158   : >> { %v539_v9 = vadd.f32 %v538_v4, %v525_v1  ;;  %v544_v10 = vmul.f32 %v1503_v51, %v543_v7  ;;  %v550_v11 = vmul.f32 %v1505_v0, %v549_v8  ;;  %v542_v13 = vadd.f32 %v541_v6, %v528_v2  ;;  %s2992_s4 = sld [smem:[#allocation34_spill]]  ;;  %v1515_v6 = vld [vmem:[%s2428_s27 + $0xe0] sm:$0xff]  ;;  %s3059_s20 = sadd.s32 (%p454_p3), 1, %s3058_s30 }
 0x159   : >> { %v553_v14 = vmul.f32 %v1505_v0, %v552_v12  ;;  %v555_v15 = vstv %s2982_s18  ;;  %v558_v16 = vstv %s2983_s23  ;;  %v563_v24 = vstv %s2984_s5  ;;  %s2993_s18 = sld [smem:[#allocation58_spill]]  ;;  %s2996_s5 = sld [smem:[#allocation35_spill]] }
 0x15a   : >> { %v545_v18 = vadd.f32 %v544_v10, %v531_v3  ;;  %v551_v19 = vadd.f32 %v550_v11, %v536_v5  ;;  %v556_v21 = vmul.f32 %v1505_v0, %v555_v15  ;;  %v559_v22 = vmul.f32 %v1505_v0, %v558_v16  ;;  %s2994_s23 = sld [smem:[#allocation82_spill]]  ;;  %v1517_v15 = vld [vmem:[%s2428_s27 + $0x21] sm:$0xff]  ;;  %s3060_s24 = smov (%p454_p3), %s3059_s20 }
 0x15b   : >> { %v554_v23 = vadd.f32 %v553_v14, %v539_v9  ;;  %v566_v25 = vstv %s2985_s7  ;;  %v569_v26 = vstv %s2986_s12  ;;  %v564_v30 = vmul.f32 %v1507_v17, %v563_v24  ;;  %s2995_s7 = sld [smem:[#allocation108_spill]]  ;;  %s2997_s12 = sld [smem:[#allocation59_spill]] }
 0x15c   : >> { %v557_v28 = vadd.f32 %v556_v21, %v542_v13  ;;  %v560_v29 = vadd.f32 %v559_v22, %v545_v18  ;;  %v567_v31 = vmul.f32 %v1507_v17, %v566_v25  ;;  %v570_v32 = vmul.f32 %v1507_v17, %v569_v26  ;;  %s924_s22 = sld [smem:[#allocation8 + %s3058_s30]] (%p454_p3)  ;;  %s3061_s15 = sadd.s32 (%p454_p3), 2, %s3058_s30 }
 0x15d   : >> { %v572_v33 = vstv %s2987_s14  ;;  %v577_v34 = vstv %s2988_s9  ;;  %v580_v35 = vstv %s2989_s11  ;;  %v565_v36 = vadd.f32 %v564_v30, %v551_v19  ;;  %s2998_s11 = sld [smem:[#allocation83_spill]]  ;;  %s2999_s14 = sld [smem:[#allocation109_spill]] }
 0x15e   : >> { %v568_v37 = vadd.f32 %v567_v31, %v554_v23  ;;  %v573_v38 = vmul.f32 %v1507_v17, %v572_v33  ;;  %v578_v39 = vmul.f32 %v1509_v27, %v577_v34  ;;  %v571_v40 = vadd.f32 %v570_v32, %v557_v28  ;;  %s3000_s9 = sld [smem:[#allocation36_spill]]  ;;  %v1519_v33 = vld [vmem:[%s2428_s27 + $0x81] sm:$0xff] }
 0x15f   : >> { %v581_v41 = vmul.f32 %v1509_v27, %v580_v35  ;;  %v583_v42 = vstv %s2990_s2  ;;  %v586_v43 = vstv %s2991_s3  ;;  %v592_v50 = vstv %s2992_s4  ;;  %s3001_s2 = sld [smem:[#allocation60_spill]]  ;;  %s3003_s4 = sld [smem:[#allocation110_spill]] }
 0x160   : >> { %v574_v45 = vadd.f32 %v573_v38, %v560_v29  ;;  %v579_v46 = vadd.f32 %v578_v39, %v565_v36  ;;  %v584_v47 = vmul.f32 %v1509_v27, %v583_v42  ;;  %v587_v48 = vmul.f32 %v1509_v27, %v586_v43  ;;  %s3002_s3 = sld [smem:[#allocation84_spill]]  ;;  %v1521_v42 = vld [vmem:[%s2428_s27 + $0xe1] sm:$0xff] }
 0x161   : >> { %v582_v49 = vadd.f32 %v581_v41, %v568_v37  ;;  %v595_v51 = vstv %s2993_s18  ;;  %v598_v52 = vstv %s2994_s23  ;;  %v593_v56 = vmul.f32 %v1511_v44, %v592_v50  ;;  %s3004_s18 = sld [smem:[#allocation37_spill]] }
 0x162   : >> { %v585_v54 = vadd.f32 %v584_v47, %v571_v40  ;;  %v588_v55 = vadd.f32 %v587_v48, %v574_v45  ;;  %v596_v57 = vmul.f32 %v1511_v44, %v595_v51  ;;  %v599_v58 = vmul.f32 %v1511_v44, %v598_v52  ;;  %s3005_s23 = sld [smem:[#allocation61_spill]] }
 0x163   : >> { %v601_v59 = vstv %s2995_s7  ;;  %v607_v60 = vstv %s2996_s5  ;;  %v610_v61 = vstv %s2997_s12  ;;  %v594_v62 = vadd.f32 %v593_v56, %v579_v46  ;;  %s3006_s7 = sld [smem:[#allocation85_spill]]  ;;  %s3007_s5 = sld [smem:[#allocation111_spill]] }
 0x164   : >> { %v597_v63 = vadd.f32 %v596_v57, %v582_v49  ;;  %v602_v0 = vmul.f32 %v1511_v44, %v601_v59  ;;  %v608_v1 = vmul.f32 %v1513_v53, %v607_v60  ;;  %v600_v2 = vadd.f32 %v599_v58, %v585_v54  ;;  %s3008_s12 = sld [smem:[#allocation38_spill]]  ;;  %v1523_v59 = vld [vmem:[%s2428_s27 + $0x22] sm:$0xff] }
 0x165   : >> { %v611_v3 = vmul.f32 %v1513_v53, %v610_v61  ;;  %v613_v4 = vstv %s2998_s11  ;;  %v616_v5 = vstv %s2999_s14  ;;  %v622_v12 = vstv %s3000_s9  ;;  %s3009_s11 = sld [smem:[#allocation62_spill]]  ;;  %s3011_s9 = sld [smem:[#allocation112_spill]] }
 0x166   : >> { %v603_v7 = vadd.f32 %v602_v0, %v588_v55  ;;  %v609_v8 = vadd.f32 %v608_v1, %v594_v62  ;;  %v614_v9 = vmul.f32 %v1513_v53, %v613_v4  ;;  %v617_v10 = vmul.f32 %v1513_v53, %v616_v5  ;;  %s3010_s14 = sld [smem:[#allocation86_spill]]  ;;  %v1525_v4 = vld [vmem:[%s2428_s27 + $0x82] sm:$0xff] }
 0x167   : >> { %v612_v11 = vadd.f32 %v611_v3, %v597_v63  ;;  %v625_v13 = vstv %s3001_s2  ;;  %v628_v14 = vstv %s3002_s3  ;;  %v623_v18 = vmul.f32 %v1515_v6, %v622_v12  ;;  %s3012_s2 = sld [smem:[#allocation39_spill]] }
 0x168   : >> { %v615_v16 = vadd.f32 %v614_v9, %v600_v2  ;;  %v618_v17 = vadd.f32 %v617_v10, %v603_v7  ;;  %v626_v19 = vmul.f32 %v1515_v6, %v625_v13  ;;  %v629_v21 = vmul.f32 %v1515_v6, %v628_v14  ;;  %s3013_s3 = sld [smem:[#allocation63_spill]] }
 0x169   : >> { %v631_v22 = vstv %s3003_s4  ;;  %v636_v23 = vstv %s3004_s18  ;;  %v639_v24 = vstv %s3005_s23  ;;  %v624_v25 = vadd.f32 %v623_v18, %v609_v8  ;;  %s3014_s4 = sld [smem:[#allocation87_spill]]  ;;  %s3015_s18 = sld [smem:[#allocation113_spill]] }
 0x16a   : >> { %v627_v26 = vadd.f32 %v626_v19, %v612_v11  ;;  %v632_v27 = vmul.f32 %v1515_v6, %v631_v22  ;;  %v637_v28 = vmul.f32 %v1517_v15, %v636_v23  ;;  %v630_v29 = vadd.f32 %v629_v21, %v615_v16  ;;  %s3016_s23 = sld [smem:[#allocation40_spill]]  ;;  %v1527_v22 = vld [vmem:[%s2428_s27 + $0xe2] sm:$0xff] }
 0x16b   : >> { %v640_v30 = vmul.f32 %v1517_v15, %v639_v24  ;;  %v642_v31 = vstv %s3006_s7  ;;  %v645_v32 = vstv %s3007_s5  ;;  %v650_v39 = vstv %s3008_s12  ;;  %s3017_s7 = sld [smem:[#allocation64_spill]]  ;;  %s3019_s12 = sld [smem:[#allocation114_spill]] }
 0x16c   : >> { %v633_v34 = vadd.f32 %v632_v27, %v618_v17  ;;  %v638_v35 = vadd.f32 %v637_v28, %v624_v25  ;;  %v643_v36 = vmul.f32 %v1517_v15, %v642_v31  ;;  %v646_v37 = vmul.f32 %v1517_v15, %v645_v32  ;;  %s3018_s5 = sld [smem:[#allocation88_spill]]  ;;  %v1529_v31 = vld [vmem:[%s2428_s27 + $0x40] sm:$0xff] }
 0x16d   : >> { %v641_v38 = vadd.f32 %v640_v30, %v627_v26  ;;  %v653_v40 = vstv %s3009_s11  ;;  %v656_v41 = vstv %s3010_s14  ;;  %v651_v45 = vmul.f32 %v1519_v33, %v650_v39  ;;  %s3020_s11 = sld [smem:[#allocation41_spill]] }
 0x16e   : >> { %v644_v43 = vadd.f32 %v643_v36, %v630_v29  ;;  %v647_v44 = vadd.f32 %v646_v37, %v633_v34  ;;  %v654_v46 = vmul.f32 %v1519_v33, %v653_v40  ;;  %v657_v47 = vmul.f32 %v1519_v33, %v656_v41  ;;  %s3021_s14 = sld [smem:[#allocation65_spill]] }
 0x16f   : >> { %v659_v48 = vstv %s3011_s9  ;;  %v664_v49 = vstv %s3012_s2  ;;  %v667_v50 = vstv %s3013_s3  ;;  %v652_v51 = vadd.f32 %v651_v45, %v638_v35  ;;  %s3022_s9 = sld [smem:[#allocation89_spill]]  ;;  %s3023_s2 = sld [smem:[#allocation115_spill]] }
 0x170   : >> { %v655_v52 = vadd.f32 %v654_v46, %v641_v38  ;;  %v660_v53 = vmul.f32 %v1519_v33, %v659_v48  ;;  %v665_v54 = vmul.f32 %v1521_v42, %v664_v49  ;;  %v658_v55 = vadd.f32 %v657_v47, %v644_v43  ;;  %s3024_s3 = sld [smem:[#allocation42_spill]]  ;;  %v1531_v48 = vld [vmem:[%s2428_s27 + $0xa0] sm:$0xff] }
 0x171   : >> { %v668_v56 = vmul.f32 %v1521_v42, %v667_v50  ;;  %v670_v57 = vstv %s3014_s4  ;;  %v673_v58 = vstv %s3015_s18  ;;  %v678_v1 = vstv %s3016_s23  ;;  %s3025_s4 = sld [smem:[#allocation66_spill]]  ;;  %s3027_s23 = sld [smem:[#allocation116_spill]] }
 0x172   : >> { %v661_v60 = vadd.f32 %v660_v53, %v647_v44  ;;  %v666_v61 = vadd.f32 %v665_v54, %v652_v51  ;;  %v671_v62 = vmul.f32 %v1521_v42, %v670_v57  ;;  %v674_v63 = vmul.f32 %v1521_v42, %v673_v58  ;;  %s3026_s18 = sld [smem:[#allocation90_spill]]  ;;  %v1533_v57 = vld [vmem:[%s2428_s27 + $0x100] sm:$0xff] }
 0x173   : >> { %v669_v0 = vadd.f32 %v668_v56, %v655_v52  ;;  %v681_v2 = vstv %s3017_s7  ;;  %v684_v3 = vstv %s3018_s5  ;;  %v679_v7 = vmul.f32 %v1523_v59, %v678_v1  ;;  %s3028_s7 = sld [smem:[#allocation43_spill]] }
 0x174   : >> { %v672_v5 = vadd.f32 %v671_v62, %v658_v55  ;;  %v675_v6 = vadd.f32 %v674_v63, %v661_v60  ;;  %v682_v8 = vmul.f32 %v1523_v59, %v681_v2  ;;  %v685_v9 = vmul.f32 %v1523_v59, %v684_v3  ;;  %s3029_s5 = sld [smem:[#allocation67_spill]] }
 0x175   : >> { %v687_v10 = vstv %s3019_s12  ;;  %v692_v11 = vstv %s3020_s11  ;;  %v695_v12 = vstv %s3021_s14  ;;  %v680_v13 = vadd.f32 %v679_v7, %v666_v61  ;;  %s3030_s12 = sld [smem:[#allocation91_spill]]  ;;  %s3031_s11 = sld [smem:[#allocation117_spill]] }
 0x176   : >> { %v683_v14 = vadd.f32 %v682_v8, %v669_v0  ;;  %v688_v15 = vmul.f32 %v1523_v59, %v687_v10  ;;  %v693_v16 = vmul.f32 %v1525_v4, %v692_v11  ;;  %v686_v17 = vadd.f32 %v685_v9, %v672_v5  ;;  %s3032_s14 = sld [smem:[#allocation44_spill]]  ;;  %v1535_v10 = vld [vmem:[%s2428_s27 + $0x41] sm:$0xff] }
 0x177   : >> { %v696_v18 = vmul.f32 %v1525_v4, %v695_v12  ;;  %v698_v19 = vstv %s3022_s9  ;;  %v701_v21 = vstv %s3023_s2  ;;  %v706_v28 = vstv %s3024_s3  ;;  %s3033_s9 = sld [smem:[#allocation68_spill]]  ;;  %s3035_s3 = sld [smem:[#allocation118_spill]] }
 0x178   : >> { %v689_v23 = vadd.f32 %v688_v15, %v675_v6  ;;  %v694_v24 = vadd.f32 %v693_v16, %v680_v13  ;;  %v699_v25 = vmul.f32 %v1525_v4, %v698_v19  ;;  %v702_v26 = vmul.f32 %v1525_v4, %v701_v21  ;;  %s3034_s2 = sld [smem:[#allocation92_spill]]  ;;  %v1537_v19 = vld [vmem:[%s2428_s27 + $0xa1] sm:$0xff] }
 0x179   : >> { %v697_v27 = vadd.f32 %v696_v18, %v683_v14  ;;  %v709_v29 = vstv %s3025_s4  ;;  %v712_v30 = vstv %s3026_s18  ;;  %v707_v34 = vmul.f32 %v1527_v22, %v706_v28  ;;  %s3036_s4 = sld [smem:[#allocation45_spill]] }
 0x17a   : >> { %v700_v32 = vadd.f32 %v699_v25, %v686_v17  ;;  %v703_v33 = vadd.f32 %v702_v26, %v689_v23  ;;  %v710_v35 = vmul.f32 %v1527_v22, %v709_v29  ;;  %v713_v36 = vmul.f32 %v1527_v22, %v712_v30  ;;  %s3037_s18 = sld [smem:[#allocation69_spill]] }
 0x17b   : >> { %v715_v37 = vstv %s3027_s23  ;;  %v721_v38 = vstv %s3028_s7  ;;  %v724_v39 = vstv %s3029_s5  ;;  %v708_v40 = vadd.f32 %v707_v34, %v694_v24  ;;  %s3038_s23 = sld [smem:[#allocation93_spill]]  ;;  %s3039_s7 = sld [smem:[#allocation119_spill]] }
 0x17c   : >> { %v711_v41 = vadd.f32 %v710_v35, %v697_v27  ;;  %v716_v42 = vmul.f32 %v1527_v22, %v715_v37  ;;  %v722_v43 = vmul.f32 %v1529_v31, %v721_v38  ;;  %v714_v44 = vadd.f32 %v713_v36, %v700_v32  ;;  %s3040_s5 = sld [smem:[#allocation46_spill]]  ;;  %v1539_v37 = vld [vmem:[%s2428_s27 + $0x101] sm:$0xff] }
 0x17d   : >> { %v725_v45 = vmul.f32 %v1529_v31, %v724_v39  ;;  %v727_v46 = vstv %s3030_s12  ;;  %v730_v47 = vstv %s3031_s11  ;;  %v736_v54 = vstv %s3032_s14  ;;  %s3041_s12 = sld [smem:[#allocation70_spill]]  ;;  %s3043_s14 = sld [smem:[#allocation47_spill]] }
 0x17e   : >> { %v717_v49 = vadd.f32 %v716_v42, %v703_v33  ;;  %v723_v50 = vadd.f32 %v722_v43, %v708_v40  ;;  %v728_v51 = vmul.f32 %v1529_v31, %v727_v46  ;;  %v731_v52 = vmul.f32 %v1529_v31, %v730_v47  ;;  %s3042_s11 = sld [smem:[#allocation94_spill]]  ;;  %v1541_v46 = vld [vmem:[%s2428_s27 + $0x42] sm:$0xff] }
 0x17f   : >> { %v726_v53 = vadd.f32 %v725_v45, %v711_v41  ;;  %v739_v55 = vstv %s3033_s9  ;;  %v742_v56 = vstv %s3034_s2  ;;  %v737_v60 = vmul.f32 %v1531_v48, %v736_v54  ;;  %s3044_s9 = sld [smem:[#allocation71_spill]] }
 0x180   : >> { %v729_v58 = vadd.f32 %v728_v51, %v714_v44  ;;  %v732_v59 = vadd.f32 %v731_v52, %v717_v49  ;;  %v740_v61 = vmul.f32 %v1531_v48, %v739_v55  ;;  %v743_v62 = vmul.f32 %v1531_v48, %v742_v56  ;;  %s3045_s2 = sld [smem:[#allocation95_spill]] }
 0x181   : >> { %v745_v63 = vstv %s3035_s3  ;;  %v751_v0 = vstv %s3036_s4  ;;  %v754_v1 = vstv %s3037_s18  ;;  %v738_v2 = vadd.f32 %v737_v60, %v723_v50  ;;  %s3046_s3 = sld [smem:[#allocation48_spill]] }
 0x182   : >> { %v741_v3 = vadd.f32 %v740_v61, %v726_v53  ;;  %v746_v4 = vmul.f32 %v1531_v48, %v745_v63  ;;  %v752_v5 = vmul.f32 %v1533_v57, %v751_v0  ;;  %v744_v6 = vadd.f32 %v743_v62, %v729_v58  ;;  %s3047_s4 = sld [smem:[#allocation72_spill]]  ;;  %v1543_v63 = vld [vmem:[%s2428_s27 + $0xa2] sm:$0xff] }
 0x183   : >> { %v755_v7 = vmul.f32 %v1533_v57, %v754_v1  ;;  %v757_v8 = vstv %s3038_s23  ;;  %v760_v9 = vstv %s3039_s7  ;;  %v765_v16 = vstv %s3040_s5  ;;  %s3048_s18 = sld [smem:[#allocation96_spill]]  ;;  %s3049_s23 = sld [smem:[#allocation49_spill]] }
 0x184   : >> { %v747_v11 = vadd.f32 %v746_v4, %v732_v59  ;;  %v753_v12 = vadd.f32 %v752_v5, %v738_v2  ;;  %v758_v13 = vmul.f32 %v1533_v57, %v757_v8  ;;  %v761_v14 = vmul.f32 %v1533_v57, %v760_v9  ;;  %s3050_s7 = sld [smem:[#allocation73_spill]]  ;;  %v1545_v8 = vld [vmem:[%s2428_s27 + $0x102] sm:$0xff]  ;;  %s857_s27 = scalar_lea.vmem [#allocation2], %s2417_s8 }
 0x185   : >> { %v756_v15 = vadd.f32 %v755_v7, %v741_v3  ;;  %v768_v17 = vstv %s3041_s12  ;;  %v771_v18 = vstv %s3042_s11  ;;  %v766_v23 = vmul.f32 %v1535_v10, %v765_v16  ;;  %s3051_s5 = sld [smem:[#allocation97_spill]]  ;;  %s3052_s12 = sld [smem:[#allocation50_spill]] }
 0x186   : >> { %v759_v21 = vadd.f32 %v758_v13, %v744_v6  ;;  %v762_v22 = vadd.f32 %v761_v14, %v747_v11  ;;  %v769_v24 = vmul.f32 %v1535_v10, %v768_v17  ;;  %v772_v25 = vmul.f32 %v1535_v10, %v771_v18  ;;  %s3053_s11 = sld [smem:[#allocation74_spill]] }
 0x187   : >> { %v774_v26 = vstv %s2383_s6  ;;  %v779_v27 = vstv %s3043_s14  ;;  %v782_v28 = vstv %s3044_s9  ;;  %v767_v29 = vadd.f32 %v766_v23, %v753_v12  ;;  %s3054_s14 = sld [smem:[#allocation98_spill]]  ;;  %s3055_s9 = sld [smem:[#allocation51_spill]] }
 0x188   : >> { %v770_v30 = vadd.f32 %v769_v24, %v756_v15  ;;  %v775_v31 = vmul.f32 %v1535_v10, %v774_v26  ;;  %v780_v32 = vmul.f32 %v1537_v19, %v779_v27  ;;  %v773_v33 = vadd.f32 %v772_v25, %v759_v21  ;;  %s1022_s19 = sld [smem:[#allocation8 + %s3059_s20]] (%p454_p3) }
 0x189   : >> { %v783_v34 = vmul.f32 %v1537_v19, %v782_v28  ;;  %v785_v35 = vstv %s3045_s2  ;;  %v788_v36 = vstv %s2386_s25  ;;  %v793_v43 = vstv %s3046_s3  ;;  %s3056_s2 = sld [smem:[#allocation75_spill]]  ;;  %s3063_s25 = sadd.s32 (%p454_p3), 3, %s3058_s30 }
 0x18a   : >> { %v776_v38 = vadd.f32 %v775_v31, %v762_v22  ;;  %v781_v39 = vadd.f32 %v780_v32, %v767_v29  ;;  %v786_v40 = vmul.f32 %v1537_v19, %v785_v35  ;;  %v789_v41 = vmul.f32 %v1537_v19, %v788_v36  ;;  %s3057_s3 = sld [smem:[#allocation99_spill]] }
 0x18b   : >> { %v784_v42 = vadd.f32 %v783_v34, %v770_v30  ;;  %v796_v44 = vstv %s3047_s4  ;;  %v799_v45 = vstv %s3048_s18  ;;  %v794_v49 = vmul.f32 %v1539_v37, %v793_v43  ;;  %s927_s26 = sld [smem:[#allocation9 + %s3058_s30]] (%p454_p3) }
 0x18c   : >> { %v787_v47 = vadd.f32 %v786_v40, %v773_v33  ;;  %v790_v48 = vadd.f32 %v789_v41, %v776_v38  ;;  %v797_v50 = vmul.f32 %v1539_v37, %v796_v44  ;;  %v800_v51 = vmul.f32 %v1539_v37, %v799_v45  ;;  %s1025_s16 = sld [smem:[#allocation9 + %s3060_s24]] (%p454_p3) }
 0x18d   : >> { %v802_v52 = vstv %s2389_s0  ;;  %v807_v53 = vstv %s3049_s23  ;;  %v810_v54 = vstv %s3050_s7  ;;  %v795_v55 = vadd.f32 %v794_v49, %v781_v39  ;;  %s1118_s21 = sld [smem:[#allocation8 + %s3061_s15]] (%p454_p3)  ;;  %s1284_s7 = sshll.u32 (%p454_p3), %s2401_s10, 4  ;;  %s2770_s7 = int_to_ptr.vmem [resolvable:$true] %s1284_s7 }
 0x18e   : >> { %v798_v56 = vadd.f32 %v797_v50, %v784_v42  ;;  %v803_v57 = vmul.f32 %v1539_v37, %v802_v52  ;;  %v808_v58 = vmul.f32 %v1541_v46, %v807_v53  ;;  %v801_v59 = vadd.f32 %v800_v51, %v787_v47  ;;  %s3066_s4 = sld [smem:[#allocation19_spill]] (%p454_p3)  ;;  %s3067_s18 = sld [smem:[#allocation25_spill]] (%p454_p3) }
 0x18f   : >> { %v811_v60 = vmul.f32 %v1541_v46, %v810_v54  ;;  %v813_v61 = vstv %s3051_s5  ;;  %v816_v62 = vstv %s2392_s1  ;;  %v821_v5 = vstv %s3052_s12  ;;  %s3062_s1 = smov (%p454_p3), %s3061_s15 }
 0x190   : >> { %v804_v0 = vadd.f32 %v803_v57, %v790_v48  ;;  %v809_v1 = vadd.f32 %v808_v58, %v795_v55  ;;  %v814_v2 = vmul.f32 %v1541_v46, %v813_v61  ;;  %v817_v3 = vmul.f32 %v1541_v46, %v816_v62  ;;  %s1121_s6 = sld [smem:[#allocation9 + %s3062_s1]] (%p454_p3) }
 0x191   : >> { %v812_v4 = vadd.f32 %v811_v60, %v798_v56  ;;  %v824_v6 = vstv %s3053_s11  ;;  %v827_v7 = vstv %s3054_s14  ;;  %v822_v11 = vmul.f32 %v1543_v63, %v821_v5  ;;  %s3068_s11 = sld [smem:[#allocation124_spill]] (%p454_p3) }
 0x192   : >> { %v815_v9 = vadd.f32 %v814_v2, %v801_v59  ;;  %v818_v10 = vadd.f32 %v817_v3, %v804_v0  ;;  %v825_v12 = vmul.f32 %v1543_v63, %v824_v6  ;;  %v828_v13 = vmul.f32 %v1543_v63, %v827_v7 }
 0x193   : >> { %v830_v14 = vstv %s2395_s13  ;;  %v835_v15 = vstv %s3055_s9  ;;  %v838_v16 = vstv %s3056_s2  ;;  %v823_v17 = vadd.f32 %v822_v11, %v809_v1  ;;  %s1214_s13 = sld [smem:[#allocation8 + %s3063_s25]] (%p454_p3) }
 0x194   : >> { %v826_v18 = vadd.f32 %v825_v12, %v812_v4  ;;  %v831_v19 = vmul.f32 %v1543_v63, %v830_v14  ;;  %v836_v21 = vmul.f32 %v1545_v8, %v835_v15  ;;  %v829_v22 = vadd.f32 %v828_v13, %v815_v9  ;;  %s3069_s9 = sand.u32 (%p454_p3), 1, %s3066_s4   ;;  %p3070_p7 = scmp.ne.s32.totalorder (%p454_p3), %s3067_s18, 0 }
 0x195   : >> { %v839_v23 = vmul.f32 %v1545_v8, %v838_v16  ;;  %v841_v24 = vstv %s3057_s3  ;;  %v844_v25 = vstv %s2398_s28  ;;  %v2550_v29 = vshrl.u32 %v847_v20, 7  ;;  %s3064_s28 = smov (%p454_p3), %s3063_s25  ;;  %s2778_s2 = scalar_lea.sflag (%p454_p3), [#allocation5], %s3069_s9 }
 0x196   : >> { %v832_v26 = vadd.f32 %v831_v19, %v818_v10  ;;  %v842_v27 = vmul.f32 %v1545_v8, %v841_v24  ;;  %v845_v28 = vmul.f32 %v1545_v8, %v844_v25  ;;  %v849_v30 = vstv %s2417_s8  ;;  %s1217_s0 = sld [smem:[#allocation9 + %s3064_s28]] (%p454_p3)  ;;  %s1782_s3 = scalar_lea.vmem (%p454_p3), %s2770_s7, 1024 }
 0x197   : >> { %v2554_v31 = vand.u32 127, %v847_v20  ;;  %v837_v32 = vadd.f32 %v836_v21, %v823_v17  ;;  %v840_v33 = vadd.f32 %v839_v23, %v826_v18  ;;  %v850_v36 = vadd.s32 %v849_v30, %v2550_v29  ;;  %456 = sbr.rel (!%p454_p3) target bundleno = 324 (0x144), region = 139  ;;  %s3065_s8 = sld [smem:[#allocation22_spill]] (%p454_p3) }
 0x198   : >> { %v843_v34 = vadd.f32 %v842_v27, %v829_v22  ;;  %v846_v35 = vadd.f32 %v845_v28, %v832_v26  ;;  %v1876_v0 = vmov (%p454_p3), -1e+30   ;;  %vm967_vm3 = vcmp.lt.s32.totalorder (%p454_p3), %v2550_v29, 7  ;;  %p1783_p4 = scmp.ne.s32.totalorder (%p454_p3), %s2770_s7, %s1782_s3 }
 0x199   : >> { %vm854_vm0 = vcmp.lt.s32.totalorder %v2554_v31, 20  ;;  %vm853_vm1 = vcmp.lt.s32.totalorder %v850_v36, 16  ;;  %vm961_vm4 = vcmp.lt.s32.totalorder (%p454_p3), %v2550_v29, 1  ;;  %vm978_vm5 = vcmask (%p454_p3), 162816  }
 0x19a   : >> { %vm855_vm2 = vmand %vm853_vm1, %vm854_vm0  ;;  %p1784_p8 = pnand (%p454_p3), %p1783_p4, %p3070_p7 }
 0x19b   : >> { %v856_v37 = vsel %vm855_vm2, %v837_v32, 0.0  ;;  %v859_v38 = vsel %vm855_vm2, %v840_v33, 0.0  ;;  %v863_v39 = vsel %vm855_vm2, %v843_v34, 0.0  ;;  %v867_v40 = vsel %vm855_vm2, %v846_v35, 0.0 }
 0x19c   : >> { %858 = vst [vmem:[%s857_s27] sm:$0xff] %v856_v37  ;;  %1547 = vst [vmem:[%s857_s27 + $0x18] sm:$0xff] %v859_v38  ;;  %p1785_p13 = pneg (%p454_p3), %p1784_p8 }
 0x19d   : >> { %1549 = vst [vmem:[%s857_s27 + $0x30] sm:$0xff] %v863_v39  ;;  %1551 = vst [vmem:[%s857_s27 + $0x48] sm:$0xff] %v867_v40  ;;  %s1572_s23 = sshll.u32 (%p454_p3), %s3065_s8, 10  ;;  %s1879_s27 = smov (%p454_p3), [#allocation12]  }
 0x19e   : > { %s2768_s14 = scalar_lea.hbm %s3068_s11, %s1572_s23 }
 0x1a4   : > { %v2564_v20 = vld [vmem:[#allocation2 + $0x18] sm:$0xff]  ;;  %v2566_v41 = vld [vmem:[#allocation2] sm:$0xff]  ;;  %v2572_v43 = vld [vmem:[#allocation2 + $0x8] sm:$0xff] }
 0x1a5   : > { %985 = vadd.xlane.f32.xlu1 %v2564_v20  ;;  %887 = vadd.xlane.f32.xlu0 %v2566_v41  ;;  %v2570_v42 = vld [vmem:[#allocation2 + $0x20] sm:$0xff]  ;;  %v2576_v44 = vld [vmem:[#allocation2 + $0x38] sm:$0xff]  ;;  %v2578_v45 = vld [vmem:[#allocation2 + $0x30] sm:$0xff]  ;;  %v902_v48 = vmul.f32 %v2566_v41, %v2566_v41  ;;  %v903_v50 = vmul.f32 %v2572_v43, %v2572_v43  ;;  %v1000_v52 = vmul.f32 %v2564_v20, %v2564_v20 }
 0x1a6   : > { %v2582_v46 = vld [vmem:[#allocation2 + $0x50] sm:$0xff]  ;;  %v2584_v47 = vld [vmem:[#allocation2 + $0x48] sm:$0xff]  ;;  %v1001_v53 = vmul.f32 %v2570_v42, %v2570_v42  ;;  %v1096_v54 = vmul.f32 %v2578_v45, %v2578_v45  ;;  %v1080_v55 = vld [vmem:[#allocation2 + $0x40] sm:$0xff]  ;;  %v1097_v56 = vmul.f32 %v2576_v44, %v2576_v44 }
 0x1a7   : > { %v886_v49 = vld [vmem:[#allocation2 + $0x10] sm:$0xff]  ;;  %v984_v51 = vld [vmem:[#allocation2 + $0x28] sm:$0xff]  ;;  %v1176_v57 = vld [vmem:[#allocation2 + $0x58] sm:$0xff]  ;;  %v1192_v58 = vmul.f32 %v2584_v47, %v2584_v47  ;;  %v1193_v59 = vmul.f32 %v2582_v46, %v2582_v46  ;;  %v1098_v62 = vmul.f32 %v1080_v55, %v1080_v55 }
 0x1a8   : > { %v904_v60 = vmul.f32 %v886_v49, %v886_v49  ;;  %v1002_v61 = vmul.f32 %v984_v51, %v984_v51  ;;  %v1194_v63 = vmul.f32 %v1176_v57, %v1176_v57 }
 0x1a9   : > { %987 = vadd.xlane.f32.xlu1 %v2570_v42  ;;  %889 = vadd.xlane.f32.xlu0 %v2572_v43 }
 0x1ad   : > { %1083 = vadd.xlane.f32.xlu1 %v2576_v44  ;;  %1081 = vadd.xlane.f32.xlu0 %v2578_v45 }
 0x1b1   : > { %1179 = vadd.xlane.f32.xlu1 %v2582_v46  ;;  %1177 = vadd.xlane.f32.xlu0 %v2584_v47 }
 0x1b5   : > { %891 = vadd.xlane.f32.xlu0 %v886_v49  ;;  %905 = vadd.xlane.f32.xlu1 %v902_v48 }
 0x1b9   : > { %907 = vadd.xlane.f32.xlu0 %v903_v50  ;;  %989 = vadd.xlane.f32.xlu1 %v984_v51 }
 0x1bd   : > { %1003 = vadd.xlane.f32.xlu0 %v1000_v52  ;;  %1005 = vadd.xlane.f32.xlu1 %v1001_v53 }
 0x1c1   : > { %1085 = vadd.xlane.f32.xlu0 %v1080_v55  ;;  %1099 = vadd.xlane.f32.xlu1 %v1096_v54 }
 0x1c5   : > { %1101 = vadd.xlane.f32.xlu0 %v1097_v56  ;;  %1181 = vadd.xlane.f32.xlu1 %v1176_v57 }
 0x1c9   : > { %1195 = vadd.xlane.f32.xlu0 %v1192_v58  ;;  %1197 = vadd.xlane.f32.xlu1 %v1193_v59 }
 0x1cd   : > { %909 = vadd.xlane.f32.xlu0 %v904_v60  ;;  %1007 = vadd.xlane.f32.xlu1 %v1002_v61 }
 0x1d1   : > { %1103 = vadd.xlane.f32.xlu0 %v1098_v62  ;;  %1199 = vadd.xlane.f32.xlu1 %v1194_v63 }
 0x1e2   : > { %944 = vrot.lane.b32.xlu1 %v1876_v0, %s1877_s17 }
 0x1e6   : > { %950 = vrot.lane.b32.xlu1 %v1876_v0, %s1878_s29 }
 0x1e7   : > { %1042 = vrot.lane.b32.xlu0 %v1876_v0, %s1877_s17 }
 0x1ea   : > { %1048 = vrot.lane.b32.xlu1 %v1876_v0, %s1878_s29 }
 0x1eb   : > { %1138 = vrot.lane.b32.xlu0 %v1876_v0, %s1877_s17 }
 0x1ee   : > { %1144 = vrot.lane.b32.xlu1 %v1876_v0, %s1878_s29 }
 0x1ef   : > { %1234 = vrot.lane.b32.xlu0 %v1876_v0, %s1877_s17 }
 0x232   : > { %v986_v1 = vpop.xlane.xlu1 %985  ;;  %v888_v2 = vpop.xlane.xlu0 %887 }
 0x236   : > { %v988_v3 = vpop.xlane.xlu1 %987  ;;  %v890_v4 = vpop.xlane.xlu0 %889 }
 0x237   : > { %v893_v11 = vadd.f32 %v890_v4, %v888_v2  ;;  %v991_v14 = vadd.f32 %v988_v3, %v986_v1 }
 0x23a   : > { %v1084_v5 = vpop.xlane.xlu1 %1083  ;;  %v1082_v6 = vpop.xlane.xlu0 %1081 }
 0x23b   : > { %v1087_v21 = vadd.f32 %v1084_v5, %v1082_v6 }
 0x23e   : > { %v1180_v7 = vpop.xlane.xlu1 %1179  ;;  %v1178_v8 = vpop.xlane.xlu0 %1177 }
 0x23f   : > { %v1183_v30 = vadd.f32 %v1180_v7, %v1178_v8 }
 0x242   : > { %v892_v9 = vpop.xlane.xlu0 %891  ;;  %v906_v10 = vpop.xlane.xlu1 %905 }
 0x243   : > { %v894_v15 = vadd.f32 %v893_v11, %v892_v9 }
 0x245   : > { %v895_v19 = vrot.slane %v894_v15, 4 }
 0x246   : > { %v908_v12 = vpop.xlane.xlu0 %907  ;;  %v990_v13 = vpop.xlane.xlu1 %989 }
 0x247   : > { %v992_v16 = vadd.f32 %v991_v14, %v990_v13  ;;  %v896_v26 = vadd.f32 %v895_v19, %v894_v15  ;;  %v911_v50 = vadd.f32 %v908_v12, %v906_v10 }
 0x249   : > { %v993_v22 = vrot.slane %v992_v16, 4  ;;  %v897_v34 = vrot.slane %v896_v26, 2 }
 0x24a   : > { %v1004_v17 = vpop.xlane.xlu0 %1003  ;;  %v1006_v18 = vpop.xlane.xlu1 %1005 }
 0x24b   : > { %v994_v27 = vadd.f32 %v993_v22, %v992_v16  ;;  %v898_v48 = vadd.f32 %v897_v34, %v896_v26  ;;  %v1009_v52 = vadd.f32 %v1006_v18, %v1004_v17 }
 0x24d   : > { %v995_v37 = vrot.slane %v994_v27, 2  ;;  %v899_v58 = vrot.slane %v898_v48, 1 }
 0x24e   : > { %v1086_v23 = vpop.xlane.xlu0 %1085  ;;  %v1100_v24 = vpop.xlane.xlu1 %1099 }
 0x24f   : > { %v1088_v25 = vadd.f32 %v1087_v21, %v1086_v23  ;;  %v996_v51 = vadd.f32 %v995_v37, %v994_v27  ;;  %v900_v8 = vadd.f32 %v899_v58, %v898_v48 }
 0x251   : > { %v1089_v28 = vrot.slane %v1088_v25, 4  ;;  %v997_v60 = vrot.slane %v996_v51, 1  ;;  %v901_v21 = vmul.f32 0.003125, %v900_v8  ;;  %v929_v8 = vstv %s927_s26 }
 0x252   : > { %v1102_v32 = vpop.xlane.xlu0 %1101  ;;  %v1182_v33 = vpop.xlane.xlu1 %1181 }
 0x253   : > { %v1090_v35 = vadd.f32 %v1089_v28, %v1088_v25  ;;  %v1184_v36 = vadd.f32 %v1183_v30, %v1182_v33  ;;  %v1105_v61 = vadd.f32 %v1102_v32, %v1100_v24  ;;  %v998_v11 = vadd.f32 %v997_v60, %v996_v51 }
 0x255   : > { %v1185_v40 = vrot.slane %v1184_v36, 4  ;;  %v1091_v49 = vrot.slane %v1090_v35, 2  ;;  %v999_v24 = vmul.f32 0.003125, %v998_v11 }
 0x256   : > { %v1196_v38 = vpop.xlane.xlu0 %1195  ;;  %v1198_v39 = vpop.xlane.xlu1 %1197 }
 0x257   : > { %v1186_v55 = vadd.f32 %v1185_v40, %v1184_v36  ;;  %v1092_v59 = vadd.f32 %v1091_v49, %v1090_v35  ;;  %v1201_v1 = vadd.f32 %v1198_v39, %v1196_v38  ;;  %v920_v35 = vmul.f32 %v901_v21, %v901_v21 }
 0x258   : > { %v1018_v38 = vmul.f32 %v999_v24, %v999_v24 }
 0x259   : > { %v1187_v4 = vrot.slane %v1186_v55, 2  ;;  %v1093_v9 = vrot.slane %v1092_v59, 1 }
 0x25a   : > { %v910_v53 = vpop.xlane.xlu0 %909  ;;  %v1008_v54 = vpop.xlane.xlu1 %1007 }
 0x25b   : > { %v912_v56 = vadd.f32 %v911_v50, %v910_v53  ;;  %v1010_v57 = vadd.f32 %v1009_v52, %v1008_v54  ;;  %v1188_v16 = vadd.f32 %v1187_v4, %v1186_v55  ;;  %v1094_v22 = vadd.f32 %v1093_v9, %v1092_v59 }
 0x25d   : > { %v913_v62 = vrot.slane %v912_v56, 4  ;;  %v1011_v63 = vrot.slane %v1010_v57, 4  ;;  %v1189_v30 = vrot.slane %v1188_v16, 1  ;;  %v1095_v36 = vmul.f32 0.003125, %v1094_v22 }
 0x25e   : > { %v1104_v2 = vpop.xlane.xlu0 %1103  ;;  %v1200_v3 = vpop.xlane.xlu1 %1199 }
 0x25f   : > { %v914_v5 = vadd.f32 %v913_v62, %v912_v56  ;;  %v1012_v6 = vadd.f32 %v1011_v63, %v1010_v57  ;;  %v1106_v7 = vadd.f32 %v1105_v61, %v1104_v2  ;;  %v1202_v10 = vadd.f32 %v1201_v1, %v1200_v3 }
 0x260   : > { %v1190_v50 = vadd.f32 %v1189_v30, %v1188_v16  ;;  %v1114_v54 = vmul.f32 %v1095_v36, %v1095_v36  ;;  %v925_v2 = vstv %s924_s22  ;;  %v1023_v3 = vstv %s1022_s19 }
 0x261   : > { %v915_v12 = vrot.slane %v914_v5, 2  ;;  %v1013_v13 = vrot.slane %v1012_v6, 2  ;;  %v1107_v14 = vrot.slane %v1106_v7, 4  ;;  %v1203_v15 = vrot.slane %v1202_v10, 4 }
 0x262   : > { %v1191_v59 = vmul.f32 0.003125, %v1190_v50  ;;  %v1027_v16 = vstv %s1025_s16  ;;  %v1123_v30 = vstv %s1121_s6 }
 0x263   : > { %v916_v17 = vadd.f32 %v915_v12, %v914_v5  ;;  %v1014_v18 = vadd.f32 %v1013_v13, %v1012_v6  ;;  %v1108_v19 = vadd.f32 %v1107_v14, %v1106_v7  ;;  %v1204_v23 = vadd.f32 %v1203_v15, %v1202_v10 }
 0x264   : > { %v1210_v63 = vmul.f32 %v1191_v59, %v1191_v59 }
 0x265   : > { %v917_v25 = vrot.slane %v916_v17, 1  ;;  %v1015_v26 = vrot.slane %v1014_v18, 1  ;;  %v1109_v27 = vrot.slane %v1108_v19, 2  ;;  %v1205_v28 = vrot.slane %v1204_v23, 2 }
 0x267   : > { %v918_v32 = vadd.f32 %v917_v25, %v916_v17  ;;  %v1016_v33 = vadd.f32 %v1015_v26, %v1014_v18  ;;  %v1110_v34 = vadd.f32 %v1109_v27, %v1108_v19  ;;  %v1206_v37 = vadd.f32 %v1205_v28, %v1204_v23 }
 0x268   : > { %v1119_v17 = vstv %s1118_s21 }
 0x269   : > { %v919_v39 = vmul.f32 0.003125, %v918_v32  ;;  %v1017_v40 = vmul.f32 0.003125, %v1016_v33  ;;  %v1111_v48 = vrot.slane %v1110_v34, 1  ;;  %v1207_v49 = vrot.slane %v1206_v37, 1 }
 0x26a   : > { %v1215_v32 = vstv %s1214_s13 }
 0x26b   : > { %v921_v51 = vsub.f32 %v919_v39, %v920_v35  ;;  %v1019_v52 = vsub.f32 %v1017_v40, %v1018_v38  ;;  %v1112_v53 = vadd.f32 %v1111_v48, %v1110_v34  ;;  %v1208_v58 = vadd.f32 %v1207_v49, %v1206_v37 }
 0x26c   : > { %v1219_v40 = vstv %s1217_s0 }
 0x26d   : > { %v922_v55 = vadd.f32 1e-05, %v921_v51  ;;  %v1020_v56 = vadd.f32 1e-05, %v1019_v52  ;;  %v1113_v57 = vmul.f32 0.003125, %v1112_v53 }
 0x26e   : > { %v1209_v62 = vmul.f32 0.003125, %v1208_v58 }
 0x26f   : > { %1671 = vrsqrt.f32 %v922_v55  ;;  %v1115_v60 = vsub.f32 %v1113_v57, %v1114_v54 }
 0x270   : > { %1673 = vrsqrt.f32 %v1020_v56  ;;  %v1211_v1 = vsub.f32 %v1209_v62, %v1210_v63 }
 0x271   : > { %v1116_v61 = vadd.f32 1e-05, %v1115_v60 }
 0x272   : > { %v1212_v5 = vadd.f32 1e-05, %v1211_v1 }
 0x273   : > { %1675 = vrsqrt.f32 %v1116_v61 }
 0x274   : > { %1677 = vrsqrt.f32 %v1212_v5 }
 0x279   : > { %v1672_v4 = vpop.eup %1671 }
 0x27a   : > { %v1674_v6 = vpop.eup %1673  ;;  %v926_v7 = vmul.f32 %v1672_v4, %v925_v2 }
 0x27b   : > { %v1024_v9 = vmul.f32 %v1674_v6, %v1023_v3 }
 0x27c   : > { %v928_v10 = vmul.f32 %v926_v7, %v901_v21  ;;  %v932_v12 = vmul.f32 %v926_v7, %v2572_v43  ;;  %v931_v13 = vmul.f32 %v926_v7, %v2566_v41 }
 0x27d   : > { %v1026_v14 = vmul.f32 %v1024_v9, %v999_v24  ;;  %v1676_v15 = vpop.eup %1675  ;;  %v1030_v23 = vmul.f32 %v1024_v9, %v2570_v42  ;;  %v1029_v24 = vmul.f32 %v1024_v9, %v2564_v20 }
 0x27e   : > { %v930_v11 = vsub.f32 %v929_v8, %v928_v10  ;;  %v1120_v21 = vmul.f32 %v1676_v15, %v1119_v17  ;;  %v1678_v28 = vpop.eup %1677 }
 0x27f   : > { %v1028_v41 = vsub.f32 %v1027_v16, %v1026_v14  ;;  %v1216_v34 = vmul.f32 %v1678_v28, %v1215_v32 }
 0x280   : > { %v935_v18 = vadd.f32 %v932_v12, %v930_v11  ;;  %v934_v19 = vadd.f32 %v931_v13, %v930_v11  ;;  %v1122_v27 = vmul.f32 %v1120_v21, %v1095_v36  ;;  %v1126_v35 = vmul.f32 %v1120_v21, %v2576_v44 }
 0x281   : > { %v1033_v25 = vadd.f32 %v1030_v23, %v1028_v41  ;;  %v1032_v26 = vadd.f32 %v1029_v24, %v1028_v41  ;;  %v1125_v36 = vmul.f32 %v1120_v21, %v2578_v45  ;;  %v1218_v39 = vmul.f32 %v1216_v34, %v1191_v59 }
 0x282   : > { %v2634_v22 = vsel %vm854_vm0, %v935_v18, -1e+30  ;;  %v2638_v43 = vsel %vm854_vm0, %v934_v19, -1e+30  ;;  %v1124_v42 = vsub.f32 %v1123_v30, %v1122_v27  ;;  %v1222_v45 = vmul.f32 %v1216_v34, %v2582_v46  ;;  %v945_v46 = vpop.permute.xlu1 %944 }
 0x283   : > { %942 = vrot.lane.b32.xlu1 %v2634_v22, %s1877_s17  ;;  %940 = vrot.lane.b32.xlu0 %v2638_v43, %s1877_s17  ;;  %v2654_v33 = vsel %vm854_vm0, %v1033_v25, -1e+30  ;;  %v2658_v20 = vsel %vm854_vm0, %v1032_v26, -1e+30  ;;  %v1220_v44 = vsub.f32 %v1219_v40, %v1218_v39  ;;  %v1221_v50 = vmul.f32 %v1216_v34, %v2584_v47  ;;  %v1043_v47 = vpop.permute.xlu0 %1042 }
 0x284   : > { %v1129_v37 = vadd.f32 %v1126_v35, %v1124_v42  ;;  %v1128_v38 = vadd.f32 %v1125_v36, %v1124_v42 }
 0x285   : > { %v1225_v51 = vadd.f32 %v1222_v45, %v1220_v44  ;;  %v1224_v52 = vadd.f32 %v1221_v50, %v1220_v44 }
 0x286   : > { %v2672_v48 = vsel %vm854_vm0, %v1129_v37, -1e+30  ;;  %v2676_v49 = vsel %vm854_vm0, %v1128_v38, -1e+30  ;;  %v951_v31 = vpop.permute.xlu1 %950 }
 0x287   : > { %946 = vrot.lane.b32.xlu1 %v2638_v43, %s1878_s29  ;;  %948 = vrot.lane.b32.xlu0 %v2634_v22, %s1878_s29  ;;  %v2690_v53 = vsel %vm854_vm0, %v1225_v51, -1e+30  ;;  %v2694_v54 = vsel %vm854_vm0, %v1224_v52, -1e+30  ;;  %v1139_v55 = vpop.permute.xlu0 %1138  ;;  %v954_v59 = vmax.f32 %v945_v46, %v951_v31 }
 0x289   : > { %v957_v62 = vmax.f32 %v954_v59, -1e+30 }
 0x28a   : > { %v1049_v56 = vpop.permute.xlu1 %1048 }
 0x28b   : > { %1040 = vrot.lane.b32.xlu1 %v2654_v33, %s1877_s17  ;;  %1038 = vrot.lane.b32.xlu0 %v2658_v20, %s1877_s17  ;;  %v2706_v57 = vpop.permute.xlu0 %1234  ;;  %v1052_v4 = vmax.f32 %v1043_v47, %v1049_v56  ;;  %v960_v6 = vrot.slane %v957_v62, 7  ;;  %v966_v7 = vrot.slane %v957_v62, 1 }
 0x28d   : > { %v1055_v18 = vmax.f32 %v1052_v4, -1e+30 }
 0x28e   : > { %v1145_v58 = vpop.permute.xlu1 %1144 }
 0x28f   : > { %1044 = vrot.lane.b32.xlu1 %v2658_v20, %s1878_s29  ;;  %1046 = vrot.lane.b32.xlu0 %v2654_v33, %s1878_s29  ;;  %v1058_v28 = vrot.slane %v1055_v18, 7  ;;  %v1063_v30 = vrot.slane %v1055_v18, 1  ;;  %v1148_v32 = vmax.f32 %v1139_v55, %v1145_v58 }
 0x293   : > { %1136 = vrot.lane.b32.xlu1 %v2672_v48, %s1877_s17  ;;  %1134 = vrot.lane.b32.xlu0 %v2676_v49, %s1877_s17 }
 0x297   : > { %1140 = vrot.lane.b32.xlu1 %v2676_v49, %s1878_s29  ;;  %1142 = vrot.lane.b32.xlu0 %v2672_v48, %s1878_s29 }
 0x29b   : > { %1232 = vrot.lane.b32.xlu1 %v2690_v53, %s1877_s17  ;;  %1230 = vrot.lane.b32.xlu0 %v2694_v54, %s1877_s17  ;;  %s1786_s17 = sshll.u32 %s1879_s27, 4  ;;  %s1787_s17 = int_to_ptr.vmem [resolvable:$false] %s1786_s17 }
 0x29c   : > { %p1789_p9 = scmp.lt.s32.totalorder %s2770_s7, %s1787_s17 }
 0x29f   : > { %1236 = vrot.lane.b32.xlu1 %v2694_v54, %s1878_s29  ;;  %1238 = vrot.lane.b32.xlu0 %v2690_v53, %s1878_s29 }
 0x2a3   : > { %1240 = vrot.lane.b32.xlu1 %v1876_v0, %s1878_s29  ;;  %s1788_s29 = scalar_lea.vmem %s1787_s17, 2048 }
 0x2a4   : > { %p1790_p0 = scmp.lt.s32.totalorder %s1788_s29, %s1782_s3 }
 0x2a6   : > { %p1791_p5 = por %p1790_p0, %p1789_p9 }
 0x2a8   : > { %p1792_p10 = pnand %p1791_p5, %p1785_p13 }
 0x2f5   : > { %v941_v60 = vpop.permute.xlu0 %940  ;;  %v943_v61 = vpop.permute.xlu1 %942 }
 0x2f9   : > { %v949_v63 = vpop.permute.xlu0 %948  ;;  %v947_v1 = vpop.permute.xlu1 %946 }
 0x2fa   : > { %v953_v2 = vmax.f32 %v943_v61, %v949_v63  ;;  %v952_v3 = vmax.f32 %v941_v60, %v947_v1 }
 0x2fc   : > { %v956_v5 = vmax.f32 %v2634_v22, %v953_v2  ;;  %v955_v0 = vmax.f32 %v2638_v43, %v952_v3 }
 0x2fd   : > { %v1039_v8 = vpop.permute.xlu0 %1038  ;;  %v1041_v9 = vpop.permute.xlu1 %1040 }
 0x2fe   : > { %v959_v10 = vrot.slane %v956_v5, 7  ;;  %v965_v11 = vrot.slane %v956_v5, 1  ;;  %v958_v12 = vrot.slane %v955_v0, 7  ;;  %v964_v13 = vrot.slane %v955_v0, 1 }
 0x300   : > { %v968_v14 = vsel %vm967_vm3, %v965_v11, %v966_v7  ;;  %v962_v15 = vsel %vm961_vm4, %v958_v12, %v959_v10  ;;  %v963_v16 = vsel %vm961_vm4, %v960_v6, %v958_v12  ;;  %v969_v17 = vsel %vm967_vm3, %v964_v13, %v965_v11 }
 0x301   : > { %v970_v19 = vmax.f32 %v963_v16, %v969_v17  ;;  %v971_v22 = vmax.f32 %v962_v15, %v968_v14  ;;  %v1047_v43 = vpop.permute.xlu0 %1046  ;;  %v1045_v41 = vpop.permute.xlu1 %1044 }
 0x302   : > { %v1051_v21 = vmax.f32 %v1041_v9, %v1047_v43  ;;  %v1050_v23 = vmax.f32 %v1039_v8, %v1045_v41 }
 0x303   : > { %v972_v24 = vmax.f32 %v955_v0, %v970_v19  ;;  %v973_v25 = vmax.f32 %v956_v5, %v971_v22 }
 0x304   : > { %v1054_v26 = vmax.f32 %v2654_v33, %v1051_v21  ;;  %v1053_v27 = vmax.f32 %v2658_v20, %v1050_v23  ;;  %v1151_v20 = vmax.f32 %v1148_v32, -1e+30 }
 0x305   : > { %1679 = vtanh.f32 %v972_v24  ;;  %v1135_v42 = vpop.permute.xlu0 %1134  ;;  %v1137_v34 = vpop.permute.xlu1 %1136 }
 0x306   : > { %1681 = vtanh.f32 %v973_v25  ;;  %v1057_v35 = vrot.slane %v1054_v26, 7  ;;  %v1062_v36 = vrot.slane %v1054_v26, 1  ;;  %v1056_v37 = vrot.slane %v1053_v27, 7 }
 0x307   : > { %v1061_v38 = vrot.slane %v1053_v27, 1  ;;  %v1154_v59 = vrot.slane %v1151_v20, 7  ;;  %v1159_v60 = vrot.slane %v1151_v20, 1 }
 0x308   : > { %v1064_v39 = vsel %vm967_vm3, %v1062_v36, %v1063_v30  ;;  %v1059_v40 = vsel %vm961_vm4, %v1056_v37, %v1057_v35  ;;  %v1060_v33 = vsel %vm961_vm4, %v1058_v28, %v1056_v37 }
 0x309   : > { %v1065_v44 = vsel %vm967_vm3, %v1061_v38, %v1062_v36  ;;  %v1067_v45 = vmax.f32 %v1059_v40, %v1064_v39  ;;  %v1143_v50 = vpop.permute.xlu0 %1142  ;;  %v1141_v51 = vpop.permute.xlu1 %1140 }
 0x30a   : > { %v1066_v52 = vmax.f32 %v1060_v33, %v1065_v44  ;;  %v1147_v46 = vmax.f32 %v1137_v34, %v1143_v50  ;;  %v1146_v47 = vmax.f32 %v1135_v42, %v1141_v51 }
 0x30b   : > { %v1069_v31 = vmax.f32 %v1054_v26, %v1067_v45 }
 0x30c   : > { %v1068_v55 = vmax.f32 %v1053_v27, %v1066_v52  ;;  %v1150_v56 = vmax.f32 %v2672_v48, %v1147_v46  ;;  %v1149_v58 = vmax.f32 %v2676_v49, %v1146_v47 }
 0x30d   : > { %1683 = vtanh.f32 %v1069_v31  ;;  %v1231_v61 = vpop.permute.xlu0 %1230  ;;  %v1233_v62 = vpop.permute.xlu1 %1232 }
 0x30e   : > { %1685 = vtanh.f32 %v1068_v55  ;;  %v1153_v63 = vrot.slane %v1150_v56, 7  ;;  %v1158_v1 = vrot.slane %v1150_v56, 1  ;;  %v1152_v2 = vrot.slane %v1149_v58, 7 }
 0x30f   : > { %v1680_v3 = vpop.eup %1679  ;;  %v1157_v4 = vrot.slane %v1149_v58, 1 }
 0x310   : > { %v1682_v5 = vpop.eup %1681  ;;  %1687 = vtanh.f32 %v1680_v3  ;;  %v1160_v0 = vsel %vm967_vm3, %v1158_v1, %v1159_v60  ;;  %v1155_v48 = vsel %vm961_vm4, %v1152_v2, %v1153_v63  ;;  %v1156_v49 = vsel %vm961_vm4, %v1154_v59, %v1152_v2 }
 0x311   : > { %1689 = vtanh.f32 %v1682_v5  ;;  %v1161_v6 = vsel %vm967_vm3, %v1157_v4, %v1158_v1  ;;  %v1163_v7 = vmax.f32 %v1155_v48, %v1160_v0  ;;  %v1239_v8 = vpop.permute.xlu0 %1238  ;;  %v1237_v9 = vpop.permute.xlu1 %1236 }
 0x312   : > { %v1162_v10 = vmax.f32 %v1156_v49, %v1161_v6  ;;  %v1243_v11 = vmax.f32 %v1233_v62, %v1239_v8  ;;  %v1242_v12 = vmax.f32 %v1231_v61, %v1237_v9 }
 0x313   : > { %v1165_v13 = vmax.f32 %v1150_v56, %v1163_v7 }
 0x314   : > { %v1164_v14 = vmax.f32 %v1149_v58, %v1162_v10  ;;  %v1246_v15 = vmax.f32 %v2690_v53, %v1243_v11  ;;  %v1245_v16 = vmax.f32 %v2694_v54, %v1242_v12 }
 0x315   : > { %1691 = vtanh.f32 %v1165_v13  ;;  %v1241_v17 = vpop.permute.xlu1 %1240 }
 0x316   : > { %1693 = vtanh.f32 %v1164_v14  ;;  %v1244_v19 = vmax.f32 %v2706_v57, %v1241_v17  ;;  %v1249_v43 = vrot.slane %v1246_v15, 7  ;;  %v1254_v41 = vrot.slane %v1246_v15, 1 }
 0x317   : > { %v1684_v18 = vpop.eup %1683  ;;  %v1248_v21 = vrot.slane %v1245_v16, 7  ;;  %v1253_v23 = vrot.slane %v1245_v16, 1 }
 0x318   : > { %v1686_v22 = vpop.eup %1685  ;;  %1695 = vtanh.f32 %v1684_v18  ;;  %v1247_v24 = vmax.f32 %v1244_v19, -1e+30 }
 0x319   : > { %1697 = vtanh.f32 %v1686_v22  ;;  %v1251_v57 = vsel %vm961_vm4, %v1248_v21, %v1249_v43  ;;  %v1257_v27 = vsel %vm967_vm3, %v1253_v23, %v1254_v41 }
 0x31a   : > { %v1688_v53 = vpop.eup %1687  ;;  %v1250_v54 = vrot.slane %v1247_v24, 7  ;;  %v1255_v26 = vrot.slane %v1247_v24, 1 }
 0x31b   : > { %v1690_v25 = vpop.eup %1689  ;;  %979 = vst.msk [vmem:[%s2401_s10] sm:$0xff] %vm978_vm5, %v1688_v53 }
 0x31c   : > { %980 = vst.msk [vmem:[%s2401_s10 + $0x8] sm:$0xff] %vm978_vm5, %v1690_v25  ;;  %v1252_v28 = vsel %vm961_vm4, %v1250_v54, %v1248_v21  ;;  %v1256_v30 = vsel %vm967_vm3, %v1254_v41, %v1255_v26 }
 0x31d   : > { %v1258_v32 = vmax.f32 %v1252_v28, %v1257_v27  ;;  %v1259_v42 = vmax.f32 %v1251_v57, %v1256_v30 }
 0x31f   : > { %v1692_v34 = vpop.eup %1691  ;;  %v1260_v36 = vmax.f32 %v1245_v16, %v1258_v32  ;;  %v1261_v37 = vmax.f32 %v1246_v15, %v1259_v42 }
 0x320   : > { %v1694_v35 = vpop.eup %1693  ;;  %1699 = vtanh.f32 %v1692_v34 }
 0x321   : > { %1701 = vtanh.f32 %v1694_v35 }
 0x322   : > { %v1696_v38 = vpop.eup %1695  ;;  %1703 = vtanh.f32 %v1260_v36 }
 0x323   : > { %v1698_v39 = vpop.eup %1697  ;;  %1553 = vst.msk [vmem:[%s2401_s10 + $0x18] sm:$0xff] %vm978_vm5, %v1696_v38  ;;  %1705 = vtanh.f32 %v1261_v37 }
 0x324   : > { %1552 = vst.msk [vmem:[%s2401_s10 + $0x10] sm:$0xff] %vm978_vm5, %v1698_v39 }
 0x32a   : > { %v1700_v29 = vpop.eup %1699 }
 0x32b   : > { %v1702_v40 = vpop.eup %1701  ;;  %1555 = vst.msk [vmem:[%s2401_s10 + $0x28] sm:$0xff] %vm978_vm5, %v1700_v29 }
 0x32c   : > { %v1704_v33 = vpop.eup %1703  ;;  %1554 = vst.msk [vmem:[%s2401_s10 + $0x20] sm:$0xff] %vm978_vm5, %v1702_v40 }
 0x32d   : > { %v1706_v20 = vpop.eup %1705  ;;  %1707 = vtanh.f32 %v1704_v33 }
 0x32e   : > { %1709 = vtanh.f32 %v1706_v20 }
 0x337   : > { %v1708_v44 = vpop.eup %1707 }
 0x338   : > { %v1710_v45 = vpop.eup %1709  ;;  %1556 = vst.msk [vmem:[%s2401_s10 + $0x30] sm:$0xff] %vm978_vm5, %v1708_v44 }
 0x339   : > { %1557 = vst.msk [vmem:[%s2401_s10 + $0x38] sm:$0xff] %vm978_vm5, %v1710_v45 }
 0x33a   : > { %1795 = shalt.err (!%p1792_p10)
}
 0x33b   : > { %s1796_s10 = scalar_lea.hbm %s2768_s14, 1024  ;;  %s1800_s20 = scalar_lea.hbm %s3068_s11, 4096 }
 0x33c   : > { %p1797_p6 = scmp.ne.s32.totalorder %s2768_s14, %s1796_s10  ;;  %p1801_p1 = scmp.lt.u32.totalorder %s2768_s14, %s3068_s11 }
 0x33d   : > { %p1802_p2 = scmp.lt.u32.totalorder %s1800_s20, %s1796_s10  ;;  %p1804_p4 = scmp.lt.u32.totalorder %s1796_s10, %s2768_s14 }
 0x33e   : > { %p1798_p11 = pnand %p1797_p6, %p3070_p7 }
 0x33f   : > { %p1803_p3 = por %p1802_p2, %p1801_p1 }
 0x340   : > { %p1799_p12 = pneg %p1798_p11 }
 0x341   : > { %p1805_p8 = por %p1804_p4, %p1803_p3 }
 0x343   : > { %p1806_p13 = pnand %p1805_p8, %p1799_p12 }
 0x345   : > { %1809 = shalt.err (!%p1806_p13)
}
 0x346   : > { %s1880_s24 = smov 128   ;;  %s1881_s16 = smov 8  }
 0x347   : > { %1592 = dma.vmem_to_hbm [thread:$0]  (%p3070_p7), %s2770_s7, 1024, %s2768_s14, %s2778_s2, %s1880_s24, %s1880_s24, %s1881_s16  }
 0x348 PF: > { %s3071_s15 = sld [smem:[#allocation21_spill]]  ;;  %s3072_s21 = sld [smem:[#allocation18_spill]] }
 0x349   : > { %s3073_s1 = sld [smem:[#allocation26_spill]] }
 0x34e   : > { %p1619_p9 = scmp.ge.s32.totalorder %s3071_s15, 2  ;;  %s1299_s6 = sand.u32 1, %s3072_s21  }
 0x34f   : > { %p3074_p0 = scmp.ne.s32.totalorder %s3073_s1, 0  ;;  %s1300_s25 = scalar_lea.sflag [#allocation5], %s1299_s6 }
 0x351   : > { %p1608_p5 = pnand %p1619_p9, %p3074_p0 }
 0x353   : > { %1847 = dma.done.wait (!%p1608_p5), %s1300_s25, 1024  }
 0x354   : > { %1849 = vsyncadd (!%p1608_p5), %s1300_s25, 4294966272  ;;  %s3075_s18 = sld [smem:[#allocation23_spill]]  ;;  %s3076_s15 = sld [smem:[#allocation19_spill]] }
 0x355   : > { %s3077_s16 = sld [smem:[#allocation20_spill]]  ;;  %s3078_s17 = sld [smem:[#allocation24_spill]] }
 0x35a   : > { %p18_p10 = scmp.ge.s32.totalorder %s3075_s18, 6  }
 0x35c   :  { %20 = sbr.rel (!%p18_p10) target bundleno = 13 (0xd), region = 150 }
 0x363   :  { %1305 = vsyncpa [#allocation4], 1 }
 0x364   :  { %1307 = vsyncpa [#allocation4 + $0x1], 1 }
 0x365   :  { %1308 = vsyncpa [#allocation5], 1 }
 0x366   :  { %1310 = vsyncpa [#allocation5 + $0x1], 1 }
 0x367   :  { %1311 = vsyncpa [#allocation6], 1 }
 0x368   :  { %1313 = vsyncpa [#allocation6 + $0x1], 1 }
 0x369   :  { %1314 = vsyncpa [#allocation7], 1 }
 0x36a   :  { %1316 = vsyncpa [#allocation7 + $0x1], 1 }
 0x36b   :  { %1317 = vsyncpa [#allocation10], 1 }

</bundles_post_ra>
